<compile_context>
chip_gen: v7x
topology: tpu7x:2x2x1
jax: 0.10.0
libtpu: 0.0.40
codegen_flags: <defaults>
</compile_context>

<pallas_src>
import warnings

import jax
import jax.numpy as jnp
import numpy as np
from jax.experimental import pallas as pl
from jax.experimental.pallas import tpu as pltpu


_HW_KERNEL = (5, 3, 3)      # dwconv_hw
_W_KERNEL = (1, 1, 11)      # dwconv_w
_H_KERNEL = (1, 11, 1)      # dwconv_h
_NTAPS = (5 * 3 * 3, 11, 11)
_NT_MAX = max(_NTAPS)       # 45
_NCOL = _NT_MAX + 1         # +1 column for the bias


def _make_kernel(gc, D, H, W, row0, lane0, rows_total, lanes_total):
    HW = H * W
    gcD = gc * D
    f32 = jnp.float32

    # Static tap tables (ordering must match _weight_columns()).
    hw_taps = []                                  # (col, da, lane_shift, dc)
    t = 0
    for ka in range(_HW_KERNEL[0]):
        for kb in range(_HW_KERNEL[1]):
            for kc in range(_HW_KERNEL[2]):
                da = ka - _HW_KERNEL[0] // 2
                db = kb - _HW_KERNEL[1] // 2
                dc = kc - _HW_KERNEL[2] // 2
                hw_taps.append((t, da, db * W + dc, dc))
                t += 1
    w_taps = [(t, t - _W_KERNEL[2] // 2) for t in range(_W_KERNEL[2])]       # (col, dc)
    h_taps = [(t, (t - _H_KERNEL[1] // 2) * W) for t in range(_H_KERNEL[1])]  # (col, shift)

    def kernel(x_ref, w_ref, o_ref, pad_ref):
        br = pl.program_id(1)

        # ---- zero ONLY the halo strips; the interior is rewritten below ----
        if row0 > 0:
            pad_ref[0:row0, :] = jnp.zeros((row0, lanes_total), f32)
        if rows_total - row0 - gcD > 0:
            pad_ref[row0 + gcD:rows_total, :] = jnp.zeros(
                (rows_total - row0 - gcD, lanes_total), f32)
        if lane0 > 0:
            pad_ref[row0:row0 + gcD, 0:lane0] = jnp.zeros((gcD, lane0), f32)
        if lanes_total - lane0 - HW > 0:
            pad_ref[row0:row0 + gcD, lane0 + HW:lanes_total] = jnp.zeros(
                (gcD, lanes_total - lane0 - HW), f32)

        # ---- stage the gc channels, packed depth-major / channel-minor ----
        for d in range(D):
            pad_ref[row0 + d * gc:row0 + (d + 1) * gc, lane0:lane0 + HW] = (
                x_ref[0, :, d, :].astype(f32))

        # Float masks for lane shifts that would wrap across a W row.
        wpos = jax.lax.broadcasted_iota(jnp.int32, (1, HW), 1) % W

        def maskf(dc):
            if dc > 0:
                return (wpos < (W - dc)).astype(f32)
            return (wpos >= (-dc)).astype(f32)

        def patch(da, shift):
            r = row0 + da * gc
            c0 = lane0 + shift
            return pad_ref[r:r + gcD, c0:c0 + HW]

        def wcol(col):
            return w_ref[0, :, col:col + 1]       # (gcD, 1): weight[c] per row

        bias_col = _NT_MAX

        def writeback(acc):
            for d in range(D):
                o_ref[0, :, d, :] = acc[d * gc:(d + 1) * gc, :].astype(o_ref.dtype)

        @pl.when(br == 0)                          # (5, 3, 3) depthwise branch
        def _():
            acc0 = jnp.zeros((gcD, HW), f32)
            accp = jnp.zeros((gcD, HW), f32)
            accm = jnp.zeros((gcD, HW), f32)
            # TODO(synk): at much larger tap counts / gc*D, switch to a
            # lax.fori_loop over an SMEM tap table to bound live ranges.
            for col, da, shift, dc in hw_taps:
                contrib = patch(da, shift) * wcol(col)
                if dc == 0:
                    acc0 = acc0 + contrib
                elif dc > 0:
                    accp = accp + contrib
                else:
                    accm = accm + contrib
            acc = acc0 + maskf(1) * accp + maskf(-1) * accm + wcol(bias_col)
            writeback(acc)

        @pl.when(br == 1)                          # (1, 1, 11) depthwise branch
        def _():
            acc = jnp.zeros((gcD, HW), f32)
            for col, dc in w_taps:
                contrib = patch(0, dc) * wcol(col)
                if dc != 0:
                    contrib = contrib * maskf(dc)
                acc = acc + contrib
            writeback(acc + wcol(bias_col))

        @pl.when(br == 2)                          # (1, 11, 1) depthwise branch
        def _():
            acc = jnp.zeros((gcD, HW), f32)
            for col, shift in h_taps:
                acc = acc + patch(0, shift) * wcol(col)
            writeback(acc + wcol(bias_col))

    return kernel


def _weight_columns(params, gc, D):
    """Return (3, gc*D, 46) f32: per-branch, per-tap weight columns where
    row r = d*gc + c holds weight[c]; the last column is the bias."""
    f32 = jnp.float32
    gcD = gc * D

    def branch(w, b, ntaps):
        w2 = w.reshape(gc, ntaps).astype(f32)            # kernel-position order
        cols = jnp.tile(w2, (D, 1))                       # (gcD, ntaps)
        bias = jnp.tile(b.astype(f32), D)[:, None]        # (gcD, 1)
        parts = [cols]
        if ntaps < _NT_MAX:
            parts.append(jnp.zeros((gcD, _NT_MAX - ntaps), f32))
        parts.append(bias)
        return jnp.concatenate(parts, axis=1)              # (gcD, _NCOL)

    return jnp.stack([
        branch(params["w_hw"], params["b_hw"], _NTAPS[0]),
        branch(params["w_w"], params["b_w"], _NTAPS[1]),
        branch(params["w_h"], params["b_h"], _NTAPS[2]),
    ], axis=0)


def inception_dwconv3d(x, params, split_indexes):
    """Forward pass of InceptionDWConv3d.  x: (N, C, D, H, W)."""
    N, C, D, H, W = x.shape
    c_id, gc = split_indexes[0], split_indexes[1]
    assert c_id + 3 * gc == C, "split_indexes inconsistent with channel count"
    # TODO(synk): support c_id % gc != 0 (needs an element-offset channel
    # window); NAFNet's default split (gc = C // 8, c_id = 5 * gc) satisfies it.
    assert gc > 0 and c_id % gc == 0, "identity-channel count must be gc-aligned"

    HW = H * W
    gcD = gc * D

    pd = _HW_KERNEL[0] // 2                               # depth halo (hw branch)
    max_shift = max((k[1] // 2) * W + k[2] // 2
                    for k in (_HW_KERNEL, _W_KERNEL, _H_KERNEL))
    lane0 = -(-max_shift // 128) * 128                    # 128-aligned lane halo
    lanes_total = lane0 + HW + lane0
    row0 = pd * gc
    rows_total = -(-(gcD + 2 * row0) // 8) * 8

    w_cols = _weight_columns(params, gc, D)               # (3, gcD, 46)
    x_flat = x.reshape(N, C, D, HW)                       # bitcast view

    kernel = _make_kernel(gc, D, H, W, row0, lane0, rows_total, lanes_total)

    conv_spec = pl.BlockSpec((1, gc, D, HW),
                             lambda n, b: (n, c_id // gc + b, 0, 0))
    w_spec = pl.BlockSpec((1, gcD, _NCOL), lambda n, b: (b, 0, 0))

    # VMEM budget from the actual double-buffered blocks + scratch, with
    # headroom; stays far below v7x's 64 MiB/TC at any sane D/H/W.
    blk_bytes = 2 * gc * D * HW * x.dtype.itemsize + gcD * _NCOL * 4
    scratch_bytes = rows_total * lanes_total * 4
    vmem_limit = int(min(100 * 2 ** 20,
                         max(8 * 2 ** 20, 4 * blk_bytes + 2 * scratch_bytes)))

    taps_total = sum(_NTAPS)
    cost = pl.CostEstimate(
        flops=int(2 * N * gc * D * HW * taps_total),
        transcendentals=0,
        bytes_accessed=int(2 * N * 3 * gc * D * HW * x.dtype.itemsize
                           + w_cols.size * 4))

    out_flat = pl.pallas_call(
        kernel,
        out_shape=jax.ShapeDtypeStruct((N, C, D, HW), x.dtype),
        grid=(N, 3),
        in_specs=[conv_spec, w_spec],
        out_specs=conv_spec,
        scratch_shapes=[pltpu.VMEM((rows_total, lanes_total), jnp.float32)],
        input_output_aliases={0: 0},
        compiler_params=pltpu.CompilerParams(
            dimension_semantics=("parallel", "parallel"),
            vmem_limit_bytes=vmem_limit),
        cost_estimate=cost,
    )(x_flat, w_cols)

    # TODO(synk): add a bf16 staging/MAC path (f32 accumulate only) for bf16
    # models on v6e/v7x; keep the f32 path on v5e (no bf16 VALU).
    return out_flat.reshape(N, C, D, H, W)


# ----------------------------- reference path -------------------------------

def _ref_dwconv3d(x, weight, bias, kernel_size):
    """Pure-JAX reference (lax grouped conv) for correctness check."""
    C = x.shape[1]
    pd, ph, pw = (k // 2 for k in kernel_size)
    rhs = weight.reshape((C, 1) + tuple(kernel_size))
    y = jax.lax.conv_general_dilated(
        x, rhs, window_strides=(1, 1, 1),
        padding=((pd, pd), (ph, ph), (pw, pw)),
        dimension_numbers=("NCDHW", "OIDHW", "NCDHW"),
        feature_group_count=C)
    return y + bias[None, :, None, None, None]


def _ref_inception(x, params, split_indexes):
    c_id, gc = split_indexes[0], split_indexes[1]
    x_id = x[:, :c_id]
    x_hw = x[:, c_id:c_id + gc]
    x_w = x[:, c_id + gc:c_id + 2 * gc]
    x_h = x[:, c_id + 2 * gc:c_id + 3 * gc]
    return jnp.concatenate([
        x_id,
        _ref_dwconv3d(x_hw, params["w_hw"], params["b_hw"], _HW_KERNEL),
        _ref_dwconv3d(x_w, params["w_w"], params["b_w"], _W_KERNEL),
        _ref_dwconv3d(x_h, params["w_h"], params["b_h"], _H_KERNEL),
    ], axis=1)


if __name__ == "__main__":
    # Only relevant to the optional donation fast-path; numerics are
    # unaffected either way.
    warnings.filterwarnings(
        "ignore", message="Some donated buffers were not usable")

    key = jax.random.PRNGKey(0)

    in_channels = 16
    branch_ratio = 0.125
    gc = int(in_channels * branch_ratio)                  # 2
    split = (in_channels - 3 * gc, gc, gc, gc)            # (10, 2, 2, 2)

    N, D, H, W = 2, 4, 16, 16
    k1, k2, k3, k4, k5, k6, k7 = jax.random.split(key, 7)

    x = jax.random.normal(k1, (N, in_channels, D, H, W), jnp.float32)
    # Deterministic synthetic parameters (shapes per module __init__,
    # depthwise groups dim squeezed out).
    params = {
        "w_hw": 0.1 * jax.random.normal(k2, (gc, 5, 3, 3), jnp.float32),
        "b_hw": 0.1 * jax.random.normal(k3, (gc,), jnp.float32),
        "w_w": 0.1 * jax.random.normal(k4, (gc, 1, 1, 11), jnp.float32),
        "b_w": 0.1 * jax.random.normal(k5, (gc,), jnp.float32),
        "w_h": 0.1 * jax.random.normal(k6, (gc, 1, 11, 1), jnp.float32),
        "b_h": 0.1 * jax.random.normal(k7, (gc,), jnp.float32),
    }

    # Reference is computed BEFORE the kernel call: x is then donated so the
    # identity channels flow through via buffer aliasing with zero extra copy.
    ref = jax.block_until_ready(_ref_inception(x, params, split))

    fwd = jax.jit(lambda xx, pp: inception_dwconv3d(xx, pp, split),
                  donate_argnums=0)
    out = jax.block_until_ready(fwd(x, params))
    del x  # donated to the kernel

    assert out.shape == (N, in_channels, D, H, W), out.shape
    np.testing.assert_allclose(np.asarray(out), np.asarray(ref),
                               rtol=1e-5, atol=1e-5)

    print("KERNEL_OK")
</pallas_src>

<mosaic_0001>
module attributes {stable_mosaic.version = 11 : i64} {
  func.func @kernel(%arg0: i32, %arg1: i32, %arg2: memref<1x2x4x256xf32, #tpu.memory_space<vmem>>, %arg3: memref<1x8x46xf32, #tpu.memory_space<vmem>>, %arg4: memref<1x2x4x256xf32, #tpu.memory_space<vmem>>, %arg5: memref<16x512xf32, #tpu.memory_space<vmem>>) attributes {dimension_semantics = [#tpu.dimension_semantics<parallel>, #tpu.dimension_semantics<parallel>], iteration_bounds = array<i64: 2, 3>, scalar_prefetch = 0 : i64, scratch_operands = 1 : i64, tpu.core_type = #tpu.core_type<tc>, window_params = [{transform_indices = @transform_0, window_bounds = array<i64: 1, 2, 4, 256>}, {transform_indices = @transform_1, window_bounds = array<i64: 1, 8, 46>}, {transform_indices = @transform_2, window_bounds = array<i64: 1, 2, 4, 256>}]} {
    %cst = arith.constant 0.000000e+00 : f32
    %0 = vector.broadcast %cst : f32 to vector<4x512xf32>
    %c0 = arith.constant 0 : index
    %c0_0 = arith.constant 0 : index
    %1 = vector.load %arg5[%c0, %c0_0] : memref<16x512xf32, #tpu.memory_space<vmem>>, vector<4x512xf32>
    tpu.vector_store %arg5[%c0, %c0_0], %0 {strides = array<i32>} : memref<16x512xf32, #tpu.memory_space<vmem>>, vector<4x512xf32>,
    %cst_1 = arith.constant 0.000000e+00 : f32
    %2 = vector.broadcast %cst_1 : f32 to vector<4x512xf32>
    %c12 = arith.constant 12 : index
    %c0_2 = arith.constant 0 : index
    %3 = vector.load %arg5[%c12, %c0_2] : memref<16x512xf32, #tpu.memory_space<vmem>>, vector<4x512xf32>
    tpu.vector_store %arg5[%c12, %c0_2], %2 {strides = array<i32>} : memref<16x512xf32, #tpu.memory_space<vmem>>, vector<4x512xf32>,
    %cst_3 = arith.constant 0.000000e+00 : f32
    %4 = vector.broadcast %cst_3 : f32 to vector<8x128xf32>
    %c4 = arith.constant 4 : index
    %c0_4 = arith.constant 0 : index
    %5 = vector.load %arg5[%c4, %c0_4] : memref<16x512xf32, #tpu.memory_space<vmem>>, vector<8x128xf32>
    tpu.vector_store %arg5[%c4, %c0_4], %4 {strides = array<i32>} : memref<16x512xf32, #tpu.memory_space<vmem>>, vector<8x128xf32>,
    %cst_5 = arith.constant 0.000000e+00 : f32
    %6 = vector.broadcast %cst_5 : f32 to vector<8x128xf32>
    %c4_6 = arith.constant 4 : index
    %c384 = arith.constant 384 : index
    %7 = vector.load %arg5[%c4_6, %c384] : memref<16x512xf32, #tpu.memory_space<vmem>>, vector<8x128xf32>
    tpu.vector_store %arg5[%c4_6, %c384], %6 {strides = array<i32>} : memref<16x512xf32, #tpu.memory_space<vmem>>, vector<8x128xf32>,
    %c0_7 = arith.constant 0 : index
    %c0_8 = arith.constant 0 : index
    %c0_9 = arith.constant 0 : index
    %c0_10 = arith.constant 0 : index
    %8 = vector.load %arg2[%c0_7, %c0_8, %c0_9, %c0_10] : memref<1x2x4x256xf32, #tpu.memory_space<vmem>>, vector<1x2x1x256xf32>
    %9 = vector.shape_cast %8 : vector<1x2x1x256xf32> to vector<2x256xf32>
    %c4_11 = arith.constant 4 : index
    %c128 = arith.constant 128 : index
    %10 = vector.load %arg5[%c4_11, %c128] : memref<16x512xf32, #tpu.memory_space<vmem>>, vector<2x256xf32>
    tpu.vector_store %arg5[%c4_11, %c128], %9 {strides = array<i32>} : memref<16x512xf32, #tpu.memory_space<vmem>>, vector<2x256xf32>,
    %c0_12 = arith.constant 0 : index
    %c0_13 = arith.constant 0 : index
    %c1 = arith.constant 1 : index
    %c0_14 = arith.constant 0 : index
    %11 = vector.load %arg2[%c0_12, %c0_13, %c1, %c0_14] : memref<1x2x4x256xf32, #tpu.memory_space<vmem>>, vector<1x2x1x256xf32>
    %12 = vector.shape_cast %11 : vector<1x2x1x256xf32> to vector<2x256xf32>
    %c6 = arith.constant 6 : index
    %c128_15 = arith.constant 128 : index
    %13 = vector.load %arg5[%c6, %c128_15] : memref<16x512xf32, #tpu.memory_space<vmem>>, vector<2x256xf32>
    tpu.vector_store %arg5[%c6, %c128_15], %12 {strides = array<i32>} : memref<16x512xf32, #tpu.memory_space<vmem>>, vector<2x256xf32>,
    %c0_16 = arith.constant 0 : index
    %c0_17 = arith.constant 0 : index
    %c2 = arith.constant 2 : index
    %c0_18 = arith.constant 0 : index
    %14 = vector.load %arg2[%c0_16, %c0_17, %c2, %c0_18] : memref<1x2x4x256xf32, #tpu.memory_space<vmem>>, vector<1x2x1x256xf32>
    %15 = vector.shape_cast %14 : vector<1x2x1x256xf32> to vector<2x256xf32>
    %c8 = arith.constant 8 : index
    %c128_19 = arith.constant 128 : index
    %16 = vector.load %arg5[%c8, %c128_19] : memref<16x512xf32, #tpu.memory_space<vmem>>, vector<2x256xf32>
    tpu.vector_store %arg5[%c8, %c128_19], %15 {strides = array<i32>} : memref<16x512xf32, #tpu.memory_space<vmem>>, vector<2x256xf32>,
    %c0_20 = arith.constant 0 : index
    %c0_21 = arith.constant 0 : index
    %c3 = arith.constant 3 : index
    %c0_22 = arith.constant 0 : index
    %17 = vector.load %arg2[%c0_20, %c0_21, %c3, %c0_22] : memref<1x2x4x256xf32, #tpu.memory_space<vmem>>, vector<1x2x1x256xf32>
    %18 = vector.shape_cast %17 : vector<1x2x1x256xf32> to vector<2x256xf32>
    %c10 = arith.constant 10 : index
    %c128_23 = arith.constant 128 : index
    %19 = vector.load %arg5[%c10, %c128_23] : memref<16x512xf32, #tpu.memory_space<vmem>>, vector<2x256xf32>
    tpu.vector_store %arg5[%c10, %c128_23], %18 {strides = array<i32>} : memref<16x512xf32, #tpu.memory_space<vmem>>, vector<2x256xf32>,
    %20 = tpu.iota {dimensions = array<i32: 1>} : vector<1x256xi32>
    %c16_i32 = arith.constant 16 : i32
    %c0_i32 = arith.constant 0 : i32
    %21 = arith.cmpi eq, %c16_i32, %c0_i32 : i32
    %c1_i32 = arith.constant 1 : i32
    %22 = arith.select %21, %c1_i32, %c16_i32 : i32
    %23 = vector.broadcast %22 : i32 to vector<1x256xi32>
    %24 = arith.remsi %20, %23 : vector<1x256xi32>
    %c0_i32_24 = arith.constant 0 : i32
    %25 = vector.broadcast %c0_i32_24 : i32 to vector<1x256xi32>
    %26 = arith.cmpi ne, %24, %25 : vector<1x256xi32>
    %c0_i32_25 = arith.constant 0 : i32
    %27 = vector.broadcast %c0_i32_25 : i32 to vector<1x256xi32>
    %28 = arith.cmpi slt, %24, %27 : vector<1x256xi32>
    %c0_i32_26 = arith.constant 0 : i32
    %29 = arith.cmpi slt, %22, %c0_i32_26 : i32
    %30 = vector.broadcast %29 : i1 to vector<1x256xi1>
    %31 = vector.broadcast %30 : vector<1x256xi1> to vector<1x256xi1>
    %32 = arith.xori %28, %31 : vector<1x256xi1>
    %33 = arith.andi %32, %26 : vector<1x256xi1>
    %34 = vector.broadcast %22 : i32 to vector<1x256xi32>
    %35 = arith.addi %24, %34 : vector<1x256xi32>
    %36 = arith.select %33, %35, %24 : vector<1x256xi1>, vector<1x256xi32>
    %c0_i32_27 = arith.constant 0 : i32
    %37 = arith.cmpi eq, %arg1, %c0_i32_27 : i32
    %38 = arith.extui %37 : i1 to i32
    %c0_i32_28 = arith.constant 0 : i32
    %39 = arith.cmpi ne, %38, %c0_i32_28 : i32
    scf.if %39 {
      %cst_32 = arith.constant 0.000000e+00 : f32
      %46 = vector.broadcast %cst_32 : f32 to vector<8x256xf32>
      %cst_33 = arith.constant 0.000000e+00 : f32
      %47 = vector.broadcast %cst_33 : f32 to vector<8x256xf32>
      %cst_34 = arith.constant 0.000000e+00 : f32
      %48 = vector.broadcast %cst_34 : f32 to vector<8x256xf32>
      %c0_35 = arith.constant 0 : index
      %c111 = arith.constant 111 : index
      %49 = vector.load %arg5[%c0_35, %c111] : memref<16x512xf32, #tpu.memory_space<vmem>>, vector<8x256xf32>
      %c0_36 = arith.constant 0 : index
      %c0_37 = arith.constant 0 : index
      %c0_38 = arith.constant 0 : index
      %50 = vector.load %arg3[%c0_36, %c0_37, %c0_38] : memref<1x8x46xf32, #tpu.memory_space<vmem>>, vector<1x8x1xf32>
      %51 = vector.shape_cast %50 : vector<1x8x1xf32> to vector<8x1xf32>
      %52 = vector.broadcast %51 : vector<8x1xf32> to vector<8x256xf32>
      %53 = arith.mulf %49, %52 : vector<8x256xf32>
      %54 = arith.addf %48, %53 : vector<8x256xf32>
      %c0_39 = arith.constant 0 : index
      %c112 = arith.constant 112 : index
      %55 = vector.load %arg5[%c0_39, %c112] : memref<16x512xf32, #tpu.memory_space<vmem>>, vector<8x256xf32>
      %c0_40 = arith.constant 0 : index
      %c0_41 = arith.constant 0 : index
      %c1_42 = arith.constant 1 : index
      %56 = vector.load %arg3[%c0_40, %c0_41, %c1_42] : memref<1x8x46xf32, #tpu.memory_space<vmem>>, vector<1x8x1xf32>
      %57 = vector.shape_cast %56 : vector<1x8x1xf32> to vector<8x1xf32>
      %58 = vector.broadcast %57 : vector<8x1xf32> to vector<8x256xf32>
      %59 = arith.mulf %55, %58 : vector<8x256xf32>
      %60 = arith.addf %46, %59 : vector<8x256xf32>
      %c0_43 = arith.constant 0 : index
      %c113 = arith.constant 113 : index
      %61 = vector.load %arg5[%c0_43, %c113] : memref<16x512xf32, #tpu.memory_space<vmem>>, vector<8x256xf32>
      %c0_44 = arith.constant 0 : index
      %c0_45 = arith.constant 0 : index
      %c2_46 = arith.constant 2 : index
      %62 = vector.load %arg3[%c0_44, %c0_45, %c2_46] : memref<1x8x46xf32, #tpu.memory_space<vmem>>, vector<1x8x1xf32>
      %63 = vector.shape_cast %62 : vector<1x8x1xf32> to vector<8x1xf32>
      %64 = vector.broadcast %63 : vector<8x1xf32> to vector<8x256xf32>
      %65 = arith.mulf %61, %64 : vector<8x256xf32>
      %66 = arith.addf %47, %65 : vector<8x256xf32>
      %c0_47 = arith.constant 0 : index
      %c127 = arith.constant 127 : index
      %67 = vector.load %arg5[%c0_47, %c127] : memref<16x512xf32, #tpu.memory_space<vmem>>, vector<8x256xf32>
      %c0_48 = arith.constant 0 : index
      %c0_49 = arith.constant 0 : index
      %c3_50 = arith.constant 3 : index
      %68 = vector.load %arg3[%c0_48, %c0_49, %c3_50] : memref<1x8x46xf32, #tpu.memory_space<vmem>>, vector<1x8x1xf32>
      %69 = vector.shape_cast %68 : vector<1x8x1xf32> to vector<8x1xf32>
      %70 = vector.broadcast %69 : vector<8x1xf32> to vector<8x256xf32>
      %71 = arith.mulf %67, %70 : vector<8x256xf32>
      %72 = arith.addf %54, %71 : vector<8x256xf32>
      %c0_51 = arith.constant 0 : index
      %c128_52 = arith.constant 128 : index
      %73 = vector.load %arg5[%c0_51, %c128_52] : memref<16x512xf32, #tpu.memory_space<vmem>>, vector<8x256xf32>
      %c0_53 = arith.constant 0 : index
      %c0_54 = arith.constant 0 : index
      %c4_55 = arith.constant 4 : index
      %74 = vector.load %arg3[%c0_53, %c0_54, %c4_55] : memref<1x8x46xf32, #tpu.memory_space<vmem>>, vector<1x8x1xf32>
      %75 = vector.shape_cast %74 : vector<1x8x1xf32> to vector<8x1xf32>
      %76 = vector.broadcast %75 : vector<8x1xf32> to vector<8x256xf32>
      %77 = arith.mulf %73, %76 : vector<8x256xf32>
      %78 = arith.addf %60, %77 : vector<8x256xf32>
      %c0_56 = arith.constant 0 : index
      %c129 = arith.constant 129 : index
      %79 = vector.load %arg5[%c0_56, %c129] : memref<16x512xf32, #tpu.memory_space<vmem>>, vector<8x256xf32>
      %c0_57 = arith.constant 0 : index
      %c0_58 = arith.constant 0 : index
      %c5 = arith.constant 5 : index
      %80 = vector.load %arg3[%c0_57, %c0_58, %c5] : memref<1x8x46xf32, #tpu.memory_space<vmem>>, vector<1x8x1xf32>
      %81 = vector.shape_cast %80 : vector<1x8x1xf32> to vector<8x1xf32>
      %82 = vector.broadcast %81 : vector<8x1xf32> to vector<8x256xf32>
      %83 = arith.mulf %79, %82 : vector<8x256xf32>
      %84 = arith.addf %66, %83 : vector<8x256xf32>
      %c0_59 = arith.constant 0 : index
      %c143 = arith.constant 143 : index
      %85 = vector.load %arg5[%c0_59, %c143] : memref<16x512xf32, #tpu.memory_space<vmem>>, vector<8x256xf32>
      %c0_60 = arith.constant 0 : index
      %c0_61 = arith.constant 0 : index
      %c6_62 = arith.constant 6 : index
      %86 = vector.load %arg3[%c0_60, %c0_61, %c6_62] : memref<1x8x46xf32, #tpu.memory_space<vmem>>, vector<1x8x1xf32>
      %87 = vector.shape_cast %86 : vector<1x8x1xf32> to vector<8x1xf32>
      %88 = vector.broadcast %87 : vector<8x1xf32> to vector<8x256xf32>
      %89 = arith.mulf %85, %88 : vector<8x256xf32>
      %90 = arith.addf %72, %89 : vector<8x256xf32>
      %c0_63 = arith.constant 0 : index
      %c144 = arith.constant 144 : index
      %91 = vector.load %arg5[%c0_63, %c144] : memref<16x512xf32, #tpu.memory_space<vmem>>, vector<8x256xf32>
      %c0_64 = arith.constant 0 : index
      %c0_65 = arith.constant 0 : index
      %c7 = arith.constant 7 : index
      %92 = vector.load %arg3[%c0_64, %c0_65, %c7] : memref<1x8x46xf32, #tpu.memory_space<vmem>>, vector<1x8x1xf32>
      %93 = vector.shape_cast %92 : vector<1x8x1xf32> to vector<8x1xf32>
      %94 = vector.broadcast %93 : vector<8x1xf32> to vector<8x256xf32>
      %95 = arith.mulf %91, %94 : vector<8x256xf32>
      %96 = arith.addf %78, %95 : vector<8x256xf32>
      %c0_66 = arith.constant 0 : index
      %c145 = arith.constant 145 : index
      %97 = vector.load %arg5[%c0_66, %c145] : memref<16x512xf32, #tpu.memory_space<vmem>>, vector<8x256xf32>
      %c0_67 = arith.constant 0 : index
      %c0_68 = arith.constant 0 : index
      %c8_69 = arith.constant 8 : index
      %98 = vector.load %arg3[%c0_67, %c0_68, %c8_69] : memref<1x8x46xf32, #tpu.memory_space<vmem>>, vector<1x8x1xf32>
      %99 = vector.shape_cast %98 : vector<1x8x1xf32> to vector<8x1xf32>
      %100 = vector.broadcast %99 : vector<8x1xf32> to vector<8x256xf32>
      %101 = arith.mulf %97, %100 : vector<8x256xf32>
      %102 = arith.addf %84, %101 : vector<8x256xf32>
      %c2_70 = arith.constant 2 : index
      %c111_71 = arith.constant 111 : index
      %103 = vector.load %arg5[%c2_70, %c111_71] : memref<16x512xf32, #tpu.memory_space<vmem>>, vector<8x256xf32>
      %c0_72 = arith.constant 0 : index
      %c0_73 = arith.constant 0 : index
      %c9 = arith.constant 9 : index
      %104 = vector.load %arg3[%c0_72, %c0_73, %c9] : memref<1x8x46xf32, #tpu.memory_space<vmem>>, vector<1x8x1xf32>
      %105 = vector.shape_cast %104 : vector<1x8x1xf32> to vector<8x1xf32>
      %106 = vector.broadcast %105 : vector<8x1xf32> to vector<8x256xf32>
      %107 = arith.mulf %103, %106 : vector<8x256xf32>
      %108 = arith.addf %90, %107 : vector<8x256xf32>
      %c2_74 = arith.constant 2 : index
      %c112_75 = arith.constant 112 : index
      %109 = vector.load %arg5[%c2_74, %c112_75] : memref<16x512xf32, #tpu.memory_space<vmem>>, vector<8x256xf32>
      %c0_76 = arith.constant 0 : index
      %c0_77 = arith.constant 0 : index
      %c10_78 = arith.constant 10 : index
      %110 = vector.load %arg3[%c0_76, %c0_77, %c10_78] : memref<1x8x46xf32, #tpu.memory_space<vmem>>, vector<1x8x1xf32>
      %111 = vector.shape_cast %110 : vector<1x8x1xf32> to vector<8x1xf32>
      %112 = vector.broadcast %111 : vector<8x1xf32> to vector<8x256xf32>
      %113 = arith.mulf %109, %112 : vector<8x256xf32>
      %114 = arith.addf %96, %113 : vector<8x256xf32>
      %c2_79 = arith.constant 2 : index
      %c113_80 = arith.constant 113 : index
      %115 = vector.load %arg5[%c2_79, %c113_80] : memref<16x512xf32, #tpu.memory_space<vmem>>, vector<8x256xf32>
      %c0_81 = arith.constant 0 : index
      %c0_82 = arith.constant 0 : index
      %c11 = arith.constant 11 : index
      %116 = vector.load %arg3[%c0_81, %c0_82, %c11] : memref<1x8x46xf32, #tpu.memory_space<vmem>>, vector<1x8x1xf32>
      %117 = vector.shape_cast %116 : vector<1x8x1xf32> to vector<8x1xf32>
      %118 = vector.broadcast %117 : vector<8x1xf32> to vector<8x256xf32>
      %119 = arith.mulf %115, %118 : vector<8x256xf32>
      %120 = arith.addf %102, %119 : vector<8x256xf32>
      %c2_83 = arith.constant 2 : index
      %c127_84 = arith.constant 127 : index
      %121 = vector.load %arg5[%c2_83, %c127_84] : memref<16x512xf32, #tpu.memory_space<vmem>>, vector<8x256xf32>
      %c0_85 = arith.constant 0 : index
      %c0_86 = arith.constant 0 : index
      %c12_87 = arith.constant 12 : index
      %122 = vector.load %arg3[%c0_85, %c0_86, %c12_87] : memref<1x8x46xf32, #tpu.memory_space<vmem>>, vector<1x8x1xf32>
      %123 = vector.shape_cast %122 : vector<1x8x1xf32> to vector<8x1xf32>
      %124 = vector.broadcast %123 : vector<8x1xf32> to vector<8x256xf32>
      %125 = arith.mulf %121, %124 : vector<8x256xf32>
      %126 = arith.addf %108, %125 : vector<8x256xf32>
      %c2_88 = arith.constant 2 : index
      %c128_89 = arith.constant 128 : index
      %127 = vector.load %arg5[%c2_88, %c128_89] : memref<16x512xf32, #tpu.memory_space<vmem>>, vector<8x256xf32>
      %c0_90 = arith.constant 0 : index
      %c0_91 = arith.constant 0 : index
      %c13 = arith.constant 13 : index
      %128 = vector.load %arg3[%c0_90, %c0_91, %c13] : memref<1x8x46xf32, #tpu.memory_space<vmem>>, vector<1x8x1xf32>
      %129 = vector.shape_cast %128 : vector<1x8x1xf32> to vector<8x1xf32>
      %130 = vector.broadcast %129 : vector<8x1xf32> to vector<8x256xf32>
      %131 = arith.mulf %127, %130 : vector<8x256xf32>
      %132 = arith.addf %114, %131 : vector<8x256xf32>
      %c2_92 = arith.constant 2 : index
      %c129_93 = arith.constant 129 : index
      %133 = vector.load %arg5[%c2_92, %c129_93] : memref<16x512xf32, #tpu.memory_space<vmem>>, vector<8x256xf32>
      %c0_94 = arith.constant 0 : index
      %c0_95 = arith.constant 0 : index
      %c14 = arith.constant 14 : index
      %134 = vector.load %arg3[%c0_94, %c0_95, %c14] : memref<1x8x46xf32, #tpu.memory_space<vmem>>, vector<1x8x1xf32>
      %135 = vector.shape_cast %134 : vector<1x8x1xf32> to vector<8x1xf32>
      %136 = vector.broadcast %135 : vector<8x1xf32> to vector<8x256xf32>
      %137 = arith.mulf %133, %136 : vector<8x256xf32>
      %138 = arith.addf %120, %137 : vector<8x256xf32>
      %c2_96 = arith.constant 2 : index
      %c143_97 = arith.constant 143 : index
      %139 = vector.load %arg5[%c2_96, %c143_97] : memref<16x512xf32, #tpu.memory_space<vmem>>, vector<8x256xf32>
      %c0_98 = arith.constant 0 : index
      %c0_99 = arith.constant 0 : index
      %c15 = arith.constant 15 : index
      %140 = vector.load %arg3[%c0_98, %c0_99, %c15] : memref<1x8x46xf32, #tpu.memory_space<vmem>>, vector<1x8x1xf32>
      %141 = vector.shape_cast %140 : vector<1x8x1xf32> to vector<8x1xf32>
      %142 = vector.broadcast %141 : vector<8x1xf32> to vector<8x256xf32>
      %143 = arith.mulf %139, %142 : vector<8x256xf32>
      %144 = arith.addf %126, %143 : vector<8x256xf32>
      %c2_100 = arith.constant 2 : index
      %c144_101 = arith.constant 144 : index
      %145 = vector.load %arg5[%c2_100, %c144_101] : memref<16x512xf32, #tpu.memory_space<vmem>>, vector<8x256xf32>
      %c0_102 = arith.constant 0 : index
      %c0_103 = arith.constant 0 : index
      %c16 = arith.constant 16 : index
      %146 = vector.load %arg3[%c0_102, %c0_103, %c16] : memref<1x8x46xf32, #tpu.memory_space<vmem>>, vector<1x8x1xf32>
      %147 = vector.shape_cast %146 : vector<1x8x1xf32> to vector<8x1xf32>
      %148 = vector.broadcast %147 : vector<8x1xf32> to vector<8x256xf32>
      %149 = arith.mulf %145, %148 : vector<8x256xf32>
      %150 = arith.addf %132, %149 : vector<8x256xf32>
      %c2_104 = arith.constant 2 : index
      %c145_105 = arith.constant 145 : index
      %151 = vector.load %arg5[%c2_104, %c145_105] : memref<16x512xf32, #tpu.memory_space<vmem>>, vector<8x256xf32>
      %c0_106 = arith.constant 0 : index
      %c0_107 = arith.constant 0 : index
      %c17 = arith.constant 17 : index
      %152 = vector.load %arg3[%c0_106, %c0_107, %c17] : memref<1x8x46xf32, #tpu.memory_space<vmem>>, vector<1x8x1xf32>
      %153 = vector.shape_cast %152 : vector<1x8x1xf32> to vector<8x1xf32>
      %154 = vector.broadcast %153 : vector<8x1xf32> to vector<8x256xf32>
      %155 = arith.mulf %151, %154 : vector<8x256xf32>
      %156 = arith.addf %138, %155 : vector<8x256xf32>
      %c4_108 = arith.constant 4 : index
      %c111_109 = arith.constant 111 : index
      %157 = vector.load %arg5[%c4_108, %c111_109] : memref<16x512xf32, #tpu.memory_space<vmem>>, vector<8x256xf32>
      %c0_110 = arith.constant 0 : index
      %c0_111 = arith.constant 0 : index
      %c18 = arith.constant 18 : index
      %158 = vector.load %arg3[%c0_110, %c0_111, %c18] : memref<1x8x46xf32, #tpu.memory_space<vmem>>, vector<1x8x1xf32>
      %159 = vector.shape_cast %158 : vector<1x8x1xf32> to vector<8x1xf32>
      %160 = vector.broadcast %159 : vector<8x1xf32> to vector<8x256xf32>
      %161 = arith.mulf %157, %160 : vector<8x256xf32>
      %162 = arith.addf %144, %161 : vector<8x256xf32>
      %c4_112 = arith.constant 4 : index
      %c112_113 = arith.constant 112 : index
      %163 = vector.load %arg5[%c4_112, %c112_113] : memref<16x512xf32, #tpu.memory_space<vmem>>, vector<8x256xf32>
      %c0_114 = arith.constant 0 : index
      %c0_115 = arith.constant 0 : index
      %c19 = arith.constant 19 : index
      %164 = vector.load %arg3[%c0_114, %c0_115, %c19] : memref<1x8x46xf32, #tpu.memory_space<vmem>>, vector<1x8x1xf32>
      %165 = vector.shape_cast %164 : vector<1x8x1xf32> to vector<8x1xf32>
      %166 = vector.broadcast %165 : vector<8x1xf32> to vector<8x256xf32>
      %167 = arith.mulf %163, %166 : vector<8x256xf32>
      %168 = arith.addf %150, %167 : vector<8x256xf32>
      %c4_116 = arith.constant 4 : index
      %c113_117 = arith.constant 113 : index
      %169 = vector.load %arg5[%c4_116, %c113_117] : memref<16x512xf32, #tpu.memory_space<vmem>>, vector<8x256xf32>
      %c0_118 = arith.constant 0 : index
      %c0_119 = arith.constant 0 : index
      %c20 = arith.constant 20 : index
      %170 = vector.load %arg3[%c0_118, %c0_119, %c20] : memref<1x8x46xf32, #tpu.memory_space<vmem>>, vector<1x8x1xf32>
      %171 = vector.shape_cast %170 : vector<1x8x1xf32> to vector<8x1xf32>
      %172 = vector.broadcast %171 : vector<8x1xf32> to vector<8x256xf32>
      %173 = arith.mulf %169, %172 : vector<8x256xf32>
      %174 = arith.addf %156, %173 : vector<8x256xf32>
      %c4_120 = arith.constant 4 : index
      %c127_121 = arith.constant 127 : index
      %175 = vector.load %arg5[%c4_120, %c127_121] : memref<16x512xf32, #tpu.memory_space<vmem>>, vector<8x256xf32>
      %c0_122 = arith.constant 0 : index
      %c0_123 = arith.constant 0 : index
      %c21 = arith.constant 21 : index
      %176 = vector.load %arg3[%c0_122, %c0_123, %c21] : memref<1x8x46xf32, #tpu.memory_space<vmem>>, vector<1x8x1xf32>
      %177 = vector.shape_cast %176 : vector<1x8x1xf32> to vector<8x1xf32>
      %178 = vector.broadcast %177 : vector<8x1xf32> to vector<8x256xf32>
      %179 = arith.mulf %175, %178 : vector<8x256xf32>
      %180 = arith.addf %162, %179 : vector<8x256xf32>
      %c4_124 = arith.constant 4 : index
      %c128_125 = arith.constant 128 : index
      %181 = vector.load %arg5[%c4_124, %c128_125] : memref<16x512xf32, #tpu.memory_space<vmem>>, vector<8x256xf32>
      %c0_126 = arith.constant 0 : index
      %c0_127 = arith.constant 0 : index
      %c22 = arith.constant 22 : index
      %182 = vector.load %arg3[%c0_126, %c0_127, %c22] : memref<1x8x46xf32, #tpu.memory_space<vmem>>, vector<1x8x1xf32>
      %183 = vector.shape_cast %182 : vector<1x8x1xf32> to vector<8x1xf32>
      %184 = vector.broadcast %183 : vector<8x1xf32> to vector<8x256xf32>
      %185 = arith.mulf %181, %184 : vector<8x256xf32>
      %186 = arith.addf %168, %185 : vector<8x256xf32>
      %c4_128 = arith.constant 4 : index
      %c129_129 = arith.constant 129 : index
      %187 = vector.load %arg5[%c4_128, %c129_129] : memref<16x512xf32, #tpu.memory_space<vmem>>, vector<8x256xf32>
      %c0_130 = arith.constant 0 : index
      %c0_131 = arith.constant 0 : index
      %c23 = arith.constant 23 : index
      %188 = vector.load %arg3[%c0_130, %c0_131, %c23] : memref<1x8x46xf32, #tpu.memory_space<vmem>>, vector<1x8x1xf32>
      %189 = vector.shape_cast %188 : vector<1x8x1xf32> to vector<8x1xf32>
      %190 = vector.broadcast %189 : vector<8x1xf32> to vector<8x256xf32>
      %191 = arith.mulf %187, %190 : vector<8x256xf32>
      %192 = arith.addf %174, %191 : vector<8x256xf32>
      %c4_132 = arith.constant 4 : index
      %c143_133 = arith.constant 143 : index
      %193 = vector.load %arg5[%c4_132, %c143_133] : memref<16x512xf32, #tpu.memory_space<vmem>>, vector<8x256xf32>
      %c0_134 = arith.constant 0 : index
      %c0_135 = arith.constant 0 : index
      %c24 = arith.constant 24 : index
      %194 = vector.load %arg3[%c0_134, %c0_135, %c24] : memref<1x8x46xf32, #tpu.memory_space<vmem>>, vector<1x8x1xf32>
      %195 = vector.shape_cast %194 : vector<1x8x1xf32> to vector<8x1xf32>
      %196 = vector.broadcast %195 : vector<8x1xf32> to vector<8x256xf32>
      %197 = arith.mulf %193, %196 : vector<8x256xf32>
      %198 = arith.addf %180, %197 : vector<8x256xf32>
      %c4_136 = arith.constant 4 : index
      %c144_137 = arith.constant 144 : index
      %199 = vector.load %arg5[%c4_136, %c144_137] : memref<16x512xf32, #tpu.memory_space<vmem>>, vector<8x256xf32>
      %c0_138 = arith.constant 0 : index
      %c0_139 = arith.constant 0 : index
      %c25 = arith.constant 25 : index
      %200 = vector.load %arg3[%c0_138, %c0_139, %c25] : memref<1x8x46xf32, #tpu.memory_space<vmem>>, vector<1x8x1xf32>
      %201 = vector.shape_cast %200 : vector<1x8x1xf32> to vector<8x1xf32>
      %202 = vector.broadcast %201 : vector<8x1xf32> to vector<8x256xf32>
      %203 = arith.mulf %199, %202 : vector<8x256xf32>
      %204 = arith.addf %186, %203 : vector<8x256xf32>
      %c4_140 = arith.constant 4 : index
      %c145_141 = arith.constant 145 : index
      %205 = vector.load %arg5[%c4_140, %c145_141] : memref<16x512xf32, #tpu.memory_space<vmem>>, vector<8x256xf32>
      %c0_142 = arith.constant 0 : index
      %c0_143 = arith.constant 0 : index
      %c26 = arith.constant 26 : index
      %206 = vector.load %arg3[%c0_142, %c0_143, %c26] : memref<1x8x46xf32, #tpu.memory_space<vmem>>, vector<1x8x1xf32>
      %207 = vector.shape_cast %206 : vector<1x8x1xf32> to vector<8x1xf32>
      %208 = vector.broadcast %207 : vector<8x1xf32> to vector<8x256xf32>
      %209 = arith.mulf %205, %208 : vector<8x256xf32>
      %210 = arith.addf %192, %209 : vector<8x256xf32>
      %c6_144 = arith.constant 6 : index
      %c111_145 = arith.constant 111 : index
      %211 = vector.load %arg5[%c6_144, %c111_145] : memref<16x512xf32, #tpu.memory_space<vmem>>, vector<8x256xf32>
      %c0_146 = arith.constant 0 : index
      %c0_147 = arith.constant 0 : index
      %c27 = arith.constant 27 : index
      %212 = vector.load %arg3[%c0_146, %c0_147, %c27] : memref<1x8x46xf32, #tpu.memory_space<vmem>>, vector<1x8x1xf32>
      %213 = vector.shape_cast %212 : vector<1x8x1xf32> to vector<8x1xf32>
      %214 = vector.broadcast %213 : vector<8x1xf32> to vector<8x256xf32>
      %215 = arith.mulf %211, %214 : vector<8x256xf32>
      %216 = arith.addf %198, %215 : vector<8x256xf32>
      %c6_148 = arith.constant 6 : index
      %c112_149 = arith.constant 112 : index
      %217 = vector.load %arg5[%c6_148, %c112_149] : memref<16x512xf32, #tpu.memory_space<vmem>>, vector<8x256xf32>
      %c0_150 = arith.constant 0 : index
      %c0_151 = arith.constant 0 : index
      %c28 = arith.constant 28 : index
      %218 = vector.load %arg3[%c0_150, %c0_151, %c28] : memref<1x8x46xf32, #tpu.memory_space<vmem>>, vector<1x8x1xf32>
      %219 = vector.shape_cast %218 : vector<1x8x1xf32> to vector<8x1xf32>
      %220 = vector.broadcast %219 : vector<8x1xf32> to vector<8x256xf32>
      %221 = arith.mulf %217, %220 : vector<8x256xf32>
      %222 = arith.addf %204, %221 : vector<8x256xf32>
      %c6_152 = arith.constant 6 : index
      %c113_153 = arith.constant 113 : index
      %223 = vector.load %arg5[%c6_152, %c113_153] : memref<16x512xf32, #tpu.memory_space<vmem>>, vector<8x256xf32>
      %c0_154 = arith.constant 0 : index
      %c0_155 = arith.constant 0 : index
      %c29 = arith.constant 29 : index
      %224 = vector.load %arg3[%c0_154, %c0_155, %c29] : memref<1x8x46xf32, #tpu.memory_space<vmem>>, vector<1x8x1xf32>
      %225 = vector.shape_cast %224 : vector<1x8x1xf32> to vector<8x1xf32>
      %226 = vector.broadcast %225 : vector<8x1xf32> to vector<8x256xf32>
      %227 = arith.mulf %223, %226 : vector<8x256xf32>
      %228 = arith.addf %210, %227 : vector<8x256xf32>
      %c6_156 = arith.constant 6 : index
      %c127_157 = arith.constant 127 : index
      %229 = vector.load %arg5[%c6_156, %c127_157] : memref<16x512xf32, #tpu.memory_space<vmem>>, vector<8x256xf32>
      %c0_158 = arith.constant 0 : index
      %c0_159 = arith.constant 0 : index
      %c30 = arith.constant 30 : index
      %230 = vector.load %arg3[%c0_158, %c0_159, %c30] : memref<1x8x46xf32, #tpu.memory_space<vmem>>, vector<1x8x1xf32>
      %231 = vector.shape_cast %230 : vector<1x8x1xf32> to vector<8x1xf32>
      %232 = vector.broadcast %231 : vector<8x1xf32> to vector<8x256xf32>
      %233 = arith.mulf %229, %232 : vector<8x256xf32>
      %234 = arith.addf %216, %233 : vector<8x256xf32>
      %c6_160 = arith.constant 6 : index
      %c128_161 = arith.constant 128 : index
      %235 = vector.load %arg5[%c6_160, %c128_161] : memref<16x512xf32, #tpu.memory_space<vmem>>, vector<8x256xf32>
      %c0_162 = arith.constant 0 : index
      %c0_163 = arith.constant 0 : index
      %c31 = arith.constant 31 : index
      %236 = vector.load %arg3[%c0_162, %c0_163, %c31] : memref<1x8x46xf32, #tpu.memory_space<vmem>>, vector<1x8x1xf32>
      %237 = vector.shape_cast %236 : vector<1x8x1xf32> to vector<8x1xf32>
      %238 = vector.broadcast %237 : vector<8x1xf32> to vector<8x256xf32>
      %239 = arith.mulf %235, %238 : vector<8x256xf32>
      %240 = arith.addf %222, %239 : vector<8x256xf32>
      %c6_164 = arith.constant 6 : index
      %c129_165 = arith.constant 129 : index
      %241 = vector.load %arg5[%c6_164, %c129_165] : memref<16x512xf32, #tpu.memory_space<vmem>>, vector<8x256xf32>
      %c0_166 = arith.constant 0 : index
      %c0_167 = arith.constant 0 : index
      %c32 = arith.constant 32 : index
      %242 = vector.load %arg3[%c0_166, %c0_167, %c32] : memref<1x8x46xf32, #tpu.memory_space<vmem>>, vector<1x8x1xf32>
      %243 = vector.shape_cast %242 : vector<1x8x1xf32> to vector<8x1xf32>
      %244 = vector.broadcast %243 : vector<8x1xf32> to vector<8x256xf32>
      %245 = arith.mulf %241, %244 : vector<8x256xf32>
      %246 = arith.addf %228, %245 : vector<8x256xf32>
      %c6_168 = arith.constant 6 : index
      %c143_169 = arith.constant 143 : index
      %247 = vector.load %arg5[%c6_168, %c143_169] : memref<16x512xf32, #tpu.memory_space<vmem>>, vector<8x256xf32>
      %c0_170 = arith.constant 0 : index
      %c0_171 = arith.constant 0 : index
      %c33 = arith.constant 33 : index
      %248 = vector.load %arg3[%c0_170, %c0_171, %c33] : memref<1x8x46xf32, #tpu.memory_space<vmem>>, vector<1x8x1xf32>
      %249 = vector.shape_cast %248 : vector<1x8x1xf32> to vector<8x1xf32>
      %250 = vector.broadcast %249 : vector<8x1xf32> to vector<8x256xf32>
      %251 = arith.mulf %247, %250 : vector<8x256xf32>
      %252 = arith.addf %234, %251 : vector<8x256xf32>
      %c6_172 = arith.constant 6 : index
      %c144_173 = arith.constant 144 : index
      %253 = vector.load %arg5[%c6_172, %c144_173] : memref<16x512xf32, #tpu.memory_space<vmem>>, vector<8x256xf32>
      %c0_174 = arith.constant 0 : index
      %c0_175 = arith.constant 0 : index
      %c34 = arith.constant 34 : index
      %254 = vector.load %arg3[%c0_174, %c0_175, %c34] : memref<1x8x46xf32, #tpu.memory_space<vmem>>, vector<1x8x1xf32>
      %255 = vector.shape_cast %254 : vector<1x8x1xf32> to vector<8x1xf32>
      %256 = vector.broadcast %255 : vector<8x1xf32> to vector<8x256xf32>
      %257 = arith.mulf %253, %256 : vector<8x256xf32>
      %258 = arith.addf %240, %257 : vector<8x256xf32>
      %c6_176 = arith.constant 6 : index
      %c145_177 = arith.constant 145 : index
      %259 = vector.load %arg5[%c6_176, %c145_177] : memref<16x512xf32, #tpu.memory_space<vmem>>, vector<8x256xf32>
      %c0_178 = arith.constant 0 : index
      %c0_179 = arith.constant 0 : index
      %c35 = arith.constant 35 : index
      %260 = vector.load %arg3[%c0_178, %c0_179, %c35] : memref<1x8x46xf32, #tpu.memory_space<vmem>>, vector<1x8x1xf32>
      %261 = vector.shape_cast %260 : vector<1x8x1xf32> to vector<8x1xf32>
      %262 = vector.broadcast %261 : vector<8x1xf32> to vector<8x256xf32>
      %263 = arith.mulf %259, %262 : vector<8x256xf32>
      %264 = arith.addf %246, %263 : vector<8x256xf32>
      %c8_180 = arith.constant 8 : index
      %c111_181 = arith.constant 111 : index
      %265 = vector.load %arg5[%c8_180, %c111_181] : memref<16x512xf32, #tpu.memory_space<vmem>>, vector<8x256xf32>
      %c0_182 = arith.constant 0 : index
      %c0_183 = arith.constant 0 : index
      %c36 = arith.constant 36 : index
      %266 = vector.load %arg3[%c0_182, %c0_183, %c36] : memref<1x8x46xf32, #tpu.memory_space<vmem>>, vector<1x8x1xf32>
      %267 = vector.shape_cast %266 : vector<1x8x1xf32> to vector<8x1xf32>
      %268 = vector.broadcast %267 : vector<8x1xf32> to vector<8x256xf32>
      %269 = arith.mulf %265, %268 : vector<8x256xf32>
      %270 = arith.addf %252, %269 : vector<8x256xf32>
      %c8_184 = arith.constant 8 : index
      %c112_185 = arith.constant 112 : index
      %271 = vector.load %arg5[%c8_184, %c112_185] : memref<16x512xf32, #tpu.memory_space<vmem>>, vector<8x256xf32>
      %c0_186 = arith.constant 0 : index
      %c0_187 = arith.constant 0 : index
      %c37 = arith.constant 37 : index
      %272 = vector.load %arg3[%c0_186, %c0_187, %c37] : memref<1x8x46xf32, #tpu.memory_space<vmem>>, vector<1x8x1xf32>
      %273 = vector.shape_cast %272 : vector<1x8x1xf32> to vector<8x1xf32>
      %274 = vector.broadcast %273 : vector<8x1xf32> to vector<8x256xf32>
      %275 = arith.mulf %271, %274 : vector<8x256xf32>
      %276 = arith.addf %258, %275 : vector<8x256xf32>
      %c8_188 = arith.constant 8 : index
      %c113_189 = arith.constant 113 : index
      %277 = vector.load %arg5[%c8_188, %c113_189] : memref<16x512xf32, #tpu.memory_space<vmem>>, vector<8x256xf32>
      %c0_190 = arith.constant 0 : index
      %c0_191 = arith.constant 0 : index
      %c38 = arith.constant 38 : index
      %278 = vector.load %arg3[%c0_190, %c0_191, %c38] : memref<1x8x46xf32, #tpu.memory_space<vmem>>, vector<1x8x1xf32>
      %279 = vector.shape_cast %278 : vector<1x8x1xf32> to vector<8x1xf32>
      %280 = vector.broadcast %279 : vector<8x1xf32> to vector<8x256xf32>
      %281 = arith.mulf %277, %280 : vector<8x256xf32>
      %282 = arith.addf %264, %281 : vector<8x256xf32>
      %c8_192 = arith.constant 8 : index
      %c127_193 = arith.constant 127 : index
      %283 = vector.load %arg5[%c8_192, %c127_193] : memref<16x512xf32, #tpu.memory_space<vmem>>, vector<8x256xf32>
      %c0_194 = arith.constant 0 : index
      %c0_195 = arith.constant 0 : index
      %c39 = arith.constant 39 : index
      %284 = vector.load %arg3[%c0_194, %c0_195, %c39] : memref<1x8x46xf32, #tpu.memory_space<vmem>>, vector<1x8x1xf32>
      %285 = vector.shape_cast %284 : vector<1x8x1xf32> to vector<8x1xf32>
      %286 = vector.broadcast %285 : vector<8x1xf32> to vector<8x256xf32>
      %287 = arith.mulf %283, %286 : vector<8x256xf32>
      %288 = arith.addf %270, %287 : vector<8x256xf32>
      %c8_196 = arith.constant 8 : index
      %c128_197 = arith.constant 128 : index
      %289 = vector.load %arg5[%c8_196, %c128_197] : memref<16x512xf32, #tpu.memory_space<vmem>>, vector<8x256xf32>
      %c0_198 = arith.constant 0 : index
      %c0_199 = arith.constant 0 : index
      %c40 = arith.constant 40 : index
      %290 = vector.load %arg3[%c0_198, %c0_199, %c40] : memref<1x8x46xf32, #tpu.memory_space<vmem>>, vector<1x8x1xf32>
      %291 = vector.shape_cast %290 : vector<1x8x1xf32> to vector<8x1xf32>
      %292 = vector.broadcast %291 : vector<8x1xf32> to vector<8x256xf32>
      %293 = arith.mulf %289, %292 : vector<8x256xf32>
      %294 = arith.addf %276, %293 : vector<8x256xf32>
      %c8_200 = arith.constant 8 : index
      %c129_201 = arith.constant 129 : index
      %295 = vector.load %arg5[%c8_200, %c129_201] : memref<16x512xf32, #tpu.memory_space<vmem>>, vector<8x256xf32>
      %c0_202 = arith.constant 0 : index
      %c0_203 = arith.constant 0 : index
      %c41 = arith.constant 41 : index
      %296 = vector.load %arg3[%c0_202, %c0_203, %c41] : memref<1x8x46xf32, #tpu.memory_space<vmem>>, vector<1x8x1xf32>
      %297 = vector.shape_cast %296 : vector<1x8x1xf32> to vector<8x1xf32>
      %298 = vector.broadcast %297 : vector<8x1xf32> to vector<8x256xf32>
      %299 = arith.mulf %295, %298 : vector<8x256xf32>
      %300 = arith.addf %282, %299 : vector<8x256xf32>
      %c8_204 = arith.constant 8 : index
      %c143_205 = arith.constant 143 : index
      %301 = vector.load %arg5[%c8_204, %c143_205] : memref<16x512xf32, #tpu.memory_space<vmem>>, vector<8x256xf32>
      %c0_206 = arith.constant 0 : index
      %c0_207 = arith.constant 0 : index
      %c42 = arith.constant 42 : index
      %302 = vector.load %arg3[%c0_206, %c0_207, %c42] : memref<1x8x46xf32, #tpu.memory_space<vmem>>, vector<1x8x1xf32>
      %303 = vector.shape_cast %302 : vector<1x8x1xf32> to vector<8x1xf32>
      %304 = vector.broadcast %303 : vector<8x1xf32> to vector<8x256xf32>
      %305 = arith.mulf %301, %304 : vector<8x256xf32>
      %306 = arith.addf %288, %305 : vector<8x256xf32>
      %c8_208 = arith.constant 8 : index
      %c144_209 = arith.constant 144 : index
      %307 = vector.load %arg5[%c8_208, %c144_209] : memref<16x512xf32, #tpu.memory_space<vmem>>, vector<8x256xf32>
      %c0_210 = arith.constant 0 : index
      %c0_211 = arith.constant 0 : index
      %c43 = arith.constant 43 : index
      %308 = vector.load %arg3[%c0_210, %c0_211, %c43] : memref<1x8x46xf32, #tpu.memory_space<vmem>>, vector<1x8x1xf32>
      %309 = vector.shape_cast %308 : vector<1x8x1xf32> to vector<8x1xf32>
      %310 = vector.broadcast %309 : vector<8x1xf32> to vector<8x256xf32>
      %311 = arith.mulf %307, %310 : vector<8x256xf32>
      %312 = arith.addf %294, %311 : vector<8x256xf32>
      %c8_212 = arith.constant 8 : index
      %c145_213 = arith.constant 145 : index
      %313 = vector.load %arg5[%c8_212, %c145_213] : memref<16x512xf32, #tpu.memory_space<vmem>>, vector<8x256xf32>
      %c0_214 = arith.constant 0 : index
      %c0_215 = arith.constant 0 : index
      %c44 = arith.constant 44 : index
      %314 = vector.load %arg3[%c0_214, %c0_215, %c44] : memref<1x8x46xf32, #tpu.memory_space<vmem>>, vector<1x8x1xf32>
      %315 = vector.shape_cast %314 : vector<1x8x1xf32> to vector<8x1xf32>
      %316 = vector.broadcast %315 : vector<8x1xf32> to vector<8x256xf32>
      %317 = arith.mulf %313, %316 : vector<8x256xf32>
      %318 = arith.addf %300, %317 : vector<8x256xf32>
      %c15_i32 = arith.constant 15 : i32
      %319 = vector.broadcast %c15_i32 : i32 to vector<1x256xi32>
      %320 = arith.cmpi slt, %36, %319 : vector<1x256xi32>
      %321 = arith.extui %320 : vector<1x256xi1> to vector<1x256xi32>
      %322 = arith.sitofp %321 : vector<1x256xi32> to vector<1x256xf32>
      %323 = vector.broadcast %322 : vector<1x256xf32> to vector<8x256xf32>
      %324 = arith.mulf %323, %318 : vector<8x256xf32>
      %325 = arith.addf %312, %324 : vector<8x256xf32>
      %c1_i32_216 = arith.constant 1 : i32
      %326 = vector.broadcast %c1_i32_216 : i32 to vector<1x256xi32>
      %327 = arith.cmpi sge, %36, %326 : vector<1x256xi32>
      %328 = arith.extui %327 : vector<1x256xi1> to vector<1x256xi32>
      %329 = arith.sitofp %328 : vector<1x256xi32> to vector<1x256xf32>
      %330 = vector.broadcast %329 : vector<1x256xf32> to vector<8x256xf32>
      %331 = arith.mulf %330, %306 : vector<8x256xf32>
      %332 = arith.addf %325, %331 : vector<8x256xf32>
      %c0_217 = arith.constant 0 : index
      %c0_218 = arith.constant 0 : index
      %c45 = arith.constant 45 : index
      %333 = vector.load %arg3[%c0_217, %c0_218, %c45] : memref<1x8x46xf32, #tpu.memory_space<vmem>>, vector<1x8x1xf32>
      %334 = vector.shape_cast %333 : vector<1x8x1xf32> to vector<8x1xf32>
      %335 = vector.broadcast %334 : vector<8x1xf32> to vector<8x256xf32>
      %336 = arith.addf %332, %335 : vector<8x256xf32>
      %337 = vector.extract_strided_slice %336 {offsets = [0, 0], sizes = [2, 256], strides = [1, 1]} : vector<8x256xf32> to vector<2x256xf32>
      %c0_219 = arith.constant 0 : index
      %c0_220 = arith.constant 0 : index
      %c0_221 = arith.constant 0 : index
      %c0_222 = arith.constant 0 : index
      %338 = vector.load %arg4[%c0_219, %c0_220, %c0_221, %c0_222] : memref<1x2x4x256xf32, #tpu.memory_space<vmem>>, vector<1x2x1x256xf32>
      %339 = vector.shape_cast %338 : vector<1x2x1x256xf32> to vector<2x256xf32>
      %340 = vector.shape_cast %337 : vector<2x256xf32> to vector<1x2x1x256xf32>
      tpu.vector_store %arg4[%c0_219, %c0_220, %c0_221, %c0_222], %340 {strides = array<i32>} : memref<1x2x4x256xf32, #tpu.memory_space<vmem>>, vector<1x2x1x256xf32>,
      %341 = vector.extract_strided_slice %336 {offsets = [2, 0], sizes = [2, 256], strides = [1, 1]} : vector<8x256xf32> to vector<2x256xf32>
      %c0_223 = arith.constant 0 : index
      %c0_224 = arith.constant 0 : index
      %c1_225 = arith.constant 1 : index
      %c0_226 = arith.constant 0 : index
      %342 = vector.load %arg4[%c0_223, %c0_224, %c1_225, %c0_226] : memref<1x2x4x256xf32, #tpu.memory_space<vmem>>, vector<1x2x1x256xf32>
      %343 = vector.shape_cast %342 : vector<1x2x1x256xf32> to vector<2x256xf32>
      %344 = vector.shape_cast %341 : vector<2x256xf32> to vector<1x2x1x256xf32>
      tpu.vector_store %arg4[%c0_223, %c0_224, %c1_225, %c0_226], %344 {strides = array<i32>} : memref<1x2x4x256xf32, #tpu.memory_space<vmem>>, vector<1x2x1x256xf32>,
      %345 = vector.extract_strided_slice %336 {offsets = [4, 0], sizes = [2, 256], strides = [1, 1]} : vector<8x256xf32> to vector<2x256xf32>
      %c0_227 = arith.constant 0 : index
      %c0_228 = arith.constant 0 : index
      %c2_229 = arith.constant 2 : index
      %c0_230 = arith.constant 0 : index
      %346 = vector.load %arg4[%c0_227, %c0_228, %c2_229, %c0_230] : memref<1x2x4x256xf32, #tpu.memory_space<vmem>>, vector<1x2x1x256xf32>
      %347 = vector.shape_cast %346 : vector<1x2x1x256xf32> to vector<2x256xf32>
      %348 = vector.shape_cast %345 : vector<2x256xf32> to vector<1x2x1x256xf32>
      tpu.vector_store %arg4[%c0_227, %c0_228, %c2_229, %c0_230], %348 {strides = array<i32>} : memref<1x2x4x256xf32, #tpu.memory_space<vmem>>, vector<1x2x1x256xf32>,
      %349 = vector.extract_strided_slice %336 {offsets = [6, 0], sizes = [2, 256], strides = [1, 1]} : vector<8x256xf32> to vector<2x256xf32>
      %c0_231 = arith.constant 0 : index
      %c0_232 = arith.constant 0 : index
      %c3_233 = arith.constant 3 : index
      %c0_234 = arith.constant 0 : index
      %350 = vector.load %arg4[%c0_231, %c0_232, %c3_233, %c0_234] : memref<1x2x4x256xf32, #tpu.memory_space<vmem>>, vector<1x2x1x256xf32>
      %351 = vector.shape_cast %350 : vector<1x2x1x256xf32> to vector<2x256xf32>
      %352 = vector.shape_cast %349 : vector<2x256xf32> to vector<1x2x1x256xf32>
      tpu.vector_store %arg4[%c0_231, %c0_232, %c3_233, %c0_234], %352 {strides = array<i32>} : memref<1x2x4x256xf32, #tpu.memory_space<vmem>>, vector<1x2x1x256xf32>,
    } else {
    }
    %c1_i32_29 = arith.constant 1 : i32
    %40 = arith.cmpi eq, %arg1, %c1_i32_29 : i32
    %41 = arith.extui %40 : i1 to i32
    %c0_i32_30 = arith.constant 0 : i32
    %42 = arith.cmpi ne, %41, %c0_i32_30 : i32
    scf.if %42 {
      %cst_32 = arith.constant 0.000000e+00 : f32
      %46 = vector.broadcast %cst_32 : f32 to vector<8x256xf32>
      %c4_33 = arith.constant 4 : index
      %c123 = arith.constant 123 : index
      %47 = vector.load %arg5[%c4_33, %c123] : memref<16x512xf32, #tpu.memory_space<vmem>>, vector<8x256xf32>
      %c0_34 = arith.constant 0 : index
      %c0_35 = arith.constant 0 : index
      %c0_36 = arith.constant 0 : index
      %48 = vector.load %arg3[%c0_34, %c0_35, %c0_36] : memref<1x8x46xf32, #tpu.memory_space<vmem>>, vector<1x8x1xf32>
      %49 = vector.shape_cast %48 : vector<1x8x1xf32> to vector<8x1xf32>
      %50 = vector.broadcast %49 : vector<8x1xf32> to vector<8x256xf32>
      %51 = arith.mulf %47, %50 : vector<8x256xf32>
      %c5_i32 = arith.constant 5 : i32
      %52 = vector.broadcast %c5_i32 : i32 to vector<1x256xi32>
      %53 = arith.cmpi sge, %36, %52 : vector<1x256xi32>
      %54 = arith.extui %53 : vector<1x256xi1> to vector<1x256xi32>
      %55 = arith.sitofp %54 : vector<1x256xi32> to vector<1x256xf32>
      %56 = vector.broadcast %55 : vector<1x256xf32> to vector<8x256xf32>
      %57 = arith.mulf %51, %56 : vector<8x256xf32>
      %58 = arith.addf %46, %57 : vector<8x256xf32>
      %c4_37 = arith.constant 4 : index
      %c124 = arith.constant 124 : index
      %59 = vector.load %arg5[%c4_37, %c124] : memref<16x512xf32, #tpu.memory_space<vmem>>, vector<8x256xf32>
      %c0_38 = arith.constant 0 : index
      %c0_39 = arith.constant 0 : index
      %c1_40 = arith.constant 1 : index
      %60 = vector.load %arg3[%c0_38, %c0_39, %c1_40] : memref<1x8x46xf32, #tpu.memory_space<vmem>>, vector<1x8x1xf32>
      %61 = vector.shape_cast %60 : vector<1x8x1xf32> to vector<8x1xf32>
      %62 = vector.broadcast %61 : vector<8x1xf32> to vector<8x256xf32>
      %63 = arith.mulf %59, %62 : vector<8x256xf32>
      %c4_i32 = arith.constant 4 : i32
      %64 = vector.broadcast %c4_i32 : i32 to vector<1x256xi32>
      %65 = arith.cmpi sge, %36, %64 : vector<1x256xi32>
      %66 = arith.extui %65 : vector<1x256xi1> to vector<1x256xi32>
      %67 = arith.sitofp %66 : vector<1x256xi32> to vector<1x256xf32>
      %68 = vector.broadcast %67 : vector<1x256xf32> to vector<8x256xf32>
      %69 = arith.mulf %63, %68 : vector<8x256xf32>
      %70 = arith.addf %58, %69 : vector<8x256xf32>
      %c4_41 = arith.constant 4 : index
      %c125 = arith.constant 125 : index
      %71 = vector.load %arg5[%c4_41, %c125] : memref<16x512xf32, #tpu.memory_space<vmem>>, vector<8x256xf32>
      %c0_42 = arith.constant 0 : index
      %c0_43 = arith.constant 0 : index
      %c2_44 = arith.constant 2 : index
      %72 = vector.load %arg3[%c0_42, %c0_43, %c2_44] : memref<1x8x46xf32, #tpu.memory_space<vmem>>, vector<1x8x1xf32>
      %73 = vector.shape_cast %72 : vector<1x8x1xf32> to vector<8x1xf32>
      %74 = vector.broadcast %73 : vector<8x1xf32> to vector<8x256xf32>
      %75 = arith.mulf %71, %74 : vector<8x256xf32>
      %c3_i32 = arith.constant 3 : i32
      %76 = vector.broadcast %c3_i32 : i32 to vector<1x256xi32>
      %77 = arith.cmpi sge, %36, %76 : vector<1x256xi32>
      %78 = arith.extui %77 : vector<1x256xi1> to vector<1x256xi32>
      %79 = arith.sitofp %78 : vector<1x256xi32> to vector<1x256xf32>
      %80 = vector.broadcast %79 : vector<1x256xf32> to vector<8x256xf32>
      %81 = arith.mulf %75, %80 : vector<8x256xf32>
      %82 = arith.addf %70, %81 : vector<8x256xf32>
      %c4_45 = arith.constant 4 : index
      %c126 = arith.constant 126 : index
      %83 = vector.load %arg5[%c4_45, %c126] : memref<16x512xf32, #tpu.memory_space<vmem>>, vector<8x256xf32>
      %c0_46 = arith.constant 0 : index
      %c0_47 = arith.constant 0 : index
      %c3_48 = arith.constant 3 : index
      %84 = vector.load %arg3[%c0_46, %c0_47, %c3_48] : memref<1x8x46xf32, #tpu.memory_space<vmem>>, vector<1x8x1xf32>
      %85 = vector.shape_cast %84 : vector<1x8x1xf32> to vector<8x1xf32>
      %86 = vector.broadcast %85 : vector<8x1xf32> to vector<8x256xf32>
      %87 = arith.mulf %83, %86 : vector<8x256xf32>
      %c2_i32_49 = arith.constant 2 : i32
      %88 = vector.broadcast %c2_i32_49 : i32 to vector<1x256xi32>
      %89 = arith.cmpi sge, %36, %88 : vector<1x256xi32>
      %90 = arith.extui %89 : vector<1x256xi1> to vector<1x256xi32>
      %91 = arith.sitofp %90 : vector<1x256xi32> to vector<1x256xf32>
      %92 = vector.broadcast %91 : vector<1x256xf32> to vector<8x256xf32>
      %93 = arith.mulf %87, %92 : vector<8x256xf32>
      %94 = arith.addf %82, %93 : vector<8x256xf32>
      %c4_50 = arith.constant 4 : index
      %c127 = arith.constant 127 : index
      %95 = vector.load %arg5[%c4_50, %c127] : memref<16x512xf32, #tpu.memory_space<vmem>>, vector<8x256xf32>
      %c0_51 = arith.constant 0 : index
      %c0_52 = arith.constant 0 : index
      %c4_53 = arith.constant 4 : index
      %96 = vector.load %arg3[%c0_51, %c0_52, %c4_53] : memref<1x8x46xf32, #tpu.memory_space<vmem>>, vector<1x8x1xf32>
      %97 = vector.shape_cast %96 : vector<1x8x1xf32> to vector<8x1xf32>
      %98 = vector.broadcast %97 : vector<8x1xf32> to vector<8x256xf32>
      %99 = arith.mulf %95, %98 : vector<8x256xf32>
      %c1_i32_54 = arith.constant 1 : i32
      %100 = vector.broadcast %c1_i32_54 : i32 to vector<1x256xi32>
      %101 = arith.cmpi sge, %36, %100 : vector<1x256xi32>
      %102 = arith.extui %101 : vector<1x256xi1> to vector<1x256xi32>
      %103 = arith.sitofp %102 : vector<1x256xi32> to vector<1x256xf32>
      %104 = vector.broadcast %103 : vector<1x256xf32> to vector<8x256xf32>
      %105 = arith.mulf %99, %104 : vector<8x256xf32>
      %106 = arith.addf %94, %105 : vector<8x256xf32>
      %c4_55 = arith.constant 4 : index
      %c128_56 = arith.constant 128 : index
      %107 = vector.load %arg5[%c4_55, %c128_56] : memref<16x512xf32, #tpu.memory_space<vmem>>, vector<8x256xf32>
      %c0_57 = arith.constant 0 : index
      %c0_58 = arith.constant 0 : index
      %c5 = arith.constant 5 : index
      %108 = vector.load %arg3[%c0_57, %c0_58, %c5] : memref<1x8x46xf32, #tpu.memory_space<vmem>>, vector<1x8x1xf32>
      %109 = vector.shape_cast %108 : vector<1x8x1xf32> to vector<8x1xf32>
      %110 = vector.broadcast %109 : vector<8x1xf32> to vector<8x256xf32>
      %111 = arith.mulf %107, %110 : vector<8x256xf32>
      %112 = arith.addf %106, %111 : vector<8x256xf32>
      %c4_59 = arith.constant 4 : index
      %c129 = arith.constant 129 : index
      %113 = vector.load %arg5[%c4_59, %c129] : memref<16x512xf32, #tpu.memory_space<vmem>>, vector<8x256xf32>
      %c0_60 = arith.constant 0 : index
      %c0_61 = arith.constant 0 : index
      %c6_62 = arith.constant 6 : index
      %114 = vector.load %arg3[%c0_60, %c0_61, %c6_62] : memref<1x8x46xf32, #tpu.memory_space<vmem>>, vector<1x8x1xf32>
      %115 = vector.shape_cast %114 : vector<1x8x1xf32> to vector<8x1xf32>
      %116 = vector.broadcast %115 : vector<8x1xf32> to vector<8x256xf32>
      %117 = arith.mulf %113, %116 : vector<8x256xf32>
      %c15_i32 = arith.constant 15 : i32
      %118 = vector.broadcast %c15_i32 : i32 to vector<1x256xi32>
      %119 = arith.cmpi slt, %36, %118 : vector<1x256xi32>
      %120 = arith.extui %119 : vector<1x256xi1> to vector<1x256xi32>
      %121 = arith.sitofp %120 : vector<1x256xi32> to vector<1x256xf32>
      %122 = vector.broadcast %121 : vector<1x256xf32> to vector<8x256xf32>
      %123 = arith.mulf %117, %122 : vector<8x256xf32>
      %124 = arith.addf %112, %123 : vector<8x256xf32>
      %c4_63 = arith.constant 4 : index
      %c130 = arith.constant 130 : index
      %125 = vector.load %arg5[%c4_63, %c130] : memref<16x512xf32, #tpu.memory_space<vmem>>, vector<8x256xf32>
      %c0_64 = arith.constant 0 : index
      %c0_65 = arith.constant 0 : index
      %c7 = arith.constant 7 : index
      %126 = vector.load %arg3[%c0_64, %c0_65, %c7] : memref<1x8x46xf32, #tpu.memory_space<vmem>>, vector<1x8x1xf32>
      %127 = vector.shape_cast %126 : vector<1x8x1xf32> to vector<8x1xf32>
      %128 = vector.broadcast %127 : vector<8x1xf32> to vector<8x256xf32>
      %129 = arith.mulf %125, %128 : vector<8x256xf32>
      %c14_i32 = arith.constant 14 : i32
      %130 = vector.broadcast %c14_i32 : i32 to vector<1x256xi32>
      %131 = arith.cmpi slt, %36, %130 : vector<1x256xi32>
      %132 = arith.extui %131 : vector<1x256xi1> to vector<1x256xi32>
      %133 = arith.sitofp %132 : vector<1x256xi32> to vector<1x256xf32>
      %134 = vector.broadcast %133 : vector<1x256xf32> to vector<8x256xf32>
      %135 = arith.mulf %129, %134 : vector<8x256xf32>
      %136 = arith.addf %124, %135 : vector<8x256xf32>
      %c4_66 = arith.constant 4 : index
      %c131 = arith.constant 131 : index
      %137 = vector.load %arg5[%c4_66, %c131] : memref<16x512xf32, #tpu.memory_space<vmem>>, vector<8x256xf32>
      %c0_67 = arith.constant 0 : index
      %c0_68 = arith.constant 0 : index
      %c8_69 = arith.constant 8 : index
      %138 = vector.load %arg3[%c0_67, %c0_68, %c8_69] : memref<1x8x46xf32, #tpu.memory_space<vmem>>, vector<1x8x1xf32>
      %139 = vector.shape_cast %138 : vector<1x8x1xf32> to vector<8x1xf32>
      %140 = vector.broadcast %139 : vector<8x1xf32> to vector<8x256xf32>
      %141 = arith.mulf %137, %140 : vector<8x256xf32>
      %c13_i32 = arith.constant 13 : i32
      %142 = vector.broadcast %c13_i32 : i32 to vector<1x256xi32>
      %143 = arith.cmpi slt, %36, %142 : vector<1x256xi32>
      %144 = arith.extui %143 : vector<1x256xi1> to vector<1x256xi32>
      %145 = arith.sitofp %144 : vector<1x256xi32> to vector<1x256xf32>
      %146 = vector.broadcast %145 : vector<1x256xf32> to vector<8x256xf32>
      %147 = arith.mulf %141, %146 : vector<8x256xf32>
      %148 = arith.addf %136, %147 : vector<8x256xf32>
      %c4_70 = arith.constant 4 : index
      %c132 = arith.constant 132 : index
      %149 = vector.load %arg5[%c4_70, %c132] : memref<16x512xf32, #tpu.memory_space<vmem>>, vector<8x256xf32>
      %c0_71 = arith.constant 0 : index
      %c0_72 = arith.constant 0 : index
      %c9 = arith.constant 9 : index
      %150 = vector.load %arg3[%c0_71, %c0_72, %c9] : memref<1x8x46xf32, #tpu.memory_space<vmem>>, vector<1x8x1xf32>
      %151 = vector.shape_cast %150 : vector<1x8x1xf32> to vector<8x1xf32>
      %152 = vector.broadcast %151 : vector<8x1xf32> to vector<8x256xf32>
      %153 = arith.mulf %149, %152 : vector<8x256xf32>
      %c12_i32 = arith.constant 12 : i32
      %154 = vector.broadcast %c12_i32 : i32 to vector<1x256xi32>
      %155 = arith.cmpi slt, %36, %154 : vector<1x256xi32>
      %156 = arith.extui %155 : vector<1x256xi1> to vector<1x256xi32>
      %157 = arith.sitofp %156 : vector<1x256xi32> to vector<1x256xf32>
      %158 = vector.broadcast %157 : vector<1x256xf32> to vector<8x256xf32>
      %159 = arith.mulf %153, %158 : vector<8x256xf32>
      %160 = arith.addf %148, %159 : vector<8x256xf32>
      %c4_73 = arith.constant 4 : index
      %c133 = arith.constant 133 : index
      %161 = vector.load %arg5[%c4_73, %c133] : memref<16x512xf32, #tpu.memory_space<vmem>>, vector<8x256xf32>
      %c0_74 = arith.constant 0 : index
      %c0_75 = arith.constant 0 : index
      %c10_76 = arith.constant 10 : index
      %162 = vector.load %arg3[%c0_74, %c0_75, %c10_76] : memref<1x8x46xf32, #tpu.memory_space<vmem>>, vector<1x8x1xf32>
      %163 = vector.shape_cast %162 : vector<1x8x1xf32> to vector<8x1xf32>
      %164 = vector.broadcast %163 : vector<8x1xf32> to vector<8x256xf32>
      %165 = arith.mulf %161, %164 : vector<8x256xf32>
      %c11_i32 = arith.constant 11 : i32
      %166 = vector.broadcast %c11_i32 : i32 to vector<1x256xi32>
      %167 = arith.cmpi slt, %36, %166 : vector<1x256xi32>
      %168 = arith.extui %167 : vector<1x256xi1> to vector<1x256xi32>
      %169 = arith.sitofp %168 : vector<1x256xi32> to vector<1x256xf32>
      %170 = vector.broadcast %169 : vector<1x256xf32> to vector<8x256xf32>
      %171 = arith.mulf %165, %170 : vector<8x256xf32>
      %172 = arith.addf %160, %171 : vector<8x256xf32>
      %c0_77 = arith.constant 0 : index
      %c0_78 = arith.constant 0 : index
      %c45 = arith.constant 45 : index
      %173 = vector.load %arg3[%c0_77, %c0_78, %c45] : memref<1x8x46xf32, #tpu.memory_space<vmem>>, vector<1x8x1xf32>
      %174 = vector.shape_cast %173 : vector<1x8x1xf32> to vector<8x1xf32>
      %175 = vector.broadcast %174 : vector<8x1xf32> to vector<8x256xf32>
      %176 = arith.addf %172, %175 : vector<8x256xf32>
      %177 = vector.extract_strided_slice %176 {offsets = [0, 0], sizes = [2, 256], strides = [1, 1]} : vector<8x256xf32> to vector<2x256xf32>
      %c0_79 = arith.constant 0 : index
      %c0_80 = arith.constant 0 : index
      %c0_81 = arith.constant 0 : index
      %c0_82 = arith.constant 0 : index
      %178 = vector.load %arg4[%c0_79, %c0_80, %c0_81, %c0_82] : memref<1x2x4x256xf32, #tpu.memory_space<vmem>>, vector<1x2x1x256xf32>
      %179 = vector.shape_cast %178 : vector<1x2x1x256xf32> to vector<2x256xf32>
      %180 = vector.shape_cast %177 : vector<2x256xf32> to vector<1x2x1x256xf32>
      tpu.vector_store %arg4[%c0_79, %c0_80, %c0_81, %c0_82], %180 {strides = array<i32>} : memref<1x2x4x256xf32, #tpu.memory_space<vmem>>, vector<1x2x1x256xf32>,
      %181 = vector.extract_strided_slice %176 {offsets = [2, 0], sizes = [2, 256], strides = [1, 1]} : vector<8x256xf32> to vector<2x256xf32>
      %c0_83 = arith.constant 0 : index
      %c0_84 = arith.constant 0 : index
      %c1_85 = arith.constant 1 : index
      %c0_86 = arith.constant 0 : index
      %182 = vector.load %arg4[%c0_83, %c0_84, %c1_85, %c0_86] : memref<1x2x4x256xf32, #tpu.memory_space<vmem>>, vector<1x2x1x256xf32>
      %183 = vector.shape_cast %182 : vector<1x2x1x256xf32> to vector<2x256xf32>
      %184 = vector.shape_cast %181 : vector<2x256xf32> to vector<1x2x1x256xf32>
      tpu.vector_store %arg4[%c0_83, %c0_84, %c1_85, %c0_86], %184 {strides = array<i32>} : memref<1x2x4x256xf32, #tpu.memory_space<vmem>>, vector<1x2x1x256xf32>,
      %185 = vector.extract_strided_slice %176 {offsets = [4, 0], sizes = [2, 256], strides = [1, 1]} : vector<8x256xf32> to vector<2x256xf32>
      %c0_87 = arith.constant 0 : index
      %c0_88 = arith.constant 0 : index
      %c2_89 = arith.constant 2 : index
      %c0_90 = arith.constant 0 : index
      %186 = vector.load %arg4[%c0_87, %c0_88, %c2_89, %c0_90] : memref<1x2x4x256xf32, #tpu.memory_space<vmem>>, vector<1x2x1x256xf32>
      %187 = vector.shape_cast %186 : vector<1x2x1x256xf32> to vector<2x256xf32>
      %188 = vector.shape_cast %185 : vector<2x256xf32> to vector<1x2x1x256xf32>
      tpu.vector_store %arg4[%c0_87, %c0_88, %c2_89, %c0_90], %188 {strides = array<i32>} : memref<1x2x4x256xf32, #tpu.memory_space<vmem>>, vector<1x2x1x256xf32>,
      %189 = vector.extract_strided_slice %176 {offsets = [6, 0], sizes = [2, 256], strides = [1, 1]} : vector<8x256xf32> to vector<2x256xf32>
      %c0_91 = arith.constant 0 : index
      %c0_92 = arith.constant 0 : index
      %c3_93 = arith.constant 3 : index
      %c0_94 = arith.constant 0 : index
      %190 = vector.load %arg4[%c0_91, %c0_92, %c3_93, %c0_94] : memref<1x2x4x256xf32, #tpu.memory_space<vmem>>, vector<1x2x1x256xf32>
      %191 = vector.shape_cast %190 : vector<1x2x1x256xf32> to vector<2x256xf32>
      %192 = vector.shape_cast %189 : vector<2x256xf32> to vector<1x2x1x256xf32>
      tpu.vector_store %arg4[%c0_91, %c0_92, %c3_93, %c0_94], %192 {strides = array<i32>} : memref<1x2x4x256xf32, #tpu.memory_space<vmem>>, vector<1x2x1x256xf32>,
    } else {
    }
    %c2_i32 = arith.constant 2 : i32
    %43 = arith.cmpi eq, %arg1, %c2_i32 : i32
    %44 = arith.extui %43 : i1 to i32
    %c0_i32_31 = arith.constant 0 : i32
    %45 = arith.cmpi ne, %44, %c0_i32_31 : i32
    scf.if %45 {
      %cst_32 = arith.constant 0.000000e+00 : f32
      %46 = vector.broadcast %cst_32 : f32 to vector<8x256xf32>
      %c4_33 = arith.constant 4 : index
      %c48 = arith.constant 48 : index
      %47 = vector.load %arg5[%c4_33, %c48] : memref<16x512xf32, #tpu.memory_space<vmem>>, vector<8x256xf32>
      %c0_34 = arith.constant 0 : index
      %c0_35 = arith.constant 0 : index
      %c0_36 = arith.constant 0 : index
      %48 = vector.load %arg3[%c0_34, %c0_35, %c0_36] : memref<1x8x46xf32, #tpu.memory_space<vmem>>, vector<1x8x1xf32>
      %49 = vector.shape_cast %48 : vector<1x8x1xf32> to vector<8x1xf32>
      %50 = vector.broadcast %49 : vector<8x1xf32> to vector<8x256xf32>
      %51 = arith.mulf %47, %50 : vector<8x256xf32>
      %52 = arith.addf %46, %51 : vector<8x256xf32>
      %c4_37 = arith.constant 4 : index
      %c64 = arith.constant 64 : index
      %53 = vector.load %arg5[%c4_37, %c64] : memref<16x512xf32, #tpu.memory_space<vmem>>, vector<8x256xf32>
      %c0_38 = arith.constant 0 : index
      %c0_39 = arith.constant 0 : index
      %c1_40 = arith.constant 1 : index
      %54 = vector.load %arg3[%c0_38, %c0_39, %c1_40] : memref<1x8x46xf32, #tpu.memory_space<vmem>>, vector<1x8x1xf32>
      %55 = vector.shape_cast %54 : vector<1x8x1xf32> to vector<8x1xf32>
      %56 = vector.broadcast %55 : vector<8x1xf32> to vector<8x256xf32>
      %57 = arith.mulf %53, %56 : vector<8x256xf32>
      %58 = arith.addf %52, %57 : vector<8x256xf32>
      %c4_41 = arith.constant 4 : index
      %c80 = arith.constant 80 : index
      %59 = vector.load %arg5[%c4_41, %c80] : memref<16x512xf32, #tpu.memory_space<vmem>>, vector<8x256xf32>
      %c0_42 = arith.constant 0 : index
      %c0_43 = arith.constant 0 : index
      %c2_44 = arith.constant 2 : index
      %60 = vector.load %arg3[%c0_42, %c0_43, %c2_44] : memref<1x8x46xf32, #tpu.memory_space<vmem>>, vector<1x8x1xf32>
      %61 = vector.shape_cast %60 : vector<1x8x1xf32> to vector<8x1xf32>
      %62 = vector.broadcast %61 : vector<8x1xf32> to vector<8x256xf32>
      %63 = arith.mulf %59, %62 : vector<8x256xf32>
      %64 = arith.addf %58, %63 : vector<8x256xf32>
      %c4_45 = arith.constant 4 : index
      %c96 = arith.constant 96 : index
      %65 = vector.load %arg5[%c4_45, %c96] : memref<16x512xf32, #tpu.memory_space<vmem>>, vector<8x256xf32>
      %c0_46 = arith.constant 0 : index
      %c0_47 = arith.constant 0 : index
      %c3_48 = arith.constant 3 : index
      %66 = vector.load %arg3[%c0_46, %c0_47, %c3_48] : memref<1x8x46xf32, #tpu.memory_space<vmem>>, vector<1x8x1xf32>
      %67 = vector.shape_cast %66 : vector<1x8x1xf32> to vector<8x1xf32>
      %68 = vector.broadcast %67 : vector<8x1xf32> to vector<8x256xf32>
      %69 = arith.mulf %65, %68 : vector<8x256xf32>
      %70 = arith.addf %64, %69 : vector<8x256xf32>
      %c4_49 = arith.constant 4 : index
      %c112 = arith.constant 112 : index
      %71 = vector.load %arg5[%c4_49, %c112] : memref<16x512xf32, #tpu.memory_space<vmem>>, vector<8x256xf32>
      %c0_50 = arith.constant 0 : index
      %c0_51 = arith.constant 0 : index
      %c4_52 = arith.constant 4 : index
      %72 = vector.load %arg3[%c0_50, %c0_51, %c4_52] : memref<1x8x46xf32, #tpu.memory_space<vmem>>, vector<1x8x1xf32>
      %73 = vector.shape_cast %72 : vector<1x8x1xf32> to vector<8x1xf32>
      %74 = vector.broadcast %73 : vector<8x1xf32> to vector<8x256xf32>
      %75 = arith.mulf %71, %74 : vector<8x256xf32>
      %76 = arith.addf %70, %75 : vector<8x256xf32>
      %c4_53 = arith.constant 4 : index
      %c128_54 = arith.constant 128 : index
      %77 = vector.load %arg5[%c4_53, %c128_54] : memref<16x512xf32, #tpu.memory_space<vmem>>, vector<8x256xf32>
      %c0_55 = arith.constant 0 : index
      %c0_56 = arith.constant 0 : index
      %c5 = arith.constant 5 : index
      %78 = vector.load %arg3[%c0_55, %c0_56, %c5] : memref<1x8x46xf32, #tpu.memory_space<vmem>>, vector<1x8x1xf32>
      %79 = vector.shape_cast %78 : vector<1x8x1xf32> to vector<8x1xf32>
      %80 = vector.broadcast %79 : vector<8x1xf32> to vector<8x256xf32>
      %81 = arith.mulf %77, %80 : vector<8x256xf32>
      %82 = arith.addf %76, %81 : vector<8x256xf32>
      %c4_57 = arith.constant 4 : index
      %c144 = arith.constant 144 : index
      %83 = vector.load %arg5[%c4_57, %c144] : memref<16x512xf32, #tpu.memory_space<vmem>>, vector<8x256xf32>
      %c0_58 = arith.constant 0 : index
      %c0_59 = arith.constant 0 : index
      %c6_60 = arith.constant 6 : index
      %84 = vector.load %arg3[%c0_58, %c0_59, %c6_60] : memref<1x8x46xf32, #tpu.memory_space<vmem>>, vector<1x8x1xf32>
      %85 = vector.shape_cast %84 : vector<1x8x1xf32> to vector<8x1xf32>
      %86 = vector.broadcast %85 : vector<8x1xf32> to vector<8x256xf32>
      %87 = arith.mulf %83, %86 : vector<8x256xf32>
      %88 = arith.addf %82, %87 : vector<8x256xf32>
      %c4_61 = arith.constant 4 : index
      %c160 = arith.constant 160 : index
      %89 = vector.load %arg5[%c4_61, %c160] : memref<16x512xf32, #tpu.memory_space<vmem>>, vector<8x256xf32>
      %c0_62 = arith.constant 0 : index
      %c0_63 = arith.constant 0 : index
      %c7 = arith.constant 7 : index
      %90 = vector.load %arg3[%c0_62, %c0_63, %c7] : memref<1x8x46xf32, #tpu.memory_space<vmem>>, vector<1x8x1xf32>
      %91 = vector.shape_cast %90 : vector<1x8x1xf32> to vector<8x1xf32>
      %92 = vector.broadcast %91 : vector<8x1xf32> to vector<8x256xf32>
      %93 = arith.mulf %89, %92 : vector<8x256xf32>
      %94 = arith.addf %88, %93 : vector<8x256xf32>
      %c4_64 = arith.constant 4 : index
      %c176 = arith.constant 176 : index
      %95 = vector.load %arg5[%c4_64, %c176] : memref<16x512xf32, #tpu.memory_space<vmem>>, vector<8x256xf32>
      %c0_65 = arith.constant 0 : index
      %c0_66 = arith.constant 0 : index
      %c8_67 = arith.constant 8 : index
      %96 = vector.load %arg3[%c0_65, %c0_66, %c8_67] : memref<1x8x46xf32, #tpu.memory_space<vmem>>, vector<1x8x1xf32>
      %97 = vector.shape_cast %96 : vector<1x8x1xf32> to vector<8x1xf32>
      %98 = vector.broadcast %97 : vector<8x1xf32> to vector<8x256xf32>
      %99 = arith.mulf %95, %98 : vector<8x256xf32>
      %100 = arith.addf %94, %99 : vector<8x256xf32>
      %c4_68 = arith.constant 4 : index
      %c192 = arith.constant 192 : index
      %101 = vector.load %arg5[%c4_68, %c192] : memref<16x512xf32, #tpu.memory_space<vmem>>, vector<8x256xf32>
      %c0_69 = arith.constant 0 : index
      %c0_70 = arith.constant 0 : index
      %c9 = arith.constant 9 : index
      %102 = vector.load %arg3[%c0_69, %c0_70, %c9] : memref<1x8x46xf32, #tpu.memory_space<vmem>>, vector<1x8x1xf32>
      %103 = vector.shape_cast %102 : vector<1x8x1xf32> to vector<8x1xf32>
      %104 = vector.broadcast %103 : vector<8x1xf32> to vector<8x256xf32>
      %105 = arith.mulf %101, %104 : vector<8x256xf32>
      %106 = arith.addf %100, %105 : vector<8x256xf32>
      %c4_71 = arith.constant 4 : index
      %c208 = arith.constant 208 : index
      %107 = vector.load %arg5[%c4_71, %c208] : memref<16x512xf32, #tpu.memory_space<vmem>>, vector<8x256xf32>
      %c0_72 = arith.constant 0 : index
      %c0_73 = arith.constant 0 : index
      %c10_74 = arith.constant 10 : index
      %108 = vector.load %arg3[%c0_72, %c0_73, %c10_74] : memref<1x8x46xf32, #tpu.memory_space<vmem>>, vector<1x8x1xf32>
      %109 = vector.shape_cast %108 : vector<1x8x1xf32> to vector<8x1xf32>
      %110 = vector.broadcast %109 : vector<8x1xf32> to vector<8x256xf32>
      %111 = arith.mulf %107, %110 : vector<8x256xf32>
      %112 = arith.addf %106, %111 : vector<8x256xf32>
      %c0_75 = arith.constant 0 : index
      %c0_76 = arith.constant 0 : index
      %c45 = arith.constant 45 : index
      %113 = vector.load %arg3[%c0_75, %c0_76, %c45] : memref<1x8x46xf32, #tpu.memory_space<vmem>>, vector<1x8x1xf32>
      %114 = vector.shape_cast %113 : vector<1x8x1xf32> to vector<8x1xf32>
      %115 = vector.broadcast %114 : vector<8x1xf32> to vector<8x256xf32>
      %116 = arith.addf %112, %115 : vector<8x256xf32>
      %117 = vector.extract_strided_slice %116 {offsets = [0, 0], sizes = [2, 256], strides = [1, 1]} : vector<8x256xf32> to vector<2x256xf32>
      %c0_77 = arith.constant 0 : index
      %c0_78 = arith.constant 0 : index
      %c0_79 = arith.constant 0 : index
      %c0_80 = arith.constant 0 : index
      %118 = vector.load %arg4[%c0_77, %c0_78, %c0_79, %c0_80] : memref<1x2x4x256xf32, #tpu.memory_space<vmem>>, vector<1x2x1x256xf32>
      %119 = vector.shape_cast %118 : vector<1x2x1x256xf32> to vector<2x256xf32>
      %120 = vector.shape_cast %117 : vector<2x256xf32> to vector<1x2x1x256xf32>
      tpu.vector_store %arg4[%c0_77, %c0_78, %c0_79, %c0_80], %120 {strides = array<i32>} : memref<1x2x4x256xf32, #tpu.memory_space<vmem>>, vector<1x2x1x256xf32>,
      %121 = vector.extract_strided_slice %116 {offsets = [2, 0], sizes = [2, 256], strides = [1, 1]} : vector<8x256xf32> to vector<2x256xf32>
      %c0_81 = arith.constant 0 : index
      %c0_82 = arith.constant 0 : index
      %c1_83 = arith.constant 1 : index
      %c0_84 = arith.constant 0 : index
      %122 = vector.load %arg4[%c0_81, %c0_82, %c1_83, %c0_84] : memref<1x2x4x256xf32, #tpu.memory_space<vmem>>, vector<1x2x1x256xf32>
      %123 = vector.shape_cast %122 : vector<1x2x1x256xf32> to vector<2x256xf32>
      %124 = vector.shape_cast %121 : vector<2x256xf32> to vector<1x2x1x256xf32>
      tpu.vector_store %arg4[%c0_81, %c0_82, %c1_83, %c0_84], %124 {strides = array<i32>} : memref<1x2x4x256xf32, #tpu.memory_space<vmem>>, vector<1x2x1x256xf32>,
      %125 = vector.extract_strided_slice %116 {offsets = [4, 0], sizes = [2, 256], strides = [1, 1]} : vector<8x256xf32> to vector<2x256xf32>
      %c0_85 = arith.constant 0 : index
      %c0_86 = arith.constant 0 : index
      %c2_87 = arith.constant 2 : index
      %c0_88 = arith.constant 0 : index
      %126 = vector.load %arg4[%c0_85, %c0_86, %c2_87, %c0_88] : memref<1x2x4x256xf32, #tpu.memory_space<vmem>>, vector<1x2x1x256xf32>
      %127 = vector.shape_cast %126 : vector<1x2x1x256xf32> to vector<2x256xf32>
      %128 = vector.shape_cast %125 : vector<2x256xf32> to vector<1x2x1x256xf32>
      tpu.vector_store %arg4[%c0_85, %c0_86, %c2_87, %c0_88], %128 {strides = array<i32>} : memref<1x2x4x256xf32, #tpu.memory_space<vmem>>, vector<1x2x1x256xf32>,
      %129 = vector.extract_strided_slice %116 {offsets = [6, 0], sizes = [2, 256], strides = [1, 1]} : vector<8x256xf32> to vector<2x256xf32>
      %c0_89 = arith.constant 0 : index
      %c0_90 = arith.constant 0 : index
      %c3_91 = arith.constant 3 : index
      %c0_92 = arith.constant 0 : index
      %130 = vector.load %arg4[%c0_89, %c0_90, %c3_91, %c0_92] : memref<1x2x4x256xf32, #tpu.memory_space<vmem>>, vector<1x2x1x256xf32>
      %131 = vector.shape_cast %130 : vector<1x2x1x256xf32> to vector<2x256xf32>
      %132 = vector.shape_cast %129 : vector<2x256xf32> to vector<1x2x1x256xf32>
      tpu.vector_store %arg4[%c0_89, %c0_90, %c3_91, %c0_92], %132 {strides = array<i32>} : memref<1x2x4x256xf32, #tpu.memory_space<vmem>>, vector<1x2x1x256xf32>,
    } else {
    }
    return
  }
  func.func @transform_0(%arg0: i32, %arg1: i32) -> (i32, i32, i32, i32) {
    %c5_i32 = arith.constant 5 : i32
    %0 = arith.addi %c5_i32, %arg1 : i32
    %c0_i32 = arith.constant 0 : i32
    %c0_i32_0 = arith.constant 0 : i32
    %c0_i32_1 = arith.constant 0 : i32
    return %arg0, %0, %c0_i32, %c0_i32_0 : i32, i32, i32, i32
  }
  func.func @transform_1(%arg0: i32, %arg1: i32) -> (i32, i32, i32) {
    %c0_i32 = arith.constant 0 : i32
    %c0_i32_0 = arith.constant 0 : i32
    %c0_i32_1 = arith.constant 0 : i32
    return %arg1, %c0_i32, %c0_i32_0 : i32, i32, i32
  }
  func.func @transform_2(%arg0: i32, %arg1: i32) -> (i32, i32, i32, i32) {
    %c5_i32 = arith.constant 5 : i32
    %0 = arith.addi %c5_i32, %arg1 : i32
    %c0_i32 = arith.constant 0 : i32
    %c0_i32_0 = arith.constant 0 : i32
    %c0_i32_1 = arith.constant 0 : i32
    return %arg0, %0, %c0_i32, %c0_i32_0 : i32, i32, i32, i32
  }
}

</mosaic_0001>

<bundles_post_ra>
// kernel: tile.1
= control target key start
LH: loop header
LB: loop body
LE: loop exit
PB: predicated region body
PF: predicated region fallthrough
CT: control target
= control target key end

     0   :  { %vm7_vm0 = vcmask 7168   ;;  %s37_s0 = inlined_call_operand.vmem [shape: f32[4,2], index: 0, kind: input, shape index: {}]   ;;  %s38_s1 = inlined_call_operand.vmem [shape: f32[8,1], index: 1, kind: output, shape index: {}]  }
   0x1   :  { %v4_v0 = vld [vmem:[%s37_s0] sm:$0xf]  ;;  %s17_s0 = smov 127  }
   0x2   :  { %5 = vst [vmem:[#allocation0] sm:$0xf] %v4_v0 }
   0x9   :  { %v9_v1 = vld [vmem:[#allocation0] sm:$0xf]  }
   0xa   :  { %v6_v2 = vld [vmem:[#allocation0] sm:$0xf]   ;;  %10 = vrot.lane.b32.xlu0 %v9_v1, %s17_s0 }
   0xb   :  { %8 = vst.msk [vmem:[%s38_s1] ss:$2 sm:$0xf] %vm7_vm0, %v6_v2  }
  0x7c   :  { %v11_v3 = vpop.permute.xlu0 %10  }
  0x7d   :  { %15 = vst.msk [vmem:[%s38_s1 + $0x1] ss:$2 sm:$0xf] %vm7_vm0, %v11_v3  }

// kernel: tile.43
= control target key start
LH: loop header
LB: loop body
LE: loop exit
PB: predicated region body
PF: predicated region fallthrough
CT: control target
= control target key end

     0   :  { %s22_s0 = inlined_call_operand.vmem [shape: f32[2], index: 0, kind: input, shape index: {}]   ;;  %s23_s1 = inlined_call_operand.vmem [shape: f32[4,2], index: 1, kind: output, shape index: {}]  }
   0x1   :  { %v4_v0 = vld [vmem:[%s22_s0] ss:$0 sm:$0xff] }
   0x2   :  { %5 = vst [vmem:[%s23_s1] sm:$0xf] %v4_v0 }

// kernel: _lambda_.1
= control target key start
LH: loop header
LB: loop body
LE: loop exit
PB: predicated region body
PF: predicated region fallthrough
CT: control target
= control target key end

     0   :  { %s4078_s9 = smov 0   ;;  %s4080_s10 = smov 0   ;;  %s5763_s0 = inlined_call_operand.vmem [shape: f32[2,16,4,256], index: 0, kind: input, shape index: {}, may-alias: {0,2}]   ;;  %s5764_s1 = inlined_call_operand.vmem [shape: f32[3,8,46], index: 1, kind: input, shape index: {}]   ;;  %s5765_s2 = inlined_call_operand.vmem [shape: f32[2,16,4,256], index: 2, kind: output, shape index: {}, may-alias: {0,2}]  }
   0x1   :  { %s4082_s11 = smov 0   ;;  %s4084_s12 = smov 0  }
   0x2   :  { %s4086_s13 = smov 0  }
   0x3 LB: > { %s21_s14 = sadd.s32 1, %s3952_s11  ;;  %s24_s15 = sadd.s32 1, %s3956_s12  ;;  %s3960_s13 = sphi %s4086_s13, %s12_s13   ;;  %s3956_s12 = sphi %s4084_s12, %s5829_s12   ;;  %s3952_s11 = sphi %s4082_s11, %s5828_s11   ;;  %s3948_s10 = sphi %s4080_s10, %s5827_s10   ;;  %s3944_s9 = sphi %s4078_s9, %s5826_s9  }
   0x4   : > { %p22_p0 = scmp.ge.s32.totalorder %s21_s14, 3  ;;  %p3541_p1 = scmp.ge.s32.totalorder %s3960_s13, 1 }
   0x5   : > { %p149_p2 = scmp.lt.s32.totalorder %s3960_s13, 7 }
   0x6   : > { %s5831_s14 = smov (%p22_p0, %s21_s14), 0  ;;  %s5833_s15 = smov (!%p22_p0, %s24_s15), %s3956_s12 }
   0x7   : > { %p150_p3 = pnand %p3541_p1, %p149_p2  ;;  %p26_p4 = scmp.ge.s32.totalorder %s5833_s15, 2 }
   0x9   : > { %s5835_s15 = smov (%p26_p4, %s5833_s15), 0  ;;  %153 = sbr.rel (%p150_p3) target bundleno = 1843 (0x733), region = 28 }
  0x10   : > { %p200_p5 = scmp.lt.s32.totalorder %s3944_s9, 2  ;;  %s3612_s16 = sshll.u32 %s3944_s9, 1  ;;  %v5766_v0 = vlaneseq  ;;  %v3962_v1 = vmov 0.0   ;;  %v3963_v3 = vmov 1966171168  }
  0x11   : > { %217 = vst [vmem:[#allocation2] sm:$0xf] %v3962_v1  ;;  %218 = vst [vmem:[#allocation2 + $0x8] sm:$0xf] %v3962_v1  ;;  %s3613_s17 = sadd.s32 10, %s3612_s16  ;;  %p189_p6 = scmp.lt.s32.totalorder %s3948_s10, 1  ;;  %v236_v4 = vunpack.c.l.s4 %v3963_v3 }
  0x12   : > { %219 = vst [vmem:[#allocation2 + $0x10] sm:$0xf] %v3962_v1  ;;  %220 = vst [vmem:[#allocation2 + $0x18] sm:$0xf] %v3962_v1  ;;  %s201_s18 = scalar_select %p200_p5, %s3944_s9, 2  ;;  %v365_v2 = vand.u32 127, %v5766_v0 }
  0x13   : > { %221 = vst [vmem:[#allocation2 + $0x20] sm:$0xf0] %v3962_v1  ;;  %222 = vst [vmem:[#allocation2 + $0x28] sm:$0xf0] %v3962_v1  ;;  %s5837_s10 = smov (!%p189_p6, %s3948_s10), 1  ;;  %p191_p7 = scmp.lt.s32.totalorder %s3613_s17, 15  ;;  %v237_v8 = vunpack.c.0.s8 %v236_v4 }
  0x14   : > { %223 = vst [vmem:[#allocation2 + $0x30] sm:$0xf0] %v3962_v1  ;;  %224 = vst [vmem:[#allocation2 + $0x38] sm:$0xf0] %v3962_v1  ;;  %s3546_s19 = sshll.u32 %s201_s18, 3  ;;  %v366_v5 = vadd.s32 128, %v365_v2 }
  0x15   : > { %225 = vst [vmem:[#allocation2] sm:$0xf0] %v3962_v1  ;;  %226 = vst [vmem:[#allocation2 + $0x20] sm:$0xf] %v3962_v1  ;;  %v4120_v6 = vand.u32 15, %v365_v2  ;;  %s4125_s22 = scalar_lea.vmem %s5764_s1, %s3546_s19  ;;  %s3544_s23 = sshll.u32 %s5837_s10, 5 }
  0x16   : > { %227 = vst [vmem:[#allocation2 + $0x18] sm:$0xf0] %v3962_v1  ;;  %228 = vst [vmem:[#allocation2 + $0x38] sm:$0xf] %v3962_v1  ;;  %s5839_s17 = smov (!%p191_p7, %s3613_s17), 15  ;;  %v4127_v7 = vand.u32 15, %v366_v5 }
  0x17   : > { %5785 = vst [vmem:[#allocation3_spill] sm:$0xff] %v4120_v6  ;;  %v239_v9 = vshrl.u32 %v5766_v0, 7  ;;  %s3543_s24 = sshll.u32 %s5839_s17, 1  ;;  %p3562_p8 = scmp.ne.s32.totalorder %s3944_s9, 0 }
  0x18   : > { %5786 = vst [vmem:[#allocation4_spill] sm:$0xff] %v4127_v7  ;;  %s195_s25 = sadd.s32 %s3544_s23, %s3543_s24 }
  0x19   : > { %s3545_s26 = sshll.u32 %s195_s25, 2  ;;  %v4138_v10 = vsub.s32 %v237_v8, %v239_v9 }
  0x1a   : > { %s197_s29 = scalar_lea.vmem %s5763_s0, %s3545_s26  ;;  %s4136_s4 = scalar_lea.vmem %s5765_s2, %s3545_s26 }
  0x1b   : > { %5787 = vst [vmem:[#allocation5_spill] sm:$0xff] %v4138_v10  ;;  %v229_v11 = vld [vmem:[%s197_s29] ss:$4 sm:$0x3] }
  0x1c   : > { %v3551_v12 = vld [vmem:[%s197_s29 + $0x8] ss:$4 sm:$0x3]  ;;  %v3552_v14 = vld [vmem:[%s197_s29 + $0x1] ss:$4 sm:$0x3] }
  0x1d   : > { %v234_v13 = vcombine.low %v229_v11, %v3551_v12  ;;  %v3553_v15 = vld [vmem:[%s197_s29 + $0x9] ss:$4 sm:$0x3]  ;;  %v3554_v17 = vld [vmem:[%s197_s29 + $0x2] ss:$4 sm:$0x3] }
  0x1e   : > { %v269_v16 = vcombine.low %v3552_v14, %v3553_v15  ;;  %v3555_v18 = vld [vmem:[%s197_s29 + $0xa] ss:$4 sm:$0x3]  ;;  %v3558_v21 = vld [vmem:[%s197_s29 + $0x3] ss:$4 sm:$0x3] }
  0x1f   : > { %v241_v19 = vrot.slane %v234_v13, %v4138_v10  ;;  %v304_v20 = vcombine.low %v3554_v17, %v3555_v18  ;;  %v3559_v22 = vld [vmem:[%s197_s29 + $0xb] ss:$4 sm:$0x3] }
  0x20   : > { %v276_v23 = vrot.slane %v269_v16, %v4138_v10  ;;  %v337_v24 = vcombine.low %v3558_v21, %v3559_v22 }
  0x21   : > { %v249_v25 = vrot.slane %v241_v19, %v4138_v10  ;;  %v242_v26 = vcombine.high %v241_v19, %v241_v19  ;;  %v311_v27 = vrot.slane %v304_v20, %v4138_v10 }
  0x22   : > { %v277_v28 = vcombine.low %v276_v23, %v276_v23  ;;  %v291_v29 = vrot.slane %v276_v23, %v4138_v10  ;;  %v344_v30 = vrot.slane %v337_v24, %v4138_v10  ;;  %394 = sbr.rel (%p3562_p8) target bundleno = 833 (0x341), region = 32 }
  0x23   : > { %v257_v31 = vcombine.low %v249_v25, %v249_v25  ;;  %v256_v32 = vrot.slane %v242_v26, %v4138_v10  ;;  %3556 = vst.sshfl [vmem:[#allocation2 + $0x28] sm:$0x5 pattern:$0x73625140] %v311_v27  ;;  %v312_v33 = vcombine.high %v311_v27, %v311_v27 }
  0x24   : > { %v284_v34 = vrot.slane %v277_v28, %v4138_v10  ;;  %v293_v35 = vcombine.low %v291_v29, %v291_v29  ;;  %v345_v36 = vcombine.low %v344_v30, %v344_v30  ;;  %3561 = vst.sshfl [vmem:[#allocation2 + $0x30] sm:$0x50 pattern:$0x73625140] %v344_v30 }
  0x25   : > { %261 = vst [vmem:[#allocation2 + $0x8] sm:$0x30] %v257_v31  ;;  %v258_v37 = vcombine.low %v256_v32, %v256_v32  ;;  %3557 = vst.sshfl [vmem:[#allocation2 + $0x30] sm:$0x5 pattern:$0x73625140] %v312_v33 }
  0x26   : > { %v292_v38 = vcombine.low %v284_v34, %v284_v34  ;;  %297 = vst [vmem:[#allocation2 + $0x10] sm:$0xc0] %v293_v35  ;;  %3560 = vst.sshfl [vmem:[#allocation2 + $0x28] sm:$0x50 pattern:$0x73625140] %v345_v36 }
  0x27   : > { %262 = vst [vmem:[#allocation2 + $0x10] sm:$0x30] %v258_v37 }
  0x28   : > { %296 = vst [vmem:[#allocation2 + $0x8] sm:$0xc0] %v292_v38 }
  0x29   : > { %v4150_v39 = vld [vmem:[%s4125_s22] sm:$0xff]  ;;  %v3964_v40 = vmov 2   ;;  %v3965_v41 = vmov 0   ;;  %v3966_v42 = vmov 3   ;;  %v3967_v43 = vmov 1   ;;  %s3995_s5 = smov 112  }
  0x2a   : > { %3759 = vset.pattern.permute.xlu1 %v3964_v40  ;;  %3757 = vset.pattern.permute.xlu0 %v3965_v41  ;;  %v3968_v44 = vmov 4   ;;  %v3969_v45 = vmov 14   ;;  %v3970_v46 = vmov 5   ;;  %v3971_v47 = vmov 12   ;;  %v4190_v16 = vld [vmem:[#allocation2] sm:$0xff]  ;;  %v476_v23 = vld [vmem:[#allocation2 + $0x18] sm:$0xff] }
  0x2b   : > { %421 = vperm.xlu1 %3759, %v4150_v39   ;;  %401 = vperm.xlu0 %3757, %v4150_v39   ;;  %v3972_v48 = vmov 8   ;;  %v3973_v49 = vmov 17   ;;  %v3974_v50 = vmov 6   ;;  %v3975_v51 = vmov 15   ;;  %s3996_s6 = smov 96   ;;  %s4010_s7 = smov 15  }
  0x2c   : > { %v3976_v52 = vmov 23   ;;  %v3977_v53 = vmov 21   ;;  %v3978_v54 = vmov 26   ;;  %v3979_v55 = vmov 32   ;;  %v4211_v35 = vld [vmem:[#allocation2 + $0x28] sm:$0x3] }
  0x2d   : > { %v3980_v56 = vmov 24   ;;  %v3981_v57 = vmov 33   ;;  %v3982_v58 = vmov 30   ;;  %v3983_v59 = vmov 44   ;;  %v4216_v40 = vld [vmem:[#allocation2 + $0x30] sm:$0x3] }
  0x2e   : > { %v3984_v60 = vmov 35   ;;  %v3985_v61 = vmov 9   ;;  %v3986_v62 = vmov 41   ;;  %v3987_v63 = vmov 39   ;;  %v4196_v19 = vld [vmem:[#allocation2 + $0x10] sm:$0xff]  ;;  %s4011_s8 = smov 17  }
  0x2f   : > { %3760 = vset.pattern.permute.xlu1 %v3966_v42  ;;  %3758 = vset.pattern.permute.xlu0 %v3967_v43  ;;  %v3988_v1 = vmov 42   ;;  %v3989_v2 = vmov 11   ;;  %v3990_v3 = vmov 20   ;;  %v3991_v4 = vmov 18   ;;  %v4186_v13 = vld [vmem:[#allocation2 + $0x8] sm:$0xff]  ;;  %s4015_s10 = smov 16  }
  0x30   : > { %431 = vperm.xlu1 %3760, %v4150_v39   ;;  %411 = vperm.xlu0 %3758, %v4150_v39   ;;  %v3992_v5 = vmov 29   ;;  %v3993_v8 = vmov 27   ;;  %v3994_v9 = vmov 38   ;;  %v4209_v34 = vld [vmem:[#allocation2 + $0x8] sm:$0xfc]  ;;  %vm597_vm0 = vcmask 1045504  }
  0x31   : > { %v4214_v38 = vld [vmem:[#allocation2 + $0x10] sm:$0xfc]  ;;  %vm936_vm1 = vcmask 1043456   ;;  %vm1275_vm2 = vcmask 1041408   ;;  %vm446_vm3 = vcmask 916480   ;;  %vm517_vm4 = vcmask 785408  }
  0x32   : > { %v4006_v7 = vmov 28   ;;  %vm1781_vm6 = vcmask 121856   ;;  %vm1816_vm10 = vcmask 138240   ;;  %vm1883_vm11 = vcmask 130048  }
  0x34   : > { %3761 = vset.pattern.permute.xlu0 %v3968_v44  ;;  %3763 = vset.pattern.permute.xlu1 %v3969_v45 }
  0x35   : > { %456 = vperm.xlu0 %3761, %v4150_v39   ;;  %754 = vperm.xlu1 %3763, %v4150_v39  }
  0x39   : > { %3762 = vset.pattern.permute.xlu0 %v3970_v46  ;;  %3765 = vset.pattern.permute.xlu1 %v3971_v47 }
  0x3a   : > { %478 = vperm.xlu0 %3762, %v4150_v39   ;;  %678 = vperm.xlu1 %3765, %v4150_v39  }
  0x3e   : > { %3764 = vset.pattern.permute.xlu0 %v3972_v48  ;;  %3766 = vset.pattern.permute.xlu1 %v3973_v49  ;;  %v4226_v48 = vld [vmem:[#allocation2] sm:$0xfc]  ;;  %v4228_v49 = vld [vmem:[#allocation2 + $0x20] sm:$0x3] }
  0x3f   : > { %551 = vperm.xlu0 %3764, %v4150_v39   ;;  %874 = vperm.xlu1 %3766, %v4150_v39  }
  0x43   : > { %3767 = vset.pattern.permute.xlu0 %v3974_v50  ;;  %3768 = vset.pattern.permute.xlu1 %v3975_v51  ;;  %v3997_v50 = vmov 13  }
  0x44   : > { %502 = vperm.xlu0 %3767, %v4150_v39   ;;  %794 = vperm.xlu1 %3768, %v4150_v39  }
  0x48   : > { %3769 = vset.pattern.permute.xlu1 %v3976_v52  ;;  %3770 = vset.pattern.permute.xlu0 %v3977_v53  ;;  %v4231_v52 = vld [vmem:[#allocation2 + $0x18] sm:$0xfc]  ;;  %v4233_v53 = vld [vmem:[#allocation2 + $0x38] sm:$0x3] }
  0x49   : > { %1093 = vperm.xlu1 %3769, %v4150_v39   ;;  %1017 = vperm.xlu0 %3770, %v4150_v39  }
  0x4d   : > { %3771 = vset.pattern.permute.xlu1 %v3978_v54  ;;  %3773 = vset.pattern.permute.xlu0 %v3979_v55 }
  0x4e   : > { %1213 = vperm.xlu1 %3771, %v4150_v39   ;;  %1432 = vperm.xlu0 %3773, %v4150_v39  }
  0x52   : > { %3772 = vset.pattern.permute.xlu1 %v3980_v56  ;;  %3776 = vset.pattern.permute.xlu0 %v3981_v57 }
  0x53   : > { %1133 = vperm.xlu1 %3772, %v4150_v39   ;;  %1472 = vperm.xlu0 %3776, %v4150_v39  }
  0x57   : > { %3774 = vset.pattern.permute.xlu1 %v3982_v58  ;;  %3779 = vset.pattern.permute.xlu0 %v3983_v59 }
  0x58   : > { %1356 = vperm.xlu1 %3774, %v4150_v39   ;;  %1743 = vperm.xlu0 %3779, %v4150_v39  }
  0x5c   : > { %3775 = vset.pattern.permute.xlu1 %v3984_v60  ;;  %3782 = vset.pattern.permute.xlu0 %v3985_v61 }
  0x5d   : > { %1552 = vperm.xlu1 %3775, %v4150_v39   ;;  %581 = vperm.xlu0 %3782, %v4150_v39  }
  0x61   : > { %3777 = vset.pattern.permute.xlu1 %v3986_v62  ;;  %3789 = vset.pattern.permute.xlu0 %v3997_v50 }
  0x62   : > { %1671 = vperm.xlu1 %3777, %v4150_v39  }
  0x66   : > { %3778 = vset.pattern.permute.xlu1 %v3987_v63 }
  0x67   : > { %1625 = vperm.xlu1 %3778, %v4150_v39  }
  0x6b   : > { %3780 = vset.pattern.permute.xlu1 %v3988_v1  ;;  %v4242_v1 = vld [vmem:[#allocation2 + $0x8] sm:$0xfc] }
  0x6c   : > { %1695 = vperm.xlu1 %3780, %v4150_v39  }
  0x70   : > { %3781 = vset.pattern.permute.xlu1 %v3989_v2  ;;  %v4244_v2 = vld [vmem:[#allocation2 + $0x28] sm:$0x3] }
  0x71   : > { %646 = vperm.xlu1 %3781, %v4150_v39  }
  0x75   : > { %3783 = vset.pattern.permute.xlu1 %v3990_v3 }
  0x76   : > { %985 = vperm.xlu1 %3783, %v4150_v39  }
  0x7a   : > { %3784 = vset.pattern.permute.xlu1 %v3991_v4 }
  0x7b   : > { %920 = vperm.xlu1 %3784, %v4150_v39  }
  0x7f   : > { %3785 = vset.pattern.permute.xlu1 %v3992_v5  ;;  %v4248_v5 = vld [vmem:[#allocation2 + $0x10] sm:$0xfc] }
  0x80   : > { %1324 = vperm.xlu1 %3785, %v4150_v39  }
  0x84   : > { %3786 = vset.pattern.permute.xlu1 %v3993_v8  ;;  %v4250_v8 = vld [vmem:[#allocation2 + $0x30] sm:$0x3] }
  0x85   : > { %1259 = vperm.xlu1 %3786, %v4150_v39  }
  0x89   : > { %3787 = vset.pattern.permute.xlu1 %v3994_v9 }
  0xaa   : > { %v4182_v11 = vpop.permute.xlu1 %421  ;;  %v4184_v12 = vpop.permute.xlu0 %401 }
  0xab   : > { %v426_v6 = vmul.f32 %v4182_v11, %v4196_v19 }
  0xaf   : > { %v432_v14 = vpop.permute.xlu1 %431  ;;  %v4188_v15 = vpop.permute.xlu0 %411 }
  0xb0   : > { %5788 = vst [vmem:[#allocation6_spill] sm:$0xff] %v4188_v15  ;;  %v435_v17 = vmul.f32 %v432_v14, %v4186_v13  ;;  %v434_v18 = vmul.f32 %v432_v14, %v4190_v16  ;;  %v436_v21 = vmul.f32 %v432_v14, %v4196_v19 }
  0xb2   : > { %442 = vrot.lane.b32.xlu0 %v435_v17, %s3995_s5  ;;  %440 = vrot.lane.b32.xlu1 %v434_v18, %s3995_s5 }
  0xb4   : > { %v457_v20 = vpop.permute.xlu0 %456  ;;  %v755_v29 = vpop.permute.xlu1 %754 }
  0xb5   : > { %v459_v22 = vmul.f32 %v457_v20, %v4186_v13  ;;  %v460_v26 = vmul.f32 %v457_v20, %v4196_v19  ;;  %v756_v32 = vrot.slane %v755_v29, 6 }
  0xb6   : > { %444 = vrot.lane.b32.xlu1 %v436_v21, %s3995_s5 }
  0xb7   : > { %v758_v43 = vmul.f32 %v756_v32, %v4209_v34  ;;  %v761_v44 = vmul.f32 %v756_v32, %v4211_v35  ;;  %v759_v46 = vmul.f32 %v756_v32, %v4214_v38  ;;  %v762_v47 = vmul.f32 %v756_v32, %v4216_v40 }
  0xb8   : > { %v760_v62 = vmul.f32 %v756_v32, %v4231_v52  ;;  %v763_v63 = vmul.f32 %v756_v32, %v4233_v53 }
  0xb9   : > { %v479_v24 = vpop.permute.xlu0 %478  ;;  %v679_v37 = vpop.permute.xlu1 %678  ;;  %v770_v55 = vrot.slane %v758_v43, 2  ;;  %v771_v56 = vrot.slane %v761_v44, 2  ;;  %v773_v58 = vrot.slane %v759_v46, 2  ;;  %v774_v59 = vrot.slane %v762_v47, 2 }
  0xba   : > { %463 = vrot.lane.b32.xlu1 %v459_v22, %s3995_s5  ;;  %v483_v25 = vmul.f32 %v479_v24, %v476_v23  ;;  %v481_v28 = vmul.f32 %v479_v24, %v4186_v13  ;;  %v482_v36 = vmul.f32 %v479_v24, %v4196_v19  ;;  %v680_v45 = vrot.slane %v679_v37, 6 }
  0xbb   : > { %v772_v3 = vsel %vm597_vm0, %v770_v55, %v771_v56  ;;  %v775_v9 = vsel %vm597_vm0, %v773_v58, %v774_v59  ;;  %v776_v18 = vrot.slane %v760_v62, 2  ;;  %v777_v20 = vrot.slane %v763_v63, 2 }
  0xbc   : > { %491 = vrot.lane.b32.xlu0 %v483_v25, %s3995_s5  ;;  %v682_v60 = vmul.f32 %v680_v45, %v4226_v48  ;;  %v685_v61 = vmul.f32 %v680_v45, %v4228_v49  ;;  %v683_v21 = vmul.f32 %v680_v45, %v4242_v1  ;;  %v686_v22 = vmul.f32 %v680_v45, %v4244_v2 }
  0xbd   : > { %v684_v24 = vmul.f32 %v680_v45, %v4248_v5  ;;  %v687_v25 = vmul.f32 %v680_v45, %v4250_v8  ;;  %v778_v32 = vsel %vm597_vm0, %v776_v18, %v777_v20 }
  0xbe   : > { %v552_v27 = vpop.permute.xlu0 %551  ;;  %465 = vrot.lane.b32.xlu1 %v460_v26, %s3995_s5  ;;  %v875_v57 = vpop.permute.xlu1 %874  ;;  %v694_v14 = vrot.slane %v682_v60, 2  ;;  %v695_v17 = vrot.slane %v685_v61, 2  ;;  %v4279_v61 = vld [vmem:[#allocation2 + $0x28] sm:$0xf] }
  0xbf   : > { %v554_v30 = vmul.f32 %v552_v27, %v4186_v13  ;;  %v556_v31 = vmul.f32 %v552_v27, %v476_v23  ;;  %v555_v42 = vmul.f32 %v552_v27, %v4196_v19  ;;  %v876_v4 = vrot.slane %v875_v57, 6 }
  0xc0   : > { %v700_v37 = vrot.slane %v684_v24, 2 }
  0xc1   : > { %560 = vrot.lane.b32.xlu0 %v554_v30, %s3996_s6  ;;  %v878_v26 = vmul.f32 %v876_v4, %v4209_v34  ;;  %v881_v27 = vmul.f32 %v876_v4, %v4211_v35  ;;  %v879_v30 = vmul.f32 %v876_v4, %v4214_v38  ;;  %v883_v55 = vmul.f32 %v876_v4, %v4233_v53 }
  0xc2   : > { %487 = vrot.lane.b32.xlu1 %v481_v28, %s3995_s5  ;;  %v696_v28 = vsel %vm597_vm0, %v694_v14, %v695_v17  ;;  %v4283_v14 = vld [vmem:[#allocation2 + $0x10] sm:$0xf0]  ;;  %v4285_v17 = vld [vmem:[#allocation2 + $0x30] sm:$0xf] }
  0xc3   : > { %v503_v33 = vpop.permute.xlu0 %502  ;;  %v891_v43 = vrot.slane %v881_v27, 2  ;;  %v893_v44 = vrot.slane %v879_v30, 2  ;;  %v897_v63 = vrot.slane %v883_v55, 2 }
  0xc4   : > { %v505_v41 = vmul.f32 %v503_v33, %v4186_v13  ;;  %v507_v51 = vmul.f32 %v503_v33, %v476_v23  ;;  %v506_v54 = vmul.f32 %v503_v33, %v4196_v19  ;;  %v795_v23 = vpop.permute.xlu1 %794  ;;  %v697_v33 = vrot.slane %v683_v21, 2 }
  0xc5   : > { %564 = vrot.lane.b32.xlu0 %v556_v31, %s3996_s6  ;;  %v796_v29 = vrot.slane %v795_v23, 6  ;;  %v882_v31 = vmul.f32 %v876_v4, %v4216_v40 }
  0xc6   : > { %489 = vrot.lane.b32.xlu1 %v482_v36, %s3995_s5  ;;  %v698_v36 = vrot.slane %v686_v22, 2 }
  0xc7   : > { %v894_v45 = vrot.slane %v882_v31, 2  ;;  %v798_v47 = vmul.f32 %v796_v29, %v4209_v34  ;;  %v801_v50 = vmul.f32 %v796_v29, %v4211_v35  ;;  %v4277_v35 = vld [vmem:[#allocation2 + $0x8] sm:$0xf0]  ;;  %v800_v18 = vmul.f32 %v796_v29, %v4231_v52  ;;  %v4302_v31 = vld [vmem:[#allocation2 + $0x18] sm:$0xf0] }
  0xc8   : > { %v1094_v46 = vpop.permute.xlu1 %1093  ;;  %v803_v20 = vmul.f32 %v796_v29, %v4233_v53  ;;  %v4299_v53 = vld [vmem:[#allocation2 + $0x20] sm:$0xf] }
  0xc9   : > { %511 = vrot.lane.b32.xlu0 %v505_v41, %s3996_s6  ;;  %v701_v41 = vrot.slane %v687_v25, 2  ;;  %v1095_v58 = vrot.slane %v1094_v46, 4  ;;  %v895_v59 = vsel %vm597_vm0, %v893_v44, %v894_v45  ;;  %v810_v34 = vrot.slane %v798_v47, 2 }
  0xca   : > { %562 = vrot.lane.b32.xlu1 %v555_v42, %s3996_s6  ;;  %v890_v42 = vrot.slane %v878_v26, 2  ;;  %v811_v60 = vrot.slane %v801_v50, 2  ;;  %v817_v30 = vrot.slane %v803_v20, 2 }
  0xcb   : > { %v702_v56 = vsel %vm597_vm0, %v700_v37, %v701_v41  ;;  %v1097_v21 = vmul.f32 %v1095_v58, %v4277_v35  ;;  %v1100_v22 = vmul.f32 %v1095_v58, %v4279_v61  ;;  %v1098_v23 = vmul.f32 %v1095_v58, %v4283_v14 }
  0xcc   : > { %v892_v57 = vsel %vm597_vm0, %v890_v42, %v891_v43  ;;  %v1101_v24 = vmul.f32 %v1095_v58, %v4285_v17  ;;  %v1099_v45 = vmul.f32 %v1095_v58, %v4302_v31 }
  0xcd   : > { %515 = vrot.lane.b32.xlu0 %v507_v51, %s3996_s6  ;;  %v699_v51 = vsel %vm597_vm0, %v697_v33, %v698_v36  ;;  %v1109_v33 = vrot.slane %v1097_v21, 4  ;;  %v1110_v36 = vrot.slane %v1100_v22, 4  ;;  %v1112_v37 = vrot.slane %v1098_v23, 4 }
  0xce   : > { %513 = vrot.lane.b32.xlu1 %v506_v54, %s3996_s6  ;;  %v880_v54 = vmul.f32 %v876_v4, %v4231_v52  ;;  %v802_v4 = vmul.f32 %v796_v29, %v4216_v40  ;;  %v1214_v52 = vpop.permute.xlu1 %1213  ;;  %v1113_v41 = vrot.slane %v1101_v24, 4 }
  0xcf   : > { %v1111_v55 = vsel %vm936_vm1, %v1109_v33, %v1110_v36 }
  0xd0   : > { %v896_v62 = vrot.slane %v880_v54, 2  ;;  %v814_v27 = vrot.slane %v802_v4, 2  ;;  %v4316_v54 = vld [vmem:[#allocation2 + $0x28] sm:$0xf] }
  0xd1   : > { %779 = vrot.lane.b32.xlu0 %v772_v3, %s3995_s5  ;;  %v799_v3 = vmul.f32 %v796_v29, %v4214_v38  ;;  %v812_v38 = vsel %vm597_vm0, %v810_v34, %v811_v60  ;;  %v816_v29 = vrot.slane %v800_v18, 2 }
  0xd2   : > { %781 = vrot.lane.b32.xlu1 %v775_v9, %s3995_s5  ;;  %v1018_v9 = vpop.permute.xlu0 %1017  ;;  %v898_v25 = vsel %vm597_vm0, %v896_v62, %v897_v63  ;;  %v1134_v47 = vpop.permute.xlu1 %1133  ;;  %v1115_v62 = vrot.slane %v1099_v45, 4 }
  0xd3   : > { %v1019_v40 = vrot.slane %v1018_v9, 4  ;;  %v813_v26 = vrot.slane %v799_v3, 2  ;;  %v818_v50 = vsel %vm597_vm0, %v816_v29, %v817_v30  ;;  %v1135_v29 = vrot.slane %v1134_v47, 4 }
  0xd5   : > { %783 = vrot.lane.b32.xlu0 %v778_v32, %s3995_s5  ;;  %v4304_v32 = vld [vmem:[#allocation2 + $0x38] sm:$0xf]  ;;  %v1024_v43 = vmul.f32 %v1019_v40, %v4299_v53  ;;  %v815_v44 = vsel %vm597_vm0, %v813_v26, %v814_v27  ;;  %v1025_v4 = vmul.f32 %v1019_v40, %v4316_v54  ;;  %v1137_v47 = vmul.f32 %v1135_v29, %v4277_v35 }
  0xd6   : > { %703 = vrot.lane.b32.xlu1 %v696_v28, %s3995_s5  ;;  %v4297_v28 = vld [vmem:[#allocation2] sm:$0xf0]  ;;  %v1102_v46 = vmul.f32 %v1095_v58, %v4304_v32  ;;  %v1114_v58 = vsel %vm936_vm1, %v1112_v37, %v1113_v41 }
  0xd7   : > { %v1021_v42 = vmul.f32 %v1019_v40, %v4297_v28  ;;  %v1034_v60 = vrot.slane %v1024_v43, 4  ;;  %v4327_v9 = vpop.permute.xlu1 %1356  ;;  %v1037_v27 = vrot.slane %v1025_v4, 4  ;;  %v1149_v4 = vrot.slane %v1137_v47, 4 }
  0xd8   : > { %v1116_v63 = vrot.slane %v1102_v46, 4 }
  0xd9   : > { %705 = vrot.lane.b32.xlu0 %v699_v51, %s3995_s5  ;;  %v4314_v51 = vld [vmem:[#allocation2 + $0x8] sm:$0xf0]  ;;  %v1033_v34 = vrot.slane %v1021_v42, 4 }
  0xda   : > { %707 = vrot.lane.b32.xlu1 %v702_v56, %s3995_s5  ;;  %v1215_v56 = vrot.slane %v1214_v52, 4  ;;  %v1022_v3 = vmul.f32 %v1019_v40, %v4314_v51 }
  0xdc   : > { %v1217_v21 = vmul.f32 %v1215_v56, %v4277_v35  ;;  %v1220_v22 = vmul.f32 %v1215_v56, %v4279_v61  ;;  %v1218_v23 = vmul.f32 %v1215_v56, %v4283_v14  ;;  %v1221_v24 = vmul.f32 %v1215_v56, %v4285_v17  ;;  %v4341_v36 = vpop.permute.xlu1 %1552 }
  0xdd   : > { %899 = vrot.lane.b32.xlu0 %v892_v57, %s3996_s6  ;;  %v4320_v57 = vld [vmem:[#allocation2 + $0x10] sm:$0xf0]  ;;  %v1036_v26 = vrot.slane %v1022_v3, 4  ;;  %v1219_v43 = vmul.f32 %v1215_v56, %v4302_v31 }
  0xde   : > { %901 = vrot.lane.b32.xlu1 %v895_v59, %s3996_s6  ;;  %v4322_v59 = vld [vmem:[#allocation2 + $0x30] sm:$0xf]  ;;  %v1023_v18 = vmul.f32 %v1019_v40, %v4320_v57  ;;  %v1229_v30 = vrot.slane %v1217_v21, 4  ;;  %v1230_v33 = vrot.slane %v1220_v22, 4  ;;  %v1232_v37 = vrot.slane %v1218_v23, 4 }
  0xdf   : > { %v1026_v20 = vmul.f32 %v1019_v40, %v4322_v59  ;;  %v1233_v41 = vrot.slane %v1221_v24, 4  ;;  %v1038_v42 = vsel %vm936_vm1, %v1036_v26, %v1037_v27  ;;  %v4361_v21 = vld [vmem:[#allocation2 + $0x28] sm:$0x3f]  ;;  %v1142_v22 = vmul.f32 %v1135_v29, %v4304_v32  ;;  %v4368_v23 = vld [vmem:[#allocation2 + $0x30] sm:$0x3f] }
  0xe0   : > { %v1039_v52 = vrot.slane %v1023_v18, 4  ;;  %v1231_v46 = vsel %vm936_vm1, %v1229_v30, %v1230_v33  ;;  %v4380_v30 = vld [vmem:[#allocation2 + $0x18] sm:$0xc0]  ;;  %v1358_v33 = vrot.slane %v4327_v9, 2 }
  0xe1   : > { %903 = vrot.lane.b32.xlu0 %v898_v25, %s3996_s6  ;;  %v1117_v25 = vsel %vm936_vm1, %v1115_v62, %v1116_v63  ;;  %v1040_v40 = vrot.slane %v1026_v20, 4  ;;  %v4355_v63 = vpop.permute.xlu1 %1671  ;;  %v4359_v20 = vld [vmem:[#allocation2 + $0x8] sm:$0xc0] }
  0xe2   : > { %819 = vrot.lane.b32.xlu1 %v812_v38, %s3996_s6  ;;  %v1035_v38 = vsel %vm936_vm1, %v1033_v34, %v1034_v60  ;;  %v1138_v34 = vmul.f32 %v1135_v29, %v4283_v14  ;;  %v1141_v60 = vmul.f32 %v1135_v29, %v4285_v17  ;;  %v1139_v17 = vmul.f32 %v1135_v29, %v4302_v31 }
  0xe3   : > { %v1041_v45 = vsel %vm936_vm1, %v1039_v52, %v1040_v40 }
  0xe4   : > { %v1152_v18 = vrot.slane %v1138_v34, 4  ;;  %v1155_v40 = vrot.slane %v1139_v17, 4 }
  0xe5   : > { %821 = vrot.lane.b32.xlu0 %v815_v44, %s3996_s6  ;;  %v1222_v44 = vmul.f32 %v1215_v56, %v4304_v32  ;;  %v1235_v56 = vrot.slane %v1219_v43, 4  ;;  %v4387_v43 = vld [vmem:[#allocation2] sm:$0xc0] }
  0xe6   : > { %823 = vrot.lane.b32.xlu1 %v818_v50, %s3996_s6  ;;  %v1140_v50 = vmul.f32 %v1135_v29, %v4279_v61  ;;  %v1153_v61 = vrot.slane %v1141_v60, 4  ;;  %v4375_v27 = vpop.permute.xlu1 %1625  ;;  %v1156_v29 = vrot.slane %v1142_v22, 4  ;;  %v1360_v34 = vmul.f32 %v1358_v33, %v4387_v43 }
  0xe7   : > { %v1236_v62 = vrot.slane %v1222_v44, 4  ;;  %v4389_v44 = vld [vmem:[#allocation2 + $0x20] sm:$0x3f] }
  0xe8   : > { %v1150_v35 = vrot.slane %v1140_v50, 4  ;;  %v1154_v31 = vsel %vm936_vm1, %v1152_v18, %v1153_v61  ;;  %v1157_v9 = vsel %vm936_vm1, %v1155_v40, %v1156_v29  ;;  %v1363_v60 = vmul.f32 %v1358_v33, %v4389_v44  ;;  %v4407_v18 = vld [vmem:[#allocation2 + $0x30] sm:$0x3f] }
  0xe9   : > { %1118 = vrot.lane.b32.xlu0 %v1111_v55, %s3995_s5  ;;  %v1234_v55 = vsel %vm936_vm1, %v1232_v37, %v1233_v41  ;;  %v1237_v14 = vsel %vm936_vm1, %v1235_v56, %v1236_v62  ;;  %v4384_v37 = vld [vmem:[#allocation2 + $0x38] sm:$0x3f]  ;;  %v4399_v56 = vld [vmem:[#allocation2 + $0x8] sm:$0xc0]  ;;  %v4401_v62 = vld [vmem:[#allocation2 + $0x28] sm:$0x3f] }
  0xea   : > { %1120 = vrot.lane.b32.xlu1 %v1114_v58, %s3995_s5  ;;  %v1433_v58 = vpop.permute.xlu0 %1432  ;;  %v1151_v24 = vsel %vm936_vm1, %v1149_v4, %v1150_v35  ;;  %v4403_v4 = vld [vmem:[#allocation2 + $0x10] sm:$0xc0]  ;;  %v1361_v22 = vmul.f32 %v1358_v33, %v4399_v56 }
  0xeb   : > { %v1434_v3 = vrot.slane %v1433_v58, 2  ;;  %v4394_v58 = vpop.permute.xlu1 %1695 }
  0xed   : > { %1122 = vrot.lane.b32.xlu0 %v1117_v25, %s3995_s5  ;;  %v1436_v25 = vmul.f32 %v1434_v3, %v4359_v20  ;;  %v1439_v26 = vmul.f32 %v1434_v3, %v4361_v21  ;;  %v1440_v52 = vmul.f32 %v1434_v3, %v4368_v23  ;;  %v1438_v50 = vmul.f32 %v1434_v3, %v4380_v30 }
  0xee   : > { %1042 = vrot.lane.b32.xlu1 %v1035_v38, %s3995_s5  ;;  %v4366_v38 = vld [vmem:[#allocation2 + $0x10] sm:$0xc0] }
  0xef   : > { %v1437_v32 = vmul.f32 %v1434_v3, %v4366_v38  ;;  %v1448_v41 = vrot.slane %v1436_v25, 6  ;;  %v1452_v47 = vrot.slane %v1440_v52, 6  ;;  %v1473_v25 = vpop.permute.xlu0 %1472  ;;  %v1365_v52 = vmul.f32 %v1358_v33, %v4407_v18 }
  0xf0   : > { %v1474_v40 = vrot.slane %v1473_v25, 2 }
  0xf1   : > { %1044 = vrot.lane.b32.xlu0 %v1038_v42, %s3995_s5  ;;  %v1449_v42 = vrot.slane %v1439_v26, 6  ;;  %v1362_v26 = vmul.f32 %v1358_v33, %v4403_v4 }
  0xf2   : > { %1046 = vrot.lane.b32.xlu1 %v1041_v45, %s3995_s5  ;;  %v3998_v45 = vmov 36  }
  0xf3   : > { %v1450_v35 = vsel %vm1275_vm2, %v1448_v41, %v1449_v42  ;;  %v3999_v42 = vmov 7  }
  0xf5   : > { %1238 = vrot.lane.b32.xlu0 %v1231_v46, %s3996_s6  ;;  %v1451_v46 = vrot.slane %v1437_v32, 6  ;;  %v1373_v32 = vrot.slane %v1363_v60, 6 }
  0xf6   : > { %1240 = vrot.lane.b32.xlu1 %v1234_v55, %s3996_s6  ;;  %v1441_v55 = vmul.f32 %v1434_v3, %v4384_v37  ;;  %v1554_v3 = vrot.slane %v4341_v36, 2  ;;  %v4417_v36 = vpop.permute.xlu1 %646 }
  0xf7   : > { %v1453_v61 = vsel %vm1275_vm2, %v1451_v46, %v1452_v47  ;;  %v1375_v46 = vrot.slane %v1361_v22, 6 }
  0xf8   : > { %v1455_v17 = vrot.slane %v1441_v55, 6  ;;  %v1556_v29 = vmul.f32 %v1554_v3, %v4359_v20  ;;  %v1559_v41 = vmul.f32 %v1554_v3, %v4361_v21  ;;  %v1557_v55 = vmul.f32 %v1554_v3, %v4366_v38 }
  0xf9   : > { %1242 = vrot.lane.b32.xlu0 %v1237_v14, %s3996_s6  ;;  %v1454_v14 = vrot.slane %v1438_v50, 6  ;;  %v1378_v50 = vrot.slane %v1362_v26, 6  ;;  %v1561_v25 = vmul.f32 %v1554_v3, %v4384_v37 }
  0xfa   : > { %1615 = vperm.xlu1 %3787, %v4150_v39   ;;  %v1568_v60 = vrot.slane %v1556_v29, 6  ;;  %v4430_v22 = vpop.permute.xlu1 %985 }
  0xfd   : > { %1158 = vrot.lane.b32.xlu0 %v1151_v24, %s3996_s6  ;;  %v1364_v24 = vmul.f32 %v1358_v33, %v4401_v62 }
  0xfe   : > { %1160 = vrot.lane.b32.xlu1 %v1154_v31, %s3996_s6  ;;  %v1372_v31 = vrot.slane %v1360_v34, 6  ;;  %v1560_v34 = vmul.f32 %v1554_v3, %v4368_v23 }
  0xff   : > { %3788 = vset.pattern.permute.xlu1 %v3998_v45  ;;  %v1456_v45 = vsel %vm1275_vm2, %v1454_v14, %v1455_v17  ;;  %v1376_v47 = vrot.slane %v1364_v24, 6  ;;  %v1479_v14 = vmul.f32 %v1474_v40, %v4361_v21  ;;  %v1558_v24 = vmul.f32 %v1554_v3, %v4380_v30 }
 0x100   : > { %v1374_v33 = vsel %vm1275_vm2, %v1372_v31, %v1373_v32  ;;  %v1571_v31 = vrot.slane %v1557_v55, 6  ;;  %v1572_v32 = vrot.slane %v1560_v34, 6 }
 0x101   : > { %1162 = vrot.lane.b32.xlu0 %v1157_v9, %s3996_s6  ;;  %v1379_v9 = vrot.slane %v1365_v52, 6  ;;  %v1377_v17 = vsel %vm1275_vm2, %v1375_v46, %v1376_v47  ;;  %v1489_v21 = vrot.slane %v1479_v14, 6  ;;  %v1574_v29 = vrot.slane %v1558_v24, 6  ;;  %v4463_v14 = vld [vmem:[#allocation2 + $0x38] sm:$0xff]  ;;  %v4468_v24 = vld [vmem:[#allocation2 + $0x20] sm:$0xff] }
 0x102   : > { %1595 = vperm.xlu1 %3788, %v4150_v39   ;;  %v1573_v3 = vsel %vm1275_vm2, %v1571_v31, %v1572_v32  ;;  %v1478_v46 = vmul.f32 %v1474_v40, %v4380_v30  ;;  %v1481_v47 = vmul.f32 %v1474_v40, %v4384_v37  ;;  %5789 = vst [vmem:[#allocation7_spill] sm:$0xff] %v4463_v14  ;;  %5790 = vst [vmem:[#allocation8_spill] sm:$0xff] %v4468_v24 }
 0x103   : > { %v1380_v26 = vsel %vm1275_vm2, %v1378_v50, %v1379_v9  ;;  %v4445_v50 = vpop.permute.xlu1 %920  ;;  %v1676_v31 = vmul.f32 %v4355_v63, %v4463_v14  ;;  %v1628_v32 = vmul.f32 %v4375_v27, %v4468_v24 }
 0x104   : > { %v1495_v34 = vrot.slane %v1481_v47, 6 }
 0x105   : > { %1457 = vrot.lane.b32.xlu0 %v1450_v35, %s3995_s5  ;;  %v1569_v35 = vrot.slane %v1559_v41, 6  ;;  %v1575_v41 = vrot.slane %v1561_v25, 6  ;;  %v1744_v25 = vpop.permute.xlu0 %1743 }
 0x106   : > { %1459 = vrot.lane.b32.xlu1 %v1453_v61, %s3995_s5  ;;  %v1476_v61 = vmul.f32 %v1474_v40, %v4359_v20 }
 0x107   : > { %3790 = vset.pattern.permute.xlu1 %v3999_v42  ;;  %v1570_v20 = vsel %vm1275_vm2, %v1568_v60, %v1569_v35  ;;  %v1477_v42 = vmul.f32 %v1474_v40, %v4366_v38  ;;  %v1576_v9 = vsel %vm1275_vm2, %v1574_v29, %v1575_v41  ;;  %v4451_v60 = vld [vmem:[#allocation2 + $0x28] sm:$0xff]  ;;  %v4454_v37 = vpop.permute.xlu1 %1324  ;;  %v4458_v35 = vld [vmem:[#allocation2 + $0x30] sm:$0xff] }
 0x108   : > { %v1488_v52 = vrot.slane %v1476_v61, 6  ;;  %v1674_v61 = vmul.f32 %v4355_v63, %v4451_v60  ;;  %v1630_v29 = vmul.f32 %v4458_v35, %v4375_v27  ;;  %v1746_v41 = vmul.f32 %v1744_v25, %v4451_v60 }
 0x109   : > { %1461 = vrot.lane.b32.xlu0 %v1456_v45, %s3995_s5  ;;  %v1480_v45 = vmul.f32 %v1474_v40, %v4368_v23  ;;  %v1491_v55 = vrot.slane %v1477_v42, 6  ;;  %v1494_v23 = vrot.slane %v1478_v46, 6 }
 0x10a   : > { %1381 = vrot.lane.b32.xlu1 %v1374_v33, %s3995_s5  ;;  %v1490_v33 = vsel %vm1275_vm2, %v1488_v52, %v1489_v21  ;;  %v582_v52 = vpop.permute.xlu0 %581 }
 0x10b   : > { %v1492_v38 = vrot.slane %v1480_v45, 6  ;;  %v1496_v40 = vsel %vm1275_vm2, %v1494_v23, %v1495_v34  ;;  %v648_v34 = vrot.slane %v4417_v36, 6  ;;  %v4520_v36 = vrot.slane %v582_v52, 6 }
 0x10d   : > { %1383 = vrot.lane.b32.xlu0 %v1377_v17, %s3995_s5  ;;  %v1493_v30 = vsel %vm1275_vm2, %v1491_v55, %v1492_v38  ;;  %v1675_v17 = vmul.f32 %v4355_v63, %v4458_v35  ;;  %v1747_v63 = vmul.f32 %v1744_v25, %v4458_v35  ;;  %v588_v52 = vmul.f32 %v4520_v36, %v4228_v49 }
 0x10e   : > { %1385 = vrot.lane.b32.xlu1 %v1380_v26, %s3995_s5  ;;  %v4471_v26 = vpop.permute.xlu1 %1259 }
 0x111   : > { %1577 = vrot.lane.b32.xlu0 %v1570_v20, %s3996_s6  ;;  %v1629_v20 = vmul.f32 %v4451_v60, %v4375_v27  ;;  %v1698_v27 = vmul.f32 %v4394_v58, %v4451_v60 }
 0x112   : > { %1579 = vrot.lane.b32.xlu1 %v1573_v3, %s3996_s6  ;;  %v1748_v3 = vmul.f32 %v1744_v25, %v4463_v14  ;;  %v4000_v25 = vmov 22  }
 0x115   : > { %1581 = vrot.lane.b32.xlu0 %v1576_v9, %s3996_s6  ;;  %v1700_v9 = vmul.f32 %v4394_v58, %v4463_v14 }
 0x116   : > { %1497 = vrot.lane.b32.xlu1 %v1490_v33, %s3996_s6  ;;  %v1699_v33 = vmul.f32 %v4394_v58, %v4458_v35 }
 0x119   : > { %1499 = vrot.lane.b32.xlu0 %v1493_v30, %s3996_s6 }
 0x11a   : > { %1501 = vrot.lane.b32.xlu1 %v1496_v40, %s3996_s6  ;;  %v424_v40 = vmul.f32 %v4182_v11, %v4190_v16 }
 0x11d   : > { %1680 = vrot.lane.b32.xlu0 %v1674_v61, %s3995_s5  ;;  %v650_v61 = vmul.f32 %v648_v34, %v4226_v48 }
 0x11e   : > { %1682 = vrot.lane.b32.xlu1 %v1675_v17, %s3995_s5  ;;  %v653_v17 = vmul.f32 %v648_v34, %v4228_v49  ;;  %v4004_v49 = vmov 10  }
 0x121   : > { %1684 = vrot.lane.b32.xlu0 %v1676_v31, %s3995_s5 }
 0x122   : > { %1634 = vrot.lane.b32.xlu1 %v1628_v32, %s3995_s5  ;;  %v4001_v32 = vmov 16  }
 0x124   : > { %v441_v21 = vpop.permute.xlu1 %440  ;;  %v4490_v45 = vpop.permute.xlu0 %442 }
 0x125   : > { %1636 = vrot.lane.b32.xlu0 %v1629_v20, %s3995_s5 }
 0x126   : > { %1638 = vrot.lane.b32.xlu1 %v1630_v29, %s3995_s5 }
 0x128   : > { %v4487_v42 = vpop.permute.xlu1 %444 }
 0x129   : > { %1752 = vrot.lane.b32.xlu0 %v1746_v41, %s3996_s6  ;;  %v662_v41 = vrot.slane %v650_v61, 2 }
 0x12a   : > { %1754 = vrot.lane.b32.xlu1 %v1747_v63, %s3996_s6  ;;  %v663_v63 = vrot.slane %v653_v17, 2  ;;  %v447_v17 = vsel %vm446_vm3, %v441_v21, %v4490_v45 }
 0x12c   : > { %v4496_v46 = vpop.permute.xlu1 %463  ;;  %v664_v61 = vsel %vm597_vm0, %v662_v41, %v663_v63  ;;  %v4544_v41 = vld [vmem:[%s4125_s22] sm:$0xff]  ;;  %v654_v63 = vmul.f32 %v648_v34, %v4244_v2 }
 0x12d   : > { %5791 = vst [vmem:[#allocation9_spill] sm:$0xff] %v4496_v46  ;;  %1756 = vrot.lane.b32.xlu0 %v1748_v3, %s3996_s6  ;;  %5793 = vst [vmem:[#allocation11_spill] sm:$0xff] %v4544_v41 }
 0x12e   : > { %1704 = vrot.lane.b32.xlu1 %v1698_v27, %s3996_s6  ;;  %v4500_v47 = vpop.permute.xlu0 %491  ;;  %v4002_v27 = vmov 34   ;;  %v666_v46 = vrot.slane %v654_v63, 2 }
 0x130   : > { %v4506_v55 = vpop.permute.xlu1 %465 }
 0x131   : > { %5792 = vst [vmem:[#allocation10_spill] sm:$0xff] %v4506_v55  ;;  %1706 = vrot.lane.b32.xlu0 %v1699_v33, %s3996_s6  ;;  %v4005_v55 = vmov 31  }
 0x132   : > { %1708 = vrot.lane.b32.xlu1 %v1700_v9, %s3996_s6  ;;  %v4003_v9 = vmov 25  }
 0x133   : > { %v561_v38 = vpop.permute.xlu0 %560 }
 0x134   : > { %v488_v23 = vpop.permute.xlu1 %487 }
 0x135   : > { %718 = vperm.xlu0 %3789, %v4150_v39   ;;  %v498_v31 = vadd.f32 %v488_v23, %v424_v40  ;;  %v585_v40 = vmul.f32 %v4520_v36, %v4226_v48 }
 0x136   : > { %527 = vperm.xlu1 %3790, %v4150_v39  }
 0x137   : > { %v4513_v30 = vpop.permute.xlu0 %564  ;;  %v571_v3 = vadd.f32 %v561_v38, %v498_v31 }
 0x138   : > { %v490_v58 = vpop.permute.xlu1 %489 }
 0x139   : > { %3792 = vset.pattern.permute.xlu0 %v4000_v25  ;;  %v674_v31 = vadd.f32 %v664_v61, %v571_v3  ;;  %v425_v3 = vmul.f32 %v4182_v11, %v4186_v13 }
 0x13a   : > { %3791 = vset.pattern.permute.xlu1 %v4001_v32  ;;  %1057 = vperm.xlu0 %3792, %v4150_v39   ;;  %v404_v32 = vmul.f32 %v4184_v12, %v4190_v16  ;;  %v493_v16 = vsel %vm446_vm3, %v488_v23, %v490_v58  ;;  %v652_v23 = vmul.f32 %v648_v34, %v4248_v5 }
 0x13b   : > { %v4522_v20 = vpop.permute.xlu0 %511  ;;  %834 = vperm.xlu1 %3791, %v4150_v39  }
 0x13c   : > { %v563_v29 = vpop.permute.xlu1 %562  ;;  %v452_v21 = vadd.f32 %v447_v17, %v404_v32  ;;  %v499_v17 = vadd.f32 %v493_v16, %v425_v3  ;;  %v655_v32 = vmul.f32 %v648_v34, %v4250_v8 }
 0x13e   : > { %3795 = vset.pattern.permute.xlu0 %v4002_v27  ;;  %v598_v27 = vrot.slane %v585_v40, 2  ;;  %v523_v40 = vadd.f32 %v4522_v20, %v452_v21 }
 0x13f   : > { %v4525_v33 = vpop.permute.xlu0 %515  ;;  %3793 = vset.pattern.permute.xlu1 %v4003_v9  ;;  %1512 = vperm.xlu0 %3795, %v4150_v39   ;;  %v599_v9 = vrot.slane %v588_v52, 2  ;;  %v566_v52 = vsel %vm517_vm4, %v561_v38, %v563_v29  ;;  %v4007_v38 = vmov 40  }
 0x140   : > { %v4532_v25 = vpop.permute.xlu1 %513  ;;  %1173 = vperm.xlu1 %3793, %v4150_v39   ;;  %v651_v39 = vmul.f32 %v648_v34, %v4242_v1  ;;  %v589_v34 = vmul.f32 %v4520_v36, %v4244_v2 }
 0x142   : > { %v665_v21 = vrot.slane %v651_v39, 2  ;;  %v448_v39 = vsel %vm446_vm3, %v4490_v45, %v4487_v42  ;;  %v4008_v45 = vmov 43  }
 0x143   : > { %v780_v48 = vpop.permute.xlu0 %779  ;;  %3798 = vset.pattern.permute.xlu0 %v4004_v49 }
 0x144   : > { %v4540_v0 = vadd.f32 %v780_v48, %v674_v31  ;;  %v782_v10 = vpop.permute.xlu1 %781  ;;  %3794 = vset.pattern.permute.xlu1 %v4005_v55  ;;  %614 = vperm.xlu0 %3798, %v4544_v41   ;;  %v600_v55 = vsel %vm597_vm0, %v598_v27, %v599_v9  ;;  %v494_v31 = vsel %vm446_vm3, %v490_v58, %v4500_v47 }
 0x145   : > { %1396 = vperm.xlu1 %3794, %v4544_v41   ;;  %v567_v27 = vsel %vm517_vm4, %v563_v29, %v4513_v30  ;;  %v572_v9 = vadd.f32 %v566_v52, %v499_v17  ;;  %v586_v47 = vmul.f32 %v4520_v36, %v4242_v1  ;;  %v500_v11 = vadd.f32 %v494_v31, %v426_v6 }
 0x146   : > { %v610_v58 = vadd.f32 %v600_v55, %v523_v40  ;;  %v668_v30 = vrot.slane %v652_v23, 2  ;;  %v669_v29 = vrot.slane %v655_v32, 2  ;;  %v667_v2 = vsel %vm597_vm0, %v665_v21, %v666_v46 }
 0x147   : > { %v784_v61 = vpop.permute.xlu0 %783  ;;  %v573_v63 = vadd.f32 %v567_v27, %v500_v11  ;;  %v785_v3 = vsel %vm446_vm3, %v780_v48, %v782_v10  ;;  %v518_v6 = vsel %vm517_vm4, %v4522_v20, %v4532_v25  ;;  %v601_v40 = vrot.slane %v586_v47, 2 }
 0x148   : > { %v704_v49 = vpop.permute.xlu1 %703  ;;  %3800 = vset.pattern.permute.xlu0 %v4006_v7  ;;  %v405_v7 = vmul.f32 %v4184_v12, %v4186_v13  ;;  %v675_v13 = vadd.f32 %v667_v2, %v572_v9  ;;  %v602_v55 = vrot.slane %v589_v34, 2  ;;  %v4582_v31 = vrot.slane %v4430_v22, 4 }
 0x149   : > { %3796 = vset.pattern.permute.xlu1 %v4007_v38  ;;  %v670_v48 = vsel %vm597_vm0, %v668_v30, %v669_v29  ;;  %v786_v32 = vsel %vm446_vm3, %v782_v10, %v784_v61  ;;  %v4009_v11 = vmov 19   ;;  %v4603_v29 = vrot.slane %v4445_v50, 4 }
 0x14a   : > { %1649 = vperm.xlu1 %3796, %v4544_v41   ;;  %v453_v17 = vadd.f32 %v448_v39, %v405_v7  ;;  %v791_v46 = vadd.f32 %v785_v3, %v675_v13  ;;  %v676_v21 = vadd.f32 %v670_v48, %v573_v63  ;;  %v603_v27 = vsel %vm597_vm0, %v601_v40, %v602_v55 }
 0x14b   : > { %v706_v19 = vpop.permute.xlu0 %705  ;;  %v990_v34 = vmul.f32 %v4582_v31, %v4314_v51  ;;  %v993_v7 = vmul.f32 %v4582_v31, %v4316_v54  ;;  %v924_v40 = vmul.f32 %v4603_v29, %v4297_v28  ;;  %v927_v55 = vmul.f32 %v4603_v29, %v4299_v53 }
 0x14c   : > { %v709_v16 = vsel %vm446_vm3, %v704_v49, %v706_v19  ;;  %v4574_v1 = vpop.permute.xlu1 %707  ;;  %v524_v20 = vadd.f32 %v518_v6, %v453_v17  ;;  %v792_v9 = vadd.f32 %v786_v32, %v676_v21 }
 0x14d   : > { %v714_v52 = vadd.f32 %v709_v16, %v610_v58  ;;  %v710_v10 = vsel %vm446_vm3, %v706_v19, %v4574_v1  ;;  %v1004_v2 = vrot.slane %v990_v34, 4  ;;  %v1005_v3 = vrot.slane %v993_v7, 4 }
 0x14e   : > { %3797 = vset.pattern.permute.xlu1 %v4008_v45  ;;  %v611_v39 = vadd.f32 %v603_v27, %v524_v20  ;;  %v938_v20 = vrot.slane %v927_v55, 4 }
 0x14f   : > { %v4584_v23 = vpop.permute.xlu0 %899  ;;  %1719 = vperm.xlu1 %3797, %v4544_v41   ;;  %v1006_v45 = vsel %vm936_vm1, %v1004_v2, %v1005_v3 }
 0x150   : > { %v902_v49 = vpop.permute.xlu1 %901  ;;  %v715_v16 = vadd.f32 %v710_v10, %v611_v39 }
 0x151   : > { %v905_v38 = vsel %vm517_vm4, %v4584_v23, %v902_v49 }
 0x152   : > { %v911_v22 = vadd.f32 %v905_v38, %v791_v46 }
 0x153   : > { %v904_v47 = vpop.permute.xlu0 %903  ;;  %3799 = vset.pattern.permute.xlu1 %v4009_v11 }
 0x154   : > { %v906_v61 = vsel %vm517_vm4, %v902_v49, %v904_v47  ;;  %v820_v58 = vpop.permute.xlu1 %819  ;;  %953 = vperm.xlu1 %3799, %v4544_v41   ;;  %v1014_v17 = vadd.f32 %v1006_v45, %v911_v22  ;;  %v937_v49 = vrot.slane %v924_v40, 4 }
 0x155   : > { %v4600_v30 = vadd.f32 %v906_v61, %v792_v9  ;;  %v830_v21 = vadd.f32 %v820_v58, %v714_v52 }
 0x156   : > { %v939_v9 = vsel %vm936_vm1, %v937_v49, %v938_v20  ;;  %v4663_v20 = vrot.slane %v4454_v37, 2 }
 0x157   : > { %v4605_v63 = vpop.permute.xlu0 %821  ;;  %v949_v34 = vadd.f32 %v939_v9, %v830_v21 }
 0x158   : > { %v825_v6 = vsel %vm517_vm4, %v820_v58, %v4605_v63  ;;  %v4609_v19 = vpop.permute.xlu1 %823 }
 0x159   : > { %v4611_v13 = vadd.f32 %v825_v6, %v715_v16 }
 0x15b   : > { %v1119_v50 = vpop.permute.xlu0 %1118 }
 0x15c   : > { %v4618_v46 = vpop.permute.xlu1 %1120 }
 0x15d   : > { %v1124_v48 = vsel %vm446_vm3, %v1119_v50, %v4618_v46 }
 0x15e   : > { %v1130_v32 = vadd.f32 %v1124_v48, %v1014_v17  ;;  %v989_v17 = vmul.f32 %v4582_v31, %v4297_v28  ;;  %v992_v48 = vmul.f32 %v4582_v31, %v4299_v53  ;;  %v1328_v53 = vmul.f32 %v4663_v20, %v4387_v43 }
 0x15f   : > { %v4622_v38 = vpop.permute.xlu0 %1122 }
 0x160   : > { %v1043_v27 = vpop.permute.xlu1 %1042  ;;  %v1001_v21 = vrot.slane %v989_v17, 4  ;;  %v1340_v15 = vrot.slane %v1328_v53, 6 }
 0x163   : > { %v4625_v47 = vpop.permute.xlu0 %1044 }
 0x164   : > { %v1048_v22 = vsel %vm446_vm3, %v1043_v27, %v4625_v47  ;;  %v4629_v7 = vpop.permute.xlu1 %1046  ;;  %v1002_v27 = vrot.slane %v992_v48, 4 }
 0x165   : > { %v1053_v11 = vadd.f32 %v1048_v22, %v949_v34  ;;  %v910_v34 = vadd.f32 %v4584_v23, %v4540_v0 }
 0x166   : > { %v1003_v28 = vsel %vm936_vm1, %v1001_v21, %v1002_v27  ;;  %v991_v21 = vmul.f32 %v4582_v31, %v4320_v57  ;;  %v994_v27 = vmul.f32 %v4582_v31, %v4322_v59  ;;  %v587_v31 = vmul.f32 %v4520_v36, %v4248_v5  ;;  %v4714_v5 = vld [vmem:[#allocation2 + $0x10] sm:$0xff] }
 0x167   : > { %v1239_v10 = vpop.permute.xlu0 %1238  ;;  %v1013_v37 = vadd.f32 %v1003_v28, %v910_v34  ;;  %v928_v34 = vmul.f32 %v4603_v29, %v4316_v54  ;;  %v4706_v54 = vrot.slane %v4471_v26, 2  ;;  %5798 = vst [vmem:[#allocation16_spill] sm:$0xff] %v4714_v5  ;;  %v1125_v26 = vsel %vm446_vm3, %v4618_v46, %v4622_v38 }
 0x168   : > { %v4631_v61 = vpop.permute.xlu1 %1240  ;;  %v1007_v53 = vrot.slane %v991_v21, 4 }
 0x169   : > { %v1244_v52 = vsel %vm517_vm4, %v1239_v10, %v4631_v61  ;;  %v1129_v48 = vadd.f32 %v1119_v50, %v1013_v37  ;;  %v925_v50 = vmul.f32 %v4603_v29, %v4314_v51  ;;  %v941_v51 = vrot.slane %v928_v34, 4 }
 0x16a   : > { %v4635_v58 = vadd.f32 %v1244_v52, %v1130_v32  ;;  %v604_v34 = vrot.slane %v587_v31, 2  ;;  %v1267_v31 = vmul.f32 %v4706_v54, %v4401_v62 }
 0x16b   : > { %v4637_v39 = vpop.permute.xlu0 %1242  ;;  %v1249_v0 = vadd.f32 %v1239_v10, %v1129_v48  ;;  %v940_v48 = vrot.slane %v925_v50, 4  ;;  %v519_v50 = vsel %vm517_vm4, %v4532_v25, %v4525_v33  ;;  %v1264_v33 = vmul.f32 %v4706_v54, %v4399_v56 }
 0x16c   : > { %5794 = vst [vmem:[#allocation12_spill] sm:$0xff] %v4635_v58  ;;  %v1245_v46 = vsel %vm517_vm4, %v4631_v61, %v4637_v39 }
 0x16f   : > { %v4639_v16 = vpop.permute.xlu0 %1158 }
 0x170   : > { %v4642_v2 = vadd.f32 %v4639_v16, %v1053_v11  ;;  %v1331_v11 = vmul.f32 %v4663_v20, %v4389_v44 }
 0x172   : > { %5795 = vst [vmem:[#allocation13_spill] sm:$0xff] %v4642_v2  ;;  %v1341_v14 = vrot.slane %v1331_v11, 6  ;;  %v1008_v11 = vrot.slane %v994_v27, 4 }
 0x173   : > { %v4644_v3 = vpop.permute.xlu0 %1162 }
 0x174   : > { %v1342_v2 = vsel %vm1275_vm2, %v1340_v15, %v1341_v14  ;;  %v590_v15 = vmul.f32 %v4520_v36, %v4250_v8  ;;  %v406_v8 = vmul.f32 %v4714_v5, %v4184_v12  ;;  %v1009_v36 = vsel %vm936_vm1, %v1007_v53, %v1008_v11 }
 0x175   : > { %v1352_v28 = vadd.f32 %v1342_v2, %v1249_v0  ;;  %v1330_v2 = vmul.f32 %v4663_v20, %v4403_v4  ;;  %v1333_v0 = vmul.f32 %v4663_v20, %v4407_v18  ;;  %v942_v53 = vsel %vm936_vm1, %v940_v48, %v941_v51 }
 0x176   : > { %v454_v12 = vadd.f32 %v4487_v42, %v406_v8  ;;  %v1049_v42 = vsel %vm446_vm3, %v4625_v47, %v4629_v7  ;;  %v950_v39 = vadd.f32 %v942_v53, %v4611_v13  ;;  %v926_v51 = vmul.f32 %v4603_v29, %v4320_v57 }
 0x177   : > { %v4646_v6 = vpop.permute.xlu0 %1457  ;;  %v1347_v5 = vrot.slane %v1333_v0, 6  ;;  %v1279_v57 = vrot.slane %v1264_v33, 6  ;;  %v1268_v33 = vmul.f32 %v4706_v54, %v4407_v18  ;;  %v1332_v18 = vmul.f32 %v4663_v20, %v4401_v62 }
 0x178   : > { %v1468_v37 = vadd.f32 %v4646_v6, %v1352_v28  ;;  %v605_v28 = vrot.slane %v590_v15, 2  ;;  %v1054_v8 = vadd.f32 %v1049_v42, %v950_v39  ;;  %v1266_v62 = vmul.f32 %v4706_v54, %v4389_v44 }
 0x179   : > { %v4648_v40 = vpop.permute.xlu1 %1615 }
 0x17a   : > { %v1618_v27 = vmul.f32 %v4648_v40, %v4468_v24  ;;  %v1346_v24 = vrot.slane %v1330_v2, 6  ;;  %v606_v61 = vsel %vm597_vm0, %v604_v34, %v605_v28  ;;  %v929_v2 = vmul.f32 %v4603_v29, %v4322_v59 }
 0x17b   : > { %v4650_v55 = vpop.permute.xlu0 %1461  ;;  %v826_v59 = vsel %vm517_vm4, %v4605_v63, %v4609_v19 }
 0x17c   : > { %v944_v34 = vrot.slane %v929_v2, 4 }
 0x17d   : > { %v4652_v45 = vpop.permute.xlu1 %1160 }
 0x17e   : > { %v1164_v47 = vsel %vm517_vm4, %v4639_v16, %v4652_v45 }
 0x17f   : > { %v4658_v32 = vpop.permute.xlu0 %1383  ;;  %v1170_v29 = vadd.f32 %v1164_v47, %v1054_v8 }
 0x181   : > { %v4660_v49 = vpop.permute.xlu1 %1595 }
 0x182   : > { %v1599_v47 = vmul.f32 %v4451_v60, %v4660_v49 }
 0x183   : > { %v4665_v9 = vpop.permute.xlu0 %1577 }
 0x184   : > { %5796 = vst [vmem:[#allocation14_spill] sm:$0xff] %v4665_v9 }
 0x185   : > { %v4669_v22 = vpop.permute.xlu1 %1459 }
 0x187   : > { %v4676_v52 = vpop.permute.xlu0 %1581 }
 0x189   : > { %v4678_v17 = vpop.permute.xlu1 %1381 }
 0x18a   : > { %5797 = vst [vmem:[#allocation15_spill] sm:$0xff] %v4678_v17  ;;  %v1588_v17 = vadd.f32 %v4665_v9, %v1468_v37  ;;  %v1015_v37 = vadd.f32 %v1009_v36, %v4600_v30  ;;  %v525_v30 = vadd.f32 %v519_v50, %v454_v12  ;;  %v1348_v36 = vsel %vm1275_vm2, %v1346_v24, %v1347_v5 }
 0x18b   : > { %v4680_v41 = vpop.permute.xlu0 %1499  ;;  %v1280_v50 = vrot.slane %v1267_v31, 6  ;;  %v943_v5 = vrot.slane %v926_v51, 4 }
 0x18c   : > { %v1621_v38 = vadd.f32 %v1618_v27, %v1588_v17  ;;  %v1131_v11 = vadd.f32 %v1125_v26, %v1015_v37  ;;  %v612_v13 = vadd.f32 %v606_v61, %v525_v30  ;;  %v1464_v27 = vsel %vm446_vm3, %v4669_v22, %v4650_v55 }
 0x18d   : > { %v4682_v23 = vpop.permute.xlu1 %1385  ;;  %v1281_v53 = vsel %vm1275_vm2, %v1279_v57, %v1280_v50  ;;  %v1165_v61 = vsel %vm517_vm4, %v4652_v45, %v4644_v3  ;;  %v1344_v57 = vrot.slane %v1332_v18, 6 }
 0x18e   : > { %v1251_v17 = vadd.f32 %v1245_v46, %v1131_v11  ;;  %v716_v24 = vadd.f32 %v4574_v1, %v612_v13  ;;  %v1388_v63 = vsel %vm446_vm3, %v4658_v32, %v4682_v23  ;;  %v1289_v19 = vadd.f32 %v1281_v53, %v1170_v29 }
 0x18f   : > { %v4689_v58 = vpop.permute.xlu0 %1680  ;;  %v945_v1 = vsel %vm936_vm1, %v943_v5, %v944_v34  ;;  %v1265_v11 = vmul.f32 %v4706_v54, %v4403_v4  ;;  %v1329_v4 = vmul.f32 %v4663_v20, %v4399_v56  ;;  %v1263_v56 = vmul.f32 %v4706_v54, %v4387_v43 }
 0x190   : > { %v1691_v15 = vadd.f32 %v4689_v58, %v1621_v38  ;;  %v1354_v16 = vadd.f32 %v1348_v36, %v1251_v17  ;;  %v832_v12 = vadd.f32 %v826_v59, %v716_v24  ;;  %v1393_v30 = vadd.f32 %v1388_v63, %v1289_v19  ;;  %v5799_v63 = vld [vmem:[#allocation12_spill] sm:$0xff] }
 0x191   : > { %v4695_v10 = vpop.permute.xlu1 %1579  ;;  %v1343_v20 = vrot.slane %v1329_v4, 6  ;;  %v1276_v44 = vrot.slane %v1263_v56, 6  ;;  %v1277_v54 = vrot.slane %v1266_v62, 6  ;;  %v3806_v56 = vld [vmem:[#allocation2 + $0x8] sm:$0xfc] }
 0x192   : > { %v1584_v28 = vsel %vm517_vm4, %v4695_v10, %v4676_v52  ;;  %v1470_v55 = vadd.f32 %v1464_v27, %v1354_v16  ;;  %v1620_v52 = vmul.f32 %v4458_v35, %v4648_v40  ;;  %v951_v31 = vadd.f32 %v945_v1, %v832_v12 }
 0x193   : > { %v4702_v14 = vpop.permute.xlu0 %1684  ;;  %v1463_v12 = vsel %vm446_vm3, %v4646_v6, %v4669_v22  ;;  %v1278_v1 = vsel %vm1275_vm2, %v1276_v44, %v1277_v54  ;;  %v5802_v22 = vld [vmem:[#allocation15_spill] sm:$0xff] }
 0x194   : > { %v1590_v46 = vadd.f32 %v1584_v28, %v1470_v55  ;;  %v1055_v2 = vadd.f32 %v4629_v7, %v951_v31  ;;  %v1345_v55 = vsel %vm1275_vm2, %v1343_v20, %v1344_v57  ;;  %v3807_v20 = vld [vmem:[#allocation2 + $0x28] sm:$0x3] }
 0x195   : > { %v4712_v21 = vpop.permute.xlu1 %1497  ;;  %v1353_v19 = vadd.f32 %v1345_v55, %v5799_v63 }
 0x196   : > { %v1503_v38 = vsel %vm517_vm4, %v4712_v21, %v4680_v41  ;;  %v1623_v17 = vadd.f32 %v1620_v52, %v1590_v46  ;;  %v1171_v13 = vadd.f32 %v1165_v61, %v1055_v2  ;;  %v4835_v61 = vld [vmem:[#allocation2 + $0x8] sm:$0xff]  ;;  %v1619_v2 = vmul.f32 %v4451_v60, %v4648_v40 }
 0x197   : > { %v4728_v9 = vpop.permute.xlu0 %1636  ;;  %v1509_v39 = vadd.f32 %v1503_v38, %v1393_v30  ;;  %v1469_v38 = vadd.f32 %v1463_v12, %v1353_v19  ;;  %v4879_v19 = vld [vmem:[#allocation2 + $0x8] sm:$0xfc] }
 0x199   : > { %v4737_v25 = vpop.permute.xlu1 %1501  ;;  %v1602_v7 = vadd.f32 %v1599_v47, %v1509_v39  ;;  %v5803_v39 = vld [vmem:[#allocation16_spill] sm:$0xff] }
 0x19a   : > { %v1504_v43 = vsel %vm517_vm4, %v4680_v41, %v4737_v25  ;;  %v5800_v41 = vld [vmem:[#allocation14_spill] sm:$0xff] }
 0x19b   : > { %v4747_v48 = vpop.permute.xlu0 %1752  ;;  %v1583_v25 = vsel %vm517_vm4, %v5800_v41, %v4695_v10  ;;  %v4882_v41 = vld [vmem:[#allocation2 + $0x28] sm:$0x3] }
 0x19c   : > { %v1763_v0 = vadd.f32 %v4747_v48, %v1691_v15  ;;  %v1589_v31 = vadd.f32 %v1583_v25, %v1469_v38 }
 0x19d   : > { %v4758_v26 = vpop.permute.xlu1 %1682 }
 0x19e   : > { %1775 = vrot.lane.b32.xlu0 %v1763_v0, %s4010_s7  ;;  %v1687_v15 = vsel %vm446_vm3, %v4758_v26, %v4702_v14  ;;  %v1282_v0 = vrot.slane %v1265_v11, 6  ;;  %v1283_v14 = vrot.slane %v1268_v33, 6  ;;  %v5801_v11 = vld [vmem:[#allocation13_spill] sm:$0xff]  ;;  %v1387_v33 = vsel %vm446_vm3, %v5802_v22, %v4658_v32 }
 0x19f   : > { %v1757_v51 = vpop.permute.xlu0 %1756  ;;  %v1693_v8 = vadd.f32 %v1687_v15, %v1623_v17  ;;  %v1288_v6 = vadd.f32 %v1278_v1, %v5801_v11  ;;  %v1686_v32 = vsel %vm446_vm3, %v4689_v58, %v4758_v26  ;;  %v3814_v11 = vld [vmem:[#allocation2 + $0x10] sm:$0xf0]  ;;  %v3815_v22 = vld [vmem:[#allocation2 + $0x30] sm:$0xf] }
 0x1a0   : > { %v1284_v50 = vsel %vm1275_vm2, %v1282_v0, %v1283_v14  ;;  %v1622_v14 = vadd.f32 %v1619_v2, %v1589_v31  ;;  %v4891_v31 = vld [vmem:[#allocation2 + $0x10] sm:$0xfc] }
 0x1a1   : > { %v4771_v37 = vpop.permute.xlu1 %1634  ;;  %v1290_v24 = vadd.f32 %v1284_v50, %v1171_v13  ;;  %v1392_v4 = vadd.f32 %v1387_v33, %v1288_v6 }
 0x1a2   : > { %v1640_v58 = vsel %vm446_vm3, %v4771_v37, %v4728_v9 }
 0x1a3   : > { %v1707_v59 = vpop.permute.xlu0 %1706  ;;  %v1394_v28 = vadd.f32 %v4682_v23, %v1290_v24  ;;  %v1600_v23 = vmul.f32 %v4458_v35, %v4660_v49  ;;  %v1508_v0 = vadd.f32 %v4712_v21, %v1392_v4  ;;  %v5805_v21 = vld [vmem:[#allocation11_spill] sm:$0xff]  ;;  %v4871_v24 = vld [vmem:[#allocation2 + $0x30] sm:$0xf]  ;;  %v3818_v4 = vld [vmem:[#allocation2 + $0x18] sm:$0xff] }
 0x1a5   : > { %v1639_v42 = vpop.permute.xlu1 %1638  ;;  %v1510_v46 = vadd.f32 %v1504_v43, %v1394_v28 }
 0x1a6   : > { %v1641_v3 = vsel %vm446_vm3, %v4728_v9, %v1639_v42  ;;  %v4867_v9 = vld [vmem:[#allocation2 + $0x10] sm:$0xf0] }
 0x1a7   : > { %v1646_v29 = vadd.f32 %v1641_v3, %v1602_v7  ;;  %v1603_v15 = vadd.f32 %v1600_v23, %v1510_v46 }
 0x1a9   : > { %v1755_v36 = vpop.permute.xlu1 %1754  ;;  %v1647_v18 = vadd.f32 %v1639_v42, %v1603_v15 }
 0x1aa   : > { %v1759_v45 = vsel %vm517_vm4, %v1755_v36, %v1757_v51  ;;  %v1758_v40 = vsel %vm517_vm4, %v4747_v48, %v1755_v36  ;;  %v3808_v36 = vld [vmem:[#allocation2 + $0x18] sm:$0xfc] }
 0x1ab   : > { %v1765_v27 = vadd.f32 %v1759_v45, %v1693_v8  ;;  %v5804_v45 = vld [vmem:[#allocation8_spill] sm:$0xff] }
 0x1ac   : > { %v1598_v7 = vmul.f32 %v4660_v49, %v5804_v45  ;;  %v3809_v49 = vld [vmem:[#allocation2 + $0x38] sm:$0x3]  ;;  %v3819_v45 = vld [vmem:[#allocation2 + $0x10] sm:$0xfc] }
 0x1ad   : > { %v4808_v16 = vpop.permute.xlu1 %1704  ;;  %1779 = vrot.lane.b32.xlu0 %v1765_v27, %s4010_s7  ;;  %v1692_v27 = vadd.f32 %v1686_v32, %v1622_v14 }
 0x1ae   : > { %v1710_v5 = vsel %vm517_vm4, %v4808_v16, %v1707_v59 }
 0x1af   : > { %v1716_v34 = vadd.f32 %v1710_v5, %v1646_v29  ;;  %v1764_v29 = vadd.f32 %v1758_v40, %v1692_v27  ;;  %v3820_v27 = vld [vmem:[#allocation2 + $0x30] sm:$0x3] }
 0x1b1   : > { %v1709_v53 = vpop.permute.xlu1 %1708  ;;  %1812 = vrot.lane.b32.xlu0 %v1716_v34, %s4011_s8 }
 0x1b2   : > { %v1711_v51 = vsel %vm517_vm4, %v1707_v59, %v1709_v53  ;;  %v1601_v59 = vadd.f32 %v1598_v7, %v1508_v0  ;;  %v4012_v53 = vmov 37  }
 0x1b3   : > { %v1717_v8 = vadd.f32 %v1711_v51, %v1647_v18 }
 0x1b4   : > { %v719_v52 = vpop.permute.xlu0 %718  ;;  %v1645_v55 = vadd.f32 %v1640_v58, %v1601_v59 }
 0x1b5   : > { %v4833_v30 = vpop.permute.xlu1 %527  ;;  %v720_v26 = vrot.slane %v719_v52, 6 }
 0x1b6   : > { %v530_v10 = vmul.f32 %v4835_v61, %v4833_v30  ;;  %v531_v17 = vmul.f32 %v5803_v39, %v4833_v30  ;;  %v1715_v1 = vadd.f32 %v4808_v16, %v1645_v55  ;;  %v532_v18 = vmul.f32 %v3818_v4, %v4833_v30 }
 0x1b7   : > { %v722_v46 = vmul.f32 %v4879_v19, %v720_v26  ;;  %v724_v25 = vmul.f32 %v4882_v41, %v720_v26  ;;  %v723_v15 = vmul.f32 %v4891_v31, %v720_v26  ;;  %v4013_v4 = vmov 45  }
 0x1b8   : > { %536 = vrot.lane.b32.xlu1 %v530_v10, %s3996_s6  ;;  %538 = vrot.lane.b32.xlu0 %v531_v17, %s3996_s6  ;;  %v4894_v10 = vld [vmem:[#allocation2 + $0x30] sm:$0x3] }
 0x1b9   : > { %v1058_v47 = vpop.permute.xlu0 %1057  ;;  %v725_v16 = vmul.f32 %v4894_v10, %v720_v26  ;;  %v730_v51 = vrot.slane %v722_v46, 2  ;;  %v731_v2 = vrot.slane %v724_v25, 2  ;;  %v3821_v26 = vld [vmem:[#allocation2 + $0x8] sm:$0xc0]  ;;  %v3828_v46 = vld [vmem:[#allocation2 + $0x28] sm:$0xf] }
 0x1ba   : > { %v835_v13 = vpop.permute.xlu1 %834  ;;  %v4850_v3 = vrot.slane %v1058_v47, 4 }
 0x1bb   : > { %v4854_v42 = vrot.slane %v835_v13, 6  ;;  %v734_v13 = vrot.slane %v725_v16, 2  ;;  %v732_v40 = vsel %vm597_vm0, %v730_v51, %v731_v2  ;;  %v3830_v16 = vld [vmem:[#allocation2 + $0x38] sm:$0xf] }
 0x1bc   : > { %1814 = vrot.lane.b32.xlu1 %v1717_v8, %s4011_s8  ;;  %1292 = vperm.xlu0 %3800, %v5805_v21   ;;  %v1062_v37 = vmul.f32 %v4867_v9, %v4850_v3  ;;  %v1064_v5 = vmul.f32 %v4871_v24, %v4850_v3  ;;  %v733_v8 = vrot.slane %v723_v15, 2 }
 0x1bd   : > { %v838_v62 = vmul.f32 %v3806_v56, %v4854_v42  ;;  %v841_v48 = vmul.f32 %v3807_v20, %v4854_v42  ;;  %v840_v57 = vmul.f32 %v3808_v36, %v4854_v42  ;;  %v843_v50 = vmul.f32 %v3809_v49, %v4854_v42  ;;  %v4912_v49 = vld [vmem:[#allocation2 + $0x8] sm:$0xf0] }
 0x1be   : > { %v1072_v23 = vrot.slane %v1062_v37, 4  ;;  %v1073_v52 = vrot.slane %v1064_v5, 4  ;;  %v1513_v17 = vpop.permute.xlu0 %1512  ;;  %v839_v7 = vmul.f32 %v3819_v45, %v4854_v42  ;;  %v842_v30 = vmul.f32 %v3820_v27, %v4854_v42  ;;  %v3825_v5 = vld [vmem:[#allocation2 + $0x18] sm:$0xc0] }
 0x1bf   : > { %v850_v43 = vrot.slane %v838_v62, 2  ;;  %v851_v34 = vrot.slane %v841_v48, 2  ;;  %v1174_v44 = vpop.permute.xlu1 %1173  ;;  %v856_v54 = vrot.slane %v840_v57, 2  ;;  %v857_v28 = vrot.slane %v843_v50, 2  ;;  %v3822_v62 = vld [vmem:[#allocation2 + $0x28] sm:$0x3f] }
 0x1c0   : > { %1777 = vrot.lane.b32.xlu1 %v1764_v29, %s4010_s7  ;;  %v4876_v12 = vrot.slane %v1174_v44, 4  ;;  %3801 = vset.pattern.permute.xlu0 %v4012_v53  ;;  %v1074_v32 = vsel %vm936_vm1, %v1072_v23, %v1073_v52  ;;  %v4900_v14 = vrot.slane %v1513_v17, 2  ;;  %v735_v48 = vsel %vm597_vm0, %v733_v8, %v734_v13  ;;  %v4916_v50 = vld [vmem:[#allocation2 + $0x28] sm:$0xf] }
 0x1c1   : > { %v852_v63 = vsel %vm597_vm0, %v850_v43, %v851_v34  ;;  %v858_v38 = vsel %vm597_vm0, %v856_v54, %v857_v28  ;;  %v853_v36 = vrot.slane %v839_v7, 2  ;;  %v854_v57 = vrot.slane %v842_v30, 2  ;;  %v3826_v34 = vld [vmem:[#allocation2 + $0x38] sm:$0x3f]  ;;  %v3827_v54 = vld [vmem:[#allocation2 + $0x8] sm:$0xf0] }
 0x1c2   : > { %859 = vrot.lane.b32.xlu0 %v852_v63, %s3996_s6  ;;  %v1178_v6 = vmul.f32 %v3814_v11, %v4876_v12  ;;  %v1181_v33 = vmul.f32 %v3815_v22, %v4876_v12  ;;  %v1516_v56 = vmul.f32 %v3821_v26, %v4900_v14  ;;  %v1519_v20 = vmul.f32 %v3822_v62, %v4900_v14  ;;  %v3829_v11 = vld [vmem:[#allocation2 + $0x18] sm:$0xf0]  ;;  %v4940_v13 = vld [vmem:[#allocation2 + $0x28] sm:$0x3f]  ;;  %v4946_v7 = vld [vmem:[#allocation2 + $0x10] sm:$0xc0] }
 0x1c3   : > { %v1061_v42 = vmul.f32 %v4912_v49, %v4850_v3  ;;  %v1063_v59 = vmul.f32 %v4916_v50, %v4850_v3  ;;  %v1518_v43 = vmul.f32 %v3825_v5, %v4900_v14  ;;  %v1521_v44 = vmul.f32 %v3826_v34, %v4900_v14 }
 0x1c4   : > { %1810 = vrot.lane.b32.xlu1 %v1715_v1, %s4011_s8  ;;  %v1192_v47 = vrot.slane %v1178_v6, 4  ;;  %v1193_v0 = vrot.slane %v1181_v33, 4  ;;  %v1528_v29 = vrot.slane %v1516_v56, 6  ;;  %v1529_v37 = vrot.slane %v1519_v20, 6  ;;  %v1397_v3 = vpop.permute.xlu1 %1396  ;;  %v4950_v56 = vld [vmem:[#allocation2 + $0x30] sm:$0x3f] }
 0x1c5   : > { %v1177_v28 = vmul.f32 %v3827_v54, %v4876_v12  ;;  %v855_v55 = vsel %vm597_vm0, %v853_v36, %v854_v57  ;;  %v1069_v53 = vrot.slane %v1061_v42, 4  ;;  %v1070_v63 = vrot.slane %v1063_v59, 4  ;;  %v3835_v42 = vld [vmem:[#allocation2 + $0x10] sm:$0xc0]  ;;  %v5806_v54 = vld [vmem:[#allocation7_spill] sm:$0xff] }
 0x1c6   : > { %863 = vrot.lane.b32.xlu0 %v858_v38, %s3996_s6  ;;  %v1194_v58 = vsel %vm936_vm1, %v1192_v47, %v1193_v0  ;;  %v1180_v25 = vmul.f32 %v3828_v46, %v4876_v12  ;;  %v1530_v1 = vsel %vm1275_vm2, %v1528_v29, %v1529_v37  ;;  %v1534_v23 = vrot.slane %v1518_v43, 6  ;;  %v4937_v0 = vld [vmem:[#allocation2 + $0x8] sm:$0xc0]  ;;  %v3836_v29 = vld [vmem:[#allocation2 + $0x30] sm:$0x3f] }
 0x1c7   : > { %v1535_v38 = vrot.slane %v1521_v44, 6  ;;  %v1189_v52 = vrot.slane %v1177_v28, 4  ;;  %v1179_v6 = vmul.f32 %v3829_v11, %v4876_v12  ;;  %v1071_v22 = vsel %vm936_vm1, %v1069_v53, %v1070_v63  ;;  %v3837_v53 = vld [vmem:[#allocation2] sm:$0xff]  ;;  %v5807_v63 = vld [vmem:[#allocation6_spill] sm:$0xff]  ;;  %v5808_v46 = vld [vmem:[#allocation9_spill] sm:$0xff] }
 0x1c8   : > { %540 = vrot.lane.b32.xlu1 %v532_v18, %s3996_s6  ;;  %v1398_v33 = vrot.slane %v1397_v3, 2  ;;  %v1190_v15 = vrot.slane %v1180_v25, 4  ;;  %v1182_v17 = vmul.f32 %v3830_v16, %v4876_v12  ;;  %v1517_v59 = vmul.f32 %v3835_v42, %v4900_v14 }
 0x1c9   : > { %v1650_v51 = vpop.permute.xlu1 %1649  ;;  %v1536_v2 = vsel %vm1275_vm2, %v1534_v23, %v1535_v38  ;;  %v1195_v18 = vrot.slane %v1179_v6, 4  ;;  %v1520_v37 = vmul.f32 %v3836_v29, %v4900_v14  ;;  %v414_v3 = vmul.f32 %v3837_v53, %v5807_v63 }
 0x1ca   : > { %1077 = vrot.lane.b32.xlu0 %v1074_v32, %s3995_s5  ;;  %v1191_v32 = vsel %vm936_vm1, %v1189_v52, %v1190_v15  ;;  %v1196_v47 = vrot.slane %v1182_v17, 4  ;;  %v1400_v8 = vmul.f32 %v4937_v0, %v1398_v33  ;;  %v1402_v12 = vmul.f32 %v4940_v13, %v1398_v33  ;;  %v5809_v52 = vld [vmem:[#allocation3_spill] sm:$0xff] }
 0x1cb   : > { %v1401_v27 = vmul.f32 %v4946_v7, %v1398_v33  ;;  %v1403_v62 = vmul.f32 %v4950_v56, %v1398_v33  ;;  %v1531_v43 = vrot.slane %v1517_v59, 6  ;;  %v1652_v44 = vmul.f32 %v4451_v60, %v1650_v51  ;;  %v5810_v33 = vld [vmem:[#allocation4_spill] sm:$0xff] }
 0x1cc   : > { %736 = vrot.lane.b32.xlu1 %v732_v40, %s3995_s5  ;;  %v1653_v40 = vmul.f32 %v4458_v35, %v1650_v51  ;;  %v1197_v30 = vsel %vm936_vm1, %v1195_v18, %v1196_v47  ;;  %v1409_v26 = vrot.slane %v1402_v12, 6  ;;  %v471_v25 = vadd.f32 %v5808_v46, %v414_v3 }
 0x1cd   : > { %v1412_v57 = vrot.slane %v1403_v62, 6  ;;  %vm1766_vm5 = vcmp.lt.s32.totalorder %v5809_v52, 15  ;;  %v4014_v6 = vmov 0.0   ;;  %vm1767_vm7 = vcmp.lt.s32.totalorder %v5810_v33, 15 }
 0x1ce   : > { %1200 = vrot.lane.b32.xlu0 %v1194_v58, %s3996_s6  ;;  %v1720_v45 = vpop.permute.xlu1 %1719  ;;  %v1408_v58 = vrot.slane %v1400_v8, 6  ;;  %vm1801_vm8 = vcmp.ge.s32.totalorder %v5809_v52, 1  ;;  %v3564_v51 = vsel %vm1767_vm7, 1.0, %v4014_v6  ;;  %vm1802_vm9 = vcmp.ge.s32.totalorder %v5810_v33, 1 }
 0x1cf   : > { %v1723_v20 = vmul.f32 %v1720_v45, %v4458_v35  ;;  %v1532_v35 = vrot.slane %v1520_v37, 6  ;;  %v1722_v14 = vmul.f32 %v1720_v45, %v4451_v60  ;;  %v1724_v28 = vmul.f32 %v1720_v45, %v5806_v54 }
 0x1d0   : > { %738 = vrot.lane.b32.xlu1 %v735_v48, %s3995_s5  ;;  %v1411_v48 = vrot.slane %v1401_v27, 6  ;;  %v1410_v36 = vsel %vm1275_vm2, %v1408_v58, %v1409_v26  ;;  %v415_v3 = vmul.f32 %v4835_v61, %v5807_v63 }
 0x1d1   : > { %v1533_v34 = vsel %vm1275_vm2, %v1531_v43, %v1532_v35  ;;  %v3839_v35 = vld [vmem:[#allocation2 + $0x20] sm:$0x3] }
 0x1d2   : > { %1605 = vperm.xlu0 %3801, %v5805_v21   ;;  %v1413_v5 = vsel %vm1275_vm2, %v1411_v48, %v1412_v57 }
 0x1d4   : > { %861 = vrot.lane.b32.xlu1 %v855_v55, %s3996_s6  ;;  %v4972_v55 = vpop.permute.xlu1 %953 }
 0x1d6   : > { %1537 = vrot.lane.b32.xlu0 %v1530_v1, %s3996_s6 }
 0x1d7   : > { %3802 = vset.pattern.permute.xlu0 %v4013_v4  ;;  %v3565_v4 = vsel %vm1801_vm8, 1.0, %v4014_v6 }
 0x1d8   : > { %1075 = vrot.lane.b32.xlu1 %v1071_v22, %s3995_s5  ;;  %v3563_v22 = vsel %vm1766_vm5, 1.0, %v4014_v6 }
 0x1da   : > { %1541 = vrot.lane.b32.xlu0 %v1536_v2, %s3996_s6 }
 0x1dc   : > { %1198 = vrot.lane.b32.xlu1 %v1191_v32, %s3996_s6 }
 0x1de   : > { %1658 = vrot.lane.b32.xlu0 %v1653_v40, %s3995_s5  ;;  %v3566_v40 = vsel %vm1802_vm9, 1.0, %v4014_v6  ;;  %v955_v6 = vrot.slane %v4972_v55, 4 }
 0x1e0   : > { %1202 = vrot.lane.b32.xlu1 %v1197_v30, %s3996_s6  ;;  %v962_v55 = vmul.f32 %v4871_v24, %v955_v6 }
 0x1e2   : > { %1730 = vrot.lane.b32.xlu0 %v1723_v20, %s3996_s6 }
 0x1e4   : > { %1414 = vrot.lane.b32.xlu1 %v1410_v36, %s3995_s5 }
 0x1e6   : > { %1837 = vperm.xlu0 %3802, %v5805_v21   ;;  %v615_v21 = vpop.permute.xlu0 %614 }
 0x1e7   : > { %v616_v59 = vrot.slane %v615_v21, 6  ;;  %v416_v21 = vmul.f32 %v5803_v39, %v5807_v63 }
 0x1e8   : > { %1416 = vrot.lane.b32.xlu1 %v1413_v5, %s3995_s5  ;;  %v3838_v5 = vld [vmem:[#allocation2] sm:$0xfc] }
 0x1e9   : > { %v618_v43 = vmul.f32 %v3838_v5, %v616_v59  ;;  %v622_v54 = vmul.f32 %v4882_v41, %v616_v59 }
 0x1eb   : > { %v634_v61 = vrot.slane %v622_v54, 2 }
 0x1ec   : > { %1539 = vrot.lane.b32.xlu1 %v1533_v34, %s3996_s6  ;;  %v621_v34 = vmul.f32 %v3839_v35, %v616_v59 }
 0x1f0   : > { %1656 = vrot.lane.b32.xlu1 %v1652_v44, %s3995_s5  ;;  %v619_v44 = vmul.f32 %v4879_v19, %v616_v59  ;;  %v631_v19 = vrot.slane %v621_v34, 2  ;;  %v976_v34 = vrot.slane %v962_v55, 4 }
 0x1f2   : > { %v633_v52 = vrot.slane %v619_v44, 2 }
 0x1f4   : > { %1728 = vrot.lane.b32.xlu1 %v1722_v14, %s3996_s6  ;;  %v620_v14 = vmul.f32 %v4891_v31, %v616_v59 }
 0x1f8   : > { %1732 = vrot.lane.b32.xlu1 %v1724_v28, %s3996_s6  ;;  %v623_v28 = vmul.f32 %v4894_v10, %v616_v59  ;;  %v636_v10 = vrot.slane %v620_v14, 2 }
 0x1fa   : > { %v637_v63 = vrot.slane %v623_v28, 2 }
 0x210   : > { %v1776_v60 = vpop.permute.xlu0 %1775 }
 0x21f   : > { %v1780_v11 = vpop.permute.xlu0 %1779 }
 0x223   : > { %v1813_v18 = vpop.permute.xlu0 %1812 }
 0x22a   : > { %v4976_v1 = vpop.permute.xlu1 %536  ;;  %v539_v20 = vpop.permute.xlu0 %538 }
 0x22b   : > { %v4979_v23 = vadd.f32 %v4976_v1, %v471_v25  ;;  %v5811_v25 = vld [vmem:[#allocation10_spill] sm:$0xff]  ;;  %v542_v39 = vsel %vm517_vm4, %v4976_v1, %v539_v20 }
 0x22c   : > { %v473_v31 = vadd.f32 %v5811_v25, %v416_v21 }
 0x22e   : > { %v1815_v38 = vpop.permute.xlu1 %1814 }
 0x22f   : > { %v1818_v45 = vsel %vm1816_vm10, %v1813_v18, %v1815_v38  ;;  %v630_v38 = vrot.slane %v618_v43, 2 }
 0x230   : > { %v1822_v27 = vmul.f32 %v3566_v40, %v1818_v45  ;;  %v958_v45 = vmul.f32 %v4912_v49, %v955_v6 }
 0x232   : > { %v1778_v15 = vpop.permute.xlu1 %1777  ;;  %v972_v28 = vrot.slane %v958_v45, 4 }
 0x233   : > { %v1782_v16 = vsel %vm1781_vm6, %v1776_v60, %v1778_v15  ;;  %v1783_v2 = vsel %vm1781_vm6, %v1778_v15, %v1780_v11  ;;  %v467_v60 = vsel %vm446_vm3, %v5808_v46, %v5811_v25  ;;  %v632_v46 = vsel %vm597_vm0, %v630_v38, %v631_v19  ;;  %v3842_v25 = vld [vmem:[#allocation2] sm:$0xc0] }
 0x234   : > { %v1786_v17 = vmul.f32 %v3563_v22, %v1782_v16  ;;  %v1787_v8 = vmul.f32 %v3564_v51, %v1783_v2  ;;  %v472_v22 = vadd.f32 %v467_v60, %v415_v3  ;;  %v638_v51 = vsel %vm597_vm0, %v636_v10, %v637_v63  ;;  %v3843_v60 = vld [vmem:[#allocation2 + $0x20] sm:$0x3f] }
 0x235   : > { %v959_v2 = vmul.f32 %v4867_v9, %v955_v6 }
 0x236   : > { %1790 = vrot.lane.b32.xlu1 %v1786_v17, %s3995_s5  ;;  %v1811_v32 = vpop.permute.xlu1 %1810  ;;  %v548_v16 = vadd.f32 %v542_v39, %v472_v22  ;;  %v635_v17 = vsel %vm597_vm0, %v633_v52, %v634_v61 }
 0x237   : > { %v1817_v47 = vsel %vm1816_vm10, %v1811_v32, %v1813_v18  ;;  %v3840_v18 = vld [vmem:[#allocation2] sm:$0xf0]  ;;  %v3841_v32 = vld [vmem:[#allocation2 + $0x20] sm:$0xf]  ;;  %v975_v43 = vrot.slane %v959_v2, 4 }
 0x238   : > { %v1821_v12 = vmul.f32 %v3565_v4, %v1817_v47  ;;  %v642_v4 = vadd.f32 %v632_v46, %v4979_v23  ;;  %v957_v1 = vmul.f32 %v3840_v18, %v955_v6  ;;  %v960_v47 = vmul.f32 %v3841_v32, %v955_v6 }
 0x23a   : > { %1792 = vrot.lane.b32.xlu1 %v1787_v8, %s3995_s5  ;;  %1825 = vrot.lane.b32.xlu0 %v1821_v12, %s3995_s5  ;;  %v541_v30 = vpop.permute.xlu1 %540  ;;  %v969_v44 = vrot.slane %v957_v1, 4  ;;  %v970_v14 = vrot.slane %v960_v47, 4 }
 0x23b   : > { %v1293_v48 = vpop.permute.xlu0 %1292  ;;  %v543_v41 = vsel %vm517_vm4, %v539_v20, %v541_v30  ;;  %v643_v20 = vadd.f32 %v635_v17, %v548_v16 }
 0x23c   : > { %v549_v33 = vadd.f32 %v543_v41, %v473_v31  ;;  %v1294_v24 = vrot.slane %v1293_v48, 2 }
 0x23e   : > { %1827 = vrot.lane.b32.xlu1 %v1822_v27, %s3995_s5  ;;  %v737_v58 = vpop.permute.xlu1 %736  ;;  %v644_v12 = vadd.f32 %v638_v51, %v549_v33  ;;  %v961_v27 = vmul.f32 %v4916_v50, %v955_v6  ;;  %v1299_v38 = vmul.f32 %v3843_v60, %v1294_v24  ;;  %v1298_v48 = vmul.f32 %v4946_v7, %v1294_v24 }
 0x23f   : > { %v860_v57 = vpop.permute.xlu0 %859  ;;  %v744_v9 = vadd.f32 %v737_v58, %v642_v4  ;;  %v1301_v19 = vmul.f32 %v4950_v56, %v1294_v24  ;;  %v1300_v52 = vmul.f32 %v4940_v13, %v1294_v24 }
 0x240   : > { %v973_v49 = vrot.slane %v961_v27, 4  ;;  %v1309_v63 = vrot.slane %v1299_v38, 6  ;;  %v1314_v33 = vrot.slane %v1298_v48, 6 }
 0x241   : > { %v870_v21 = vadd.f32 %v860_v57, %v744_v9  ;;  %v1315_v46 = vrot.slane %v1301_v19, 6  ;;  %v1312_v51 = vrot.slane %v1300_v52, 6 }
 0x242   : > { %v739_v26 = vpop.permute.xlu1 %738  ;;  %v974_v41 = vsel %vm936_vm1, %v972_v28, %v973_v49 }
 0x243   : > { %v864_v29 = vpop.permute.xlu0 %863  ;;  %v740_v40 = vsel %vm446_vm3, %v737_v58, %v739_v26  ;;  %v746_v59 = vadd.f32 %v739_v26, %v644_v12  ;;  %v1296_v58 = vmul.f32 %v3842_v25, %v1294_v24  ;;  %v977_v26 = vsel %vm936_vm1, %v975_v43, %v976_v34  ;;  %v3845_v43 = vld [vmem:[#allocation2 + $0x20] sm:$0xff]  ;;  %v3846_v34 = vld [vmem:[#allocation2 + $0x28] sm:$0xff] }
 0x244   : > { %v745_v35 = vadd.f32 %v740_v40, %v643_v20  ;;  %v1316_v1 = vsel %vm1275_vm2, %v1314_v33, %v1315_v46 }
 0x245   : > { %v1308_v61 = vrot.slane %v1296_v58, 6 }
 0x246   : > { %v862_v62 = vpop.permute.xlu1 %861 }
 0x247   : > { %v4999_v53 = vpop.permute.xlu0 %1077  ;;  %v866_v23 = vsel %vm517_vm4, %v862_v62, %v864_v29  ;;  %v865_v5 = vsel %vm517_vm4, %v860_v57, %v862_v62  ;;  %v971_v62 = vsel %vm936_vm1, %v969_v44, %v970_v14  ;;  %v1297_v57 = vmul.f32 %v4937_v0, %v1294_v24 }
 0x248   : > { %v872_v54 = vadd.f32 %v866_v23, %v746_v59  ;;  %v871_v50 = vadd.f32 %v865_v5, %v745_v35  ;;  %v981_v10 = vadd.f32 %v971_v62, %v870_v21  ;;  %v1310_v18 = vsel %vm1275_vm2, %v1308_v61, %v1309_v63  ;;  %v3844_v23 = vld [vmem:[#allocation2 + $0x30] sm:$0xff] }
 0x249   : > { %v1311_v17 = vrot.slane %v1297_v57, 6 }
 0x24a   : > { %v4989_v36 = vpop.permute.xlu1 %1075  ;;  %v983_v31 = vadd.f32 %v977_v26, %v872_v54  ;;  %v982_v6 = vadd.f32 %v974_v41, %v871_v50 }
 0x24b   : > { %v1201_v15 = vpop.permute.xlu0 %1200  ;;  %v1079_v39 = vsel %vm446_vm3, %v4989_v36, %v4999_v53  ;;  %v1083_v7 = vadd.f32 %v4989_v36, %v981_v10 }
 0x24c   : > { %v1085_v0 = vadd.f32 %v4999_v53, %v983_v31  ;;  %v1084_v2 = vadd.f32 %v1079_v39, %v982_v6 }
 0x24e   : > { %v4991_v42 = vpop.permute.xlu1 %1198 }
 0x24f   : > { %v1204_v13 = vsel %vm517_vm4, %v4991_v42, %v1201_v15  ;;  %v1209_v4 = vadd.f32 %v4991_v42, %v1083_v7 }
 0x250   : > { %v1210_v36 = vadd.f32 %v1204_v13, %v1084_v2 }
 0x251   : > { %v5026_v30 = vpop.permute.xlu0 %1605  ;;  %v1320_v47 = vadd.f32 %v1310_v18, %v1209_v4 }
 0x252   : > { %v4993_v37 = vpop.permute.xlu1 %1202  ;;  %v1610_v24 = vmul.f32 %v3844_v23, %v5026_v30  ;;  %v1608_v35 = vmul.f32 %v3845_v43, %v5026_v30  ;;  %v1609_v44 = vmul.f32 %v3846_v34, %v5026_v30 }
 0x253   : > { %v1205_v56 = vsel %vm517_vm4, %v1201_v15, %v4993_v37  ;;  %v1313_v37 = vsel %vm1275_vm2, %v1311_v17, %v1312_v51 }
 0x254   : > { %v1211_v55 = vadd.f32 %v1205_v56, %v1085_v0  ;;  %v1321_v45 = vadd.f32 %v1313_v37, %v1210_v36  ;;  %v5812_v0 = vld [vmem:[#allocation5_spill] sm:$0xff] }
 0x255   : > { %v1538_v29 = vpop.permute.xlu0 %1537 }
 0x256   : > { %v5010_v11 = vpop.permute.xlu1 %1414  ;;  %v1322_v53 = vadd.f32 %v1316_v1, %v1211_v55 }
 0x257   : > { %v1422_v40 = vadd.f32 %v5010_v11, %v1320_v47 }
 0x259   : > { %v1542_v22 = vpop.permute.xlu0 %1541 }
 0x25a   : > { %v5021_v8 = vpop.permute.xlu1 %1416 }
 0x25b   : > { %v1418_v15 = vsel %vm446_vm3, %v5010_v11, %v5021_v8  ;;  %v1424_v27 = vadd.f32 %v5021_v8, %v1322_v53  ;;  %v1548_v11 = vadd.f32 %v1538_v29, %v1422_v40 }
 0x25c   : > { %v1423_v20 = vadd.f32 %v1418_v15, %v1321_v45 }
 0x25d   : > { %v1659_v32 = vpop.permute.xlu0 %1658  ;;  %v1611_v8 = vadd.f32 %v1608_v35, %v1548_v11 }
 0x25e   : > { %v1540_v3 = vpop.permute.xlu1 %1539 }
 0x25f   : > { %v1544_v42 = vsel %vm517_vm4, %v1540_v3, %v1542_v22  ;;  %v1543_v9 = vsel %vm517_vm4, %v1538_v29, %v1540_v3 }
 0x260   : > { %v1550_v59 = vadd.f32 %v1544_v42, %v1424_v27  ;;  %v1549_v14 = vadd.f32 %v1543_v9, %v1423_v20  ;;  %v5813_v27 = vlaneseq }
 0x261   : > { %v1731_v5 = vpop.permute.xlu0 %1730 }
 0x262   : > { %v1657_v16 = vpop.permute.xlu1 %1656  ;;  %v1613_v28 = vadd.f32 %v1610_v24, %v1550_v59  ;;  %v1612_v21 = vadd.f32 %v1609_v44, %v1549_v14  ;;  %vm5074_vm12 = vcmp.lt.s32.totalorder %v5813_v27, 256 }
 0x263   : > { %v1660_v3 = vsel %vm446_vm3, %v1657_v16, %v1659_v32  ;;  %v1664_v25 = vadd.f32 %v1657_v16, %v1611_v8 }
 0x264   : > { %v1666_v60 = vadd.f32 %v1659_v32, %v1613_v28  ;;  %v1665_v26 = vadd.f32 %v1660_v3, %v1612_v21 }
 0x265   : > { %v1838_v49 = vpop.permute.xlu0 %1837 }
 0x266   : > { %v1729_v12 = vpop.permute.xlu1 %1728 }
 0x267   : > { %v1734_v38 = vsel %vm517_vm4, %v1729_v12, %v1731_v5  ;;  %v1739_v62 = vadd.f32 %v1729_v12, %v1664_v25 }
 0x268   : > { %v1740_v31 = vadd.f32 %v1734_v38, %v1665_v26 }
 0x26a   : > { %v1733_v54 = vpop.permute.xlu1 %1732 }
 0x26b   : > { %v1735_v58 = vsel %vm517_vm4, %v1731_v5, %v1733_v54 }
 0x26c   : > { %v1741_v30 = vadd.f32 %v1735_v58, %v1666_v60 }
 0x2a8   : > { %v1791_v50 = vpop.permute.xlu1 %1790 }
 0x2a9   : > { %v1798_v41 = vadd.f32 %v1791_v50, %v1739_v62 }
 0x2ac   : > { %v1793_v48 = vpop.permute.xlu1 %1792  ;;  %v1826_v29 = vpop.permute.xlu0 %1825 }
 0x2ad   : > { %v1794_v19 = vsel %vm446_vm3, %v1791_v50, %v1793_v48  ;;  %v1800_v57 = vadd.f32 %v1793_v48, %v1741_v30  ;;  %v1833_v52 = vadd.f32 %v1826_v29, %v1798_v41 }
 0x2ae   : > { %v1799_v10 = vadd.f32 %v1794_v19, %v1740_v31 }
 0x2af   : > { %v1840_v7 = vadd.f32 %v1838_v49, %v1833_v52 }
 0x2b0   : > { %v1828_v6 = vpop.permute.xlu1 %1827 }
 0x2b1   : > { %v1829_v39 = vsel %vm446_vm3, %v1826_v29, %v1828_v6  ;;  %v1835_v61 = vadd.f32 %v1828_v6, %v1800_v57 }
 0x2b2   : > { %v1834_v63 = vadd.f32 %v1829_v39, %v1799_v10 }
 0x2b3   : > { %v1842_v22 = vadd.f32 %v1838_v49, %v1835_v61 }
 0x2b4   : > { %v1841_v56 = vadd.f32 %v1838_v49, %v1834_v63 }
 0x2b5   : > { %v1912_v33 = vcombine.high %v1842_v22, %v1842_v22  ;;  %v1860_v17 = vrot.slane %v1842_v22, %v5812_v0 }
 0x2b6   : > { %v1846_v46 = vcombine.low %v1840_v7, %v1841_v56  ;;  %v1911_v16 = vcombine.high %v1840_v7, %v1841_v56 }
 0x2b7   : > { %v1926_v2 = vrot.slane %v1912_v33, %v5812_v0 }
 0x2b8   : > { %v1853_v13 = vrot.slane %v1846_v46, %v5812_v0  ;;  %v1919_v51 = vrot.slane %v1911_v16, %v5812_v0 }
 0x2ba   : > { %v1861_v4 = vcombine.low %v1853_v13, %v1860_v17  ;;  %v1862_v55 = vcombine.high %v1853_v13, %v1860_v17  ;;  %v1928_v1 = vcombine.high %v1919_v51, %v1926_v2  ;;  %v1927_v37 = vcombine.low %v1919_v51, %v1926_v2 }
 0x2bc   : > { %v1876_v18 = vrot.slane %v1862_v55, %v5812_v0  ;;  %v1869_v36 = vrot.slane %v1861_v4, %v5812_v0  ;;  %v1942_v32 = vrot.slane %v1928_v1, %v5812_v0  ;;  %v1935_v47 = vrot.slane %v1927_v37, %v5812_v0 }
 0x2be   : > { %1879 = vrot.lane.b32.xlu1 %v1876_v18, %s4015_s10  ;;  %1877 = vrot.lane.b32.xlu0 %v1869_v36, %s4015_s10  ;;  %v1896_v12 = vcombine.high %v1876_v18, %v1876_v18  ;;  %v1895_v53 = vcombine.high %v1869_v36, %v1869_v36  ;;  %v1958_v15 = vcombine.high %v1942_v32, %v1942_v32 }
 0x2bf   : > { %v1957_v40 = vcombine.high %v1935_v47, %v1935_v47 }
 0x2c2   : > { %1945 = vrot.lane.b32.xlu1 %v1942_v32, %s4015_s10  ;;  %1943 = vrot.lane.b32.xlu0 %v1935_v47, %s4015_s10 }
 0x2c6   : > { %1899 = vrot.lane.b32.xlu1 %v1896_v12, %s4015_s10  ;;  %1897 = vrot.lane.b32.xlu0 %v1895_v53, %s4015_s10 }
 0x2ca   : > { %1961 = vrot.lane.b32.xlu1 %v1958_v15, %s4015_s10  ;;  %1959 = vrot.lane.b32.xlu0 %v1957_v40, %s4015_s10 }
 0x330   : > { %v1880_v45 = vpop.permute.xlu1 %1879  ;;  %v1878_v42 = vpop.permute.xlu0 %1877 }
 0x331   : > { %v1882_v20 = vrot.slane %v1880_v45, 1  ;;  %v1881_v23 = vrot.slane %v1878_v42, 1 }
 0x333   : > { %v1885_v24 = vsel %vm1883_vm11, %v1880_v45, %v1882_v20  ;;  %v1884_v59 = vsel %vm1883_vm11, %v1878_v42, %v1881_v23 }
 0x334   : > { %3567 = vst.msk [vmem:[%s4136_s4 + $0x8] ss:$4 sm:$0x3] %vm5074_vm12, %v1885_v24  ;;  %1892 = vst.msk [vmem:[%s4136_s4] ss:$4 sm:$0x3] %vm5074_vm12, %v1884_v59  ;;  %v1946_v5 = vpop.permute.xlu1 %1945  ;;  %v1944_v43 = vpop.permute.xlu0 %1943 }
 0x335   : > { %v1948_v35 = vrot.slane %v1946_v5, 1  ;;  %v1947_v34 = vrot.slane %v1944_v43, 1 }
 0x337   : > { %v1950_v44 = vsel %vm1883_vm11, %v1946_v5, %v1948_v35  ;;  %v1949_v11 = vsel %vm1883_vm11, %v1944_v43, %v1947_v34 }
 0x338   : > { %3571 = vst.msk [vmem:[%s4136_s4 + $0xa] ss:$4 sm:$0x3] %vm5074_vm12, %v1950_v44  ;;  %3570 = vst.msk [vmem:[%s4136_s4 + $0x2] ss:$4 sm:$0x3] %vm5074_vm12, %v1949_v11  ;;  %v1900_v14 = vpop.permute.xlu1 %1899  ;;  %v1898_v54 = vpop.permute.xlu0 %1897 }
 0x339   : > { %v1902_v28 = vrot.slane %v1900_v14, 1  ;;  %v1901_v49 = vrot.slane %v1898_v54, 1 }
 0x33b   : > { %v1904_v8 = vsel %vm1883_vm11, %v1900_v14, %v1902_v28  ;;  %v1903_v21 = vsel %vm1883_vm11, %v1898_v54, %v1901_v49 }
 0x33c   : > { %3569 = vst.msk [vmem:[%s4136_s4 + $0x9] ss:$4 sm:$0x3] %vm5074_vm12, %v1904_v8  ;;  %3568 = vst.msk [vmem:[%s4136_s4 + $0x1] ss:$4 sm:$0x3] %vm5074_vm12, %v1903_v21  ;;  %v1962_v50 = vpop.permute.xlu1 %1961  ;;  %v1960_v3 = vpop.permute.xlu0 %1959 }
 0x33d   : > { %v1964_v25 = vrot.slane %v1962_v50, 1  ;;  %v1963_v58 = vrot.slane %v1960_v3, 1 }
 0x33f   : > { %v1966_v60 = vsel %vm1883_vm11, %v1962_v50, %v1964_v25  ;;  %v1965_v38 = vsel %vm1883_vm11, %v1960_v3, %v1963_v58 }
 0x340   : > { %3573 = vst.msk [vmem:[%s4136_s4 + $0xb] ss:$4 sm:$0x3] %vm5074_vm12, %v1966_v60  ;;  %3572 = vst.msk [vmem:[%s4136_s4 + $0x3] ss:$4 sm:$0x3] %vm5074_vm12, %v1965_v38 }
 0x341 PF: > { %p3574_p9 = scmp.ne.s32.totalorder %s3944_s9, 1 }
 0x342   : > { %v5112_v26 = vld [vmem:[%s4125_s22] sm:$0xff] (!%p3574_p9)  ;;  %v4016_v62 = vmov (!%p3574_p9), 3   ;;  %v4017_v48 = vmov (!%p3574_p9), 1   ;;  %v5817_v29 = vld [vmem:[#allocation4_spill] sm:$0xff] (!%p3574_p9)  ;;  %v4018_v19 = vmov (!%p3574_p9), 0.0   ;;  %v4019_v57 = vmov (!%p3574_p9), 4  }
 0x343   : > { %1976 = sbr.rel (%p3574_p9) target bundleno = 1349 (0x545), region = 36  ;;  %3849 = vset.pattern.permute.xlu1 (!%p3574_p9), %v4016_v62  ;;  %3847 = vset.pattern.permute.xlu0 (!%p3574_p9), %v4017_v48  ;;  %v5816_v30 = vld [vmem:[#allocation3_spill] sm:$0xff] (!%p3574_p9)  ;;  %vm2037_vm14 = vcmp.ge.s32.totalorder (!%p3574_p9), %v5817_v29, 4  ;;  %v4020_v52 = vmov (!%p3574_p9), 2   ;;  %vm2106_vm0 = vcmp.ge.s32.totalorder (!%p3574_p9), %v5817_v29, 3  ;;  %s4021_s16 = smov (!%p3574_p9), 124  }
 0x344   : > { %vm2036_vm13 = vcmp.ge.s32.totalorder (!%p3574_p9), %v5816_v30, 4  ;;  %2164 = vperm.xlu1 (!%p3574_p9), %3849, %v5112_v26   ;;  %2026 = vperm.xlu0 (!%p3574_p9), %3847, %v5112_v26   ;;  %v3578_v41 = vsel (!%p3574_p9), %vm2037_vm14, 1.0, %v4018_v19  ;;  %vm2105_vm15 = vcmp.ge.s32.totalorder (!%p3574_p9), %v5816_v30, 3  ;;  %v4022_v6 = vmov (!%p3574_p9), 5   ;;  %s4025_s17 = smov (!%p3574_p9), 125   ;;  %s4027_s18 = smov (!%p3574_p9), 127  }
 0x345   : > { %v3577_v31 = vsel (!%p3574_p9), %vm2036_vm13, 1.0, %v4018_v19  ;;  %vm2241_vm1 = vcmp.ge.s32.totalorder (!%p3574_p9), %v5816_v30, 1  ;;  %vm2242_vm2 = vcmp.ge.s32.totalorder (!%p3574_p9), %v5817_v29, 1  ;;  %v4023_v39 = vmov (!%p3574_p9), 6   ;;  %s4029_s19 = smov (!%p3574_p9), 126   ;;  %s4030_s20 = smov (!%p3574_p9), 3  }
 0x346   : > { %v3851_v10 = vpack.i.bf16 (!%p3574_p9), %v3578_v41, %v3577_v31  ;;  %v3579_v61 = vsel (!%p3574_p9), %vm2105_vm15, 1.0, %v4018_v19  ;;  %v3580_v63 = vsel (!%p3574_p9), %vm2106_vm0, 1.0, %v4018_v19  ;;  %vm2174_vm3 = vcmp.ge.s32.totalorder (!%p3574_p9), %v5816_v30, 2  ;;  %s4033_s21 = smov (!%p3574_p9), 5   ;;  %s4034_s23 = smov (!%p3574_p9), 1  }
 0x347   : > { %vm2175_vm4 = vcmp.ge.s32.totalorder (!%p3574_p9), %v5817_v29, 2  ;;  %v3583_v22 = vsel (!%p3574_p9), %vm2241_vm1, 1.0, %v4018_v19  ;;  %v3584_v7 = vsel (!%p3574_p9), %vm2242_vm2, 1.0, %v4018_v19  ;;  %v3858_v56 = vpack.i.bf16 (!%p3574_p9), %v3580_v63, %v3579_v61  ;;  %s4036_s24 = smov (!%p3574_p9), 123   ;;  %s4037_s25 = smov (!%p3574_p9), 2  }
 0x348   : > { %3850 = vset.pattern.permute.xlu1 (!%p3574_p9), %v4019_v57  ;;  %3848 = vset.pattern.permute.xlu0 (!%p3574_p9), %v4020_v52  ;;  %v4024_v33 = vmov (!%p3574_p9), 7   ;;  %v3581_v46 = vsel (!%p3574_p9), %vm2174_vm3, 1.0, %v4018_v19  ;;  %v3582_v16 = vsel (!%p3574_p9), %vm2175_vm4, 1.0, %v4018_v19  ;;  %v3870_v0 = vpack.i.bf16 (!%p3574_p9), %v3584_v7, %v3583_v22  ;;  %s4038_s26 = smov (!%p3574_p9), 4   ;;  %v5176_v54 = vld [vmem:[#allocation2 + $0x10] sm:$0xf0] (!%p3574_p9) }
 0x349   : > { %2231 = vperm.xlu1 (!%p3574_p9), %3850, %v5112_v26   ;;  %2095 = vperm.xlu0 (!%p3574_p9), %3848, %v5112_v26   ;;  %v3864_v13 = vpack.i.bf16 (!%p3574_p9), %v3582_v16, %v3581_v46  ;;  %vm2487_vm5 = vcmp.lt.s32.totalorder (!%p3574_p9), %v5816_v30, 13  ;;  %vm2488_vm6 = vcmp.lt.s32.totalorder (!%p3574_p9), %v5817_v29, 13  ;;  %v4026_v17 = vmov (!%p3574_p9), 8   ;;  %v5178_v28 = vld [vmem:[#allocation2 + $0x8] sm:$0xf0] (!%p3574_p9)  ;;  %s4039_s27 = smov (!%p3574_p9), 122  }
 0x34a   : > { %v4028_v51 = vmov 10   ;;  %v3589_v2 = vsel %vm2487_vm5, 1.0, %v4018_v19  ;;  %v3590_v4 = vsel %vm2488_vm6, 1.0, %v4018_v19  ;;  %vm2625_vm7 = vcmp.lt.s32.totalorder %v5816_v30, 11  ;;  %v5186_v58 = vld [vmem:[#allocation2 + $0x30] sm:$0xf] }
 0x34b   : > { %vm2626_vm8 = vcmp.lt.s32.totalorder %v5817_v29, 11  ;;  %v3887_v55 = vpack.i.bf16 %v3590_v4, %v3589_v2  ;;  %vm2349_vm9 = vcmp.lt.s32.totalorder %v5816_v30, 15  ;;  %vm2350_vm10 = vcmp.lt.s32.totalorder %v5817_v29, 15  ;;  %v5188_v60 = vld [vmem:[#allocation2 + $0x28] sm:$0xf]  ;;  %s4040_s28 = smov 121  }
 0x34c   : > { %v3593_v18 = vsel %vm2625_vm7, 1.0, %v4018_v19  ;;  %v3594_v36 = vsel %vm2626_vm8, 1.0, %v4018_v19  ;;  %vm1996_vm11 = vcmp.ge.s32.totalorder %v5816_v30, 5  ;;  %vm1997_vm12 = vcmp.ge.s32.totalorder %v5817_v29, 5  ;;  %v5190_v38 = vld [vmem:[#allocation2] sm:$0xf0] }
 0x34d   : > { %3852 = vrot.lane.b32.xlu1 %v3851_v10, %s4021_s16  ;;  %3856 = vset.pattern.permute.xlu0 %v4022_v6  ;;  %v3585_v1 = vsel %vm2349_vm9, 1.0, %v4018_v19  ;;  %v3586_v37 = vsel %vm2350_vm10, 1.0, %v4018_v19  ;;  %v3897_v32 = vpack.i.bf16 %v3594_v36, %v3593_v18  ;;  %vm2418_vm13 = vcmp.lt.s32.totalorder %v5816_v30, 14  ;;  %v5201_v41 = vld [vmem:[#allocation2 + $0x20] sm:$0xf]  ;;  %s4041_s29 = smov 120  }
 0x34e   : > { %2298 = vperm.xlu0 %3856, %v5112_v26   ;;  %3857 = vset.pattern.permute.xlu1 %v4023_v39  ;;  %vm2419_vm14 = vcmp.lt.s32.totalorder %v5817_v29, 14  ;;  %v3575_v47 = vsel %vm1996_vm11, 1.0, %v4018_v19  ;;  %v3576_v12 = vsel %vm1997_vm12, 1.0, %v4018_v19  ;;  %v4031_v53 = vmov 45   ;;  %s4042_s30 = smov 119   ;;  %s4043_s3 = smov 118  }
 0x34f   : > { %v4032_v15 = vmov 9   ;;  %v3877_v40 = vpack.i.bf16 %v3586_v37, %v3585_v1  ;;  %v3587_v45 = vsel %vm2418_vm13, 1.0, %v4018_v19  ;;  %v3588_v42 = vsel %vm2419_vm14, 1.0, %v4018_v19 }
 0x350   : > { %v3903_v27 = vpack.i.bf16 %v3576_v12, %v3575_v47  ;;  %vm2556_vm15 = vcmp.lt.s32.totalorder %v5816_v30, 12  ;;  %vm2557_vm0 = vcmp.lt.s32.totalorder %v5817_v29, 12  ;;  %v3882_v9 = vpack.i.bf16 %v3588_v42, %v3587_v45 }
 0x351   : > { %2339 = vperm.xlu1 %3857, %v5112_v26   ;;  %v3591_v20 = vsel %vm2556_vm15, 1.0, %v4018_v19  ;;  %v3592_v23 = vsel %vm2557_vm0, 1.0, %v4018_v19  ;;  %v4035_v24 = vmov 0   ;;  %vm2048_vm1 = vcmask 1014784  }
 0x352   : > { %3863 = vset.pattern.permute.xlu0 %v4024_v33  ;;  %v3892_v59 = vpack.i.bf16 %v3592_v23, %v3591_v20  ;;  %vm2117_vm2 = vcmask 1022976   ;;  %vm2146_vm3 = vcmask 1031168   ;;  %vm2008_vm4 = vcmask 1006592  }
 0x353   : > { %2408 = vperm.xlu0 %3863, %v5112_v26   ;;  %vm2077_vm5 = vcmask 1039360   ;;  %vm2361_vm6 = vcmask 7168   ;;  %vm2430_vm7 = vcmask 15360   ;;  %vm2499_vm8 = vcmask 23552  }
 0x354   : > { %vm2568_vm9 = vcmask 31744   ;;  %vm2637_vm10 = vcmask 39936   ;;  %vm2390_vm11 = vcmask 998400   ;;  %vm2459_vm12 = vcmask 990208  }
 0x355   : > { %3859 = vrot.lane.b32.xlu1 %v3858_v56, %s4025_s17  ;;  %vm2528_vm13 = vcmask 982016   ;;  %vm2597_vm14 = vcmask 973824   ;;  %vm2666_vm15 = vcmask 965632  }
 0x356   : > { %3869 = vset.pattern.permute.xlu1 %v4026_v17 }
 0x357   : > { %3871 = vrot.lane.b32.xlu0 %v3870_v0, %s4027_s18 }
 0x358   : > { %3876 = vset.pattern.permute.xlu0 %v4028_v51 }
 0x359   : > { %3865 = vrot.lane.b32.xlu1 %v3864_v13, %s4029_s19 }
 0x35b   : > { %2615 = vperm.xlu0 %3876, %v5112_v26  }
 0x35d   : > { %2477 = vperm.xlu1 %3869, %v5112_v26  }
 0x35f   : > { %3888 = vrot.lane.b32.xlu0 %v3887_v55, %s4030_s20 }
 0x360   : > { %3908 = vset.pattern.permute.xlu0 %v4031_v53 }
 0x361   : > { %3875 = vset.pattern.permute.xlu1 %v4032_v15 }
 0x362   : > { %2546 = vperm.xlu1 %3875, %v5112_v26  }
 0x363   : > { %3898 = vrot.lane.b32.xlu0 %v3897_v32, %s4033_s21 }
 0x366   : > { %3878 = vrot.lane.b32.xlu1 %v3877_v40, %s4034_s23 }
 0x367   : > { %3902 = vset.pattern.permute.xlu1 %v4035_v24  ;;  %3904 = vrot.lane.b32.xlu0 %v3903_v27, %s4036_s24 }
 0x36a   : > { %3883 = vrot.lane.b32.xlu1 %v3882_v9, %s4037_s25 }
 0x36b   : > { %2684 = vperm.xlu0 %3908, %v5112_v26  }
 0x36e   : > { %3893 = vrot.lane.b32.xlu1 %v3892_v59, %s4038_s26 }
 0x372   : > { %1986 = vperm.xlu1 %3902, %v5112_v26  }
 0x3c3   : > { %v2027_v5 = vpop.permute.xlu0 %2026  ;;  %v5172_v43 = vpop.permute.xlu1 %2164 }
 0x3c4   : > { %v2028_v25 = vrot.slane %v2027_v5, 4  ;;  %v2166_v9 = vrot.slane %v5172_v43, 4 }
 0x3c6   : > { %v2031_v19 = vmul.f32 %v2028_v25, %v5178_v28  ;;  %v2030_v31 = vmul.f32 %v2028_v25, %v5190_v38  ;;  %v2033_v39 = vmul.f32 %v2028_v25, %v5201_v41  ;;  %v2032_v61 = vmul.f32 %v2028_v25, %v5176_v54 }
 0x3c7   : > { %v2035_v16 = vmul.f32 %v2028_v25, %v5186_v58  ;;  %v2034_v0 = vmul.f32 %v2028_v25, %v5188_v60  ;;  %v2169_v43 = vmul.f32 %v2166_v9, %v5178_v28  ;;  %v2170_v25 = vmul.f32 %v2166_v9, %v5176_v54 }
 0x3c8   : > { %v5174_v35 = vpop.permute.xlu1 %2231  ;;  %v2096_v34 = vpop.permute.xlu0 %2095 }
 0x3c9   : > { %v2097_v46 = vrot.slane %v2096_v34, 4 }
 0x3cb   : > { %v2100_v55 = vmul.f32 %v2097_v46, %v5178_v28  ;;  %v2099_v18 = vmul.f32 %v2097_v46, %v5190_v38  ;;  %v2102_v47 = vmul.f32 %v2097_v46, %v5201_v41  ;;  %v2101_v12 = vmul.f32 %v2097_v46, %v5176_v54 }
 0x3cc   : > { %v3853_v44 = vpop.permute.xlu1 %3852  ;;  %v2104_v20 = vmul.f32 %v2097_v46, %v5186_v58  ;;  %v2103_v23 = vmul.f32 %v2097_v46, %v5188_v60  ;;  %v2233_v46 = vrot.slane %v5174_v35, 4 }
 0x3cd   : > { %v2299_v11 = vpop.permute.xlu0 %2298  ;;  %v3855_v50 = vunpack.i.h.bf16 %v3853_v44  ;;  %v3854_v3 = vunpack.i.l.bf16 %v3853_v44 }
 0x3ce   : > { %v2300_v14 = vrot.slane %v2299_v11, 4  ;;  %v2168_v11 = vmul.f32 %v2166_v9, %v5190_v38 }
 0x3cf   : > { %v2049_v29 = vsel %vm2048_vm1, %v3854_v3, %v3855_v50  ;;  %v2053_v10 = vmul.f32 %v3854_v3, %v2030_v31  ;;  %v2056_v22 = vmul.f32 %v3854_v3, %v2033_v39  ;;  %v2055_v7 = vmul.f32 %v3855_v50, %v2032_v61 }
 0x3d0   : > { %v5180_v49 = vpop.permute.xlu1 %2339  ;;  %v2303_v8 = vmul.f32 %v2300_v14, %v5176_v54  ;;  %v2302_v21 = vmul.f32 %v2300_v14, %v5178_v28  ;;  %v2305_v48 = vmul.f32 %v2300_v14, %v5186_v58  ;;  %v2304_v30 = vmul.f32 %v2300_v14, %v5188_v60 }
 0x3d1   : > { %v2054_v52 = vmul.f32 %v2049_v29, %v2031_v19  ;;  %v2058_v17 = vmul.f32 %v3855_v50, %v2035_v16  ;;  %v2057_v51 = vmul.f32 %v2049_v29, %v2034_v0  ;;  %v2171_v3 = vmul.f32 %v2166_v9, %v5201_v41 }
 0x3d2   : > { %2312 = vrot.lane.b32.xlu0 %v2303_v8, %s4036_s24  ;;  %2310 = vrot.lane.b32.xlu1 %v2302_v21, %s4036_s24  ;;  %v5192_v26 = vpop.permute.xlu0 %2408  ;;  %v2172_v31 = vmul.f32 %v2166_v9, %v5188_v60 }
 0x3d4   : > { %v3860_v62 = vpop.permute.xlu1 %3859 }
 0x3d5   : > { %v3862_v56 = vunpack.i.h.bf16 %v3860_v62  ;;  %v3861_v33 = vunpack.i.l.bf16 %v3860_v62 }
 0x3d6   : > { %2316 = vrot.lane.b32.xlu0 %v2305_v48, %s4036_s24  ;;  %2314 = vrot.lane.b32.xlu1 %v2304_v30, %s4036_s24  ;;  %v5203_v6 = vpop.permute.xlu0 %3871  ;;  %v2173_v48 = vmul.f32 %v2166_v9, %v5186_v58 }
 0x3d7   : > { %v2118_v4 = vsel %vm2117_vm2, %v3861_v33, %v3862_v56  ;;  %v2122_v1 = vmul.f32 %v3861_v33, %v2099_v18  ;;  %v2125_v53 = vmul.f32 %v3861_v33, %v2102_v47  ;;  %v2124_v15 = vmul.f32 %v3862_v56, %v2101_v12 }
 0x3d8   : > { %v3866_v57 = vpop.permute.xlu1 %3865  ;;  %v2123_v36 = vmul.f32 %v2118_v4, %v2100_v55  ;;  %v2127_v24 = vmul.f32 %v3862_v56, %v2104_v20  ;;  %v2126_v59 = vmul.f32 %v2118_v4, %v2103_v23  ;;  %v2239_v23 = vmul.f32 %v2233_v46, %v5188_v60 }
 0x3d9   : > { %v3868_v45 = vunpack.i.h.bf16 %v3866_v57  ;;  %v3867_v42 = vunpack.i.l.bf16 %v3866_v57 }
 0x3da   : > { %2067 = vrot.lane.b32.xlu0 %v2054_v52, %s4027_s18  ;;  %2065 = vrot.lane.b32.xlu1 %v2053_v10, %s4027_s18  ;;  %v5215_v13 = vpop.permute.xlu0 %2615 }
 0x3db   : > { %v2186_v34 = vsel %vm2146_vm3, %v3867_v42, %v3868_v45  ;;  %v2190_v50 = vmul.f32 %v3867_v42, %v2168_v11  ;;  %v2193_v29 = vmul.f32 %v3867_v42, %v2171_v3  ;;  %v2192_v19 = vmul.f32 %v3868_v45, %v2170_v25 }
 0x3dc   : > { %v5209_v63 = vpop.permute.xlu1 %2477  ;;  %v2191_v21 = vmul.f32 %v2186_v34, %v2169_v43  ;;  %v2195_v55 = vmul.f32 %v3868_v45, %v2173_v48  ;;  %v2194_v18 = vmul.f32 %v2186_v34, %v2172_v31  ;;  %v5302_v34 = vld [vmem:[#allocation2 + $0x28] sm:$0xf] }
 0x3de   : > { %2071 = vrot.lane.b32.xlu0 %v2056_v22, %s4027_s18  ;;  %2069 = vrot.lane.b32.xlu1 %v2055_v7, %s4027_s18  ;;  %v5224_v37 = vpop.permute.xlu0 %3888  ;;  %v3874_v22 = vunpack.i.h.bf16 %v5203_v6  ;;  %v3873_v7 = vunpack.i.l.bf16 %v5203_v6 }
 0x3e0   : > { %v2253_v35 = vsel %vm2077_vm5, %v3873_v7, %v3874_v22 }
 0x3e1   : > { %v5217_v2 = vpop.permute.xlu1 %2546 }
 0x3e2   : > { %2075 = vrot.lane.b32.xlu0 %v2058_v17, %s4027_s18  ;;  %2073 = vrot.lane.b32.xlu1 %v2057_v51, %s4027_s18  ;;  %v5232_v40 = vpop.permute.xlu0 %3898 }
 0x3e5   : > { %v5226_v32 = vpop.permute.xlu1 %3878 }
 0x3e6   : > { %2136 = vrot.lane.b32.xlu0 %v2123_v36, %s4029_s19  ;;  %2134 = vrot.lane.b32.xlu1 %v2122_v1, %s4029_s19  ;;  %v3905_v5 = vpop.permute.xlu0 %3904  ;;  %v2236_v36 = vmul.f32 %v2233_v46, %v5178_v28  ;;  %v2235_v1 = vmul.f32 %v2233_v46, %v5190_v38  ;;  %v3881_v9 = vunpack.i.h.bf16 %v5226_v32  ;;  %v3880_v20 = vunpack.i.l.bf16 %v5226_v32 }
 0x3e7   : > { %v3907_v14 = vunpack.i.h.bf16 %v3905_v5  ;;  %v3906_v8 = vunpack.i.l.bf16 %v3905_v5 }
 0x3e8   : > { %v2258_v47 = vmul.f32 %v2253_v35, %v2236_v36  ;;  %v2257_v12 = vmul.f32 %v3873_v7, %v2235_v1  ;;  %v2362_v5 = vsel %vm2361_vm6, %v3880_v20, %v3881_v9 }
 0x3e9   : > { %v5234_v27 = vpop.permute.xlu1 %3883  ;;  %v2009_v57 = vsel %vm2008_vm4, %v3906_v8, %v3907_v14 }
 0x3ea   : > { %2140 = vrot.lane.b32.xlu0 %v2125_v53, %s4029_s19  ;;  %2138 = vrot.lane.b32.xlu1 %v2124_v15, %s4029_s19  ;;  %v2238_v53 = vmul.f32 %v2233_v46, %v5201_v41  ;;  %v2237_v15 = vmul.f32 %v2233_v46, %v5176_v54  ;;  %v3885_v48 = vunpack.i.l.bf16 %v5234_v27 }
 0x3ec   : > { %v2260_v45 = vmul.f32 %v3873_v7, %v2238_v53  ;;  %v2259_v42 = vmul.f32 %v3874_v22, %v2237_v15  ;;  %v3891_v7 = vunpack.i.h.bf16 %v5224_v37 }
 0x3ed   : > { %v5242_v44 = vpop.permute.xlu1 %3893 }
 0x3ee   : > { %2144 = vrot.lane.b32.xlu0 %v2127_v24, %s4029_s19  ;;  %2142 = vrot.lane.b32.xlu1 %v2126_v59, %s4029_s19  ;;  %v2261_v59 = vmul.f32 %v2253_v35, %v2239_v23 }
 0x3f1   : > { %v1987_v62 = vpop.permute.xlu1 %1986 }
 0x3f2   : > { %2204 = vrot.lane.b32.xlu0 %v2191_v21, %s4025_s17  ;;  %2202 = vrot.lane.b32.xlu1 %v2190_v50, %s4025_s17  ;;  %v1988_v30 = vrot.slane %v1987_v62, 4  ;;  %v5310_v21 = vld [vmem:[#allocation2 + $0x30] sm:$0xf]  ;;  %v2410_v50 = vrot.slane %v5192_v26, 4  ;;  %v3886_v62 = vunpack.i.h.bf16 %v5234_v27  ;;  %v2479_v27 = vrot.slane %v5209_v63, 4 }
 0x3f4   : > { %v1990_v52 = vmul.f32 %v1988_v30, %v5190_v38  ;;  %v1991_v10 = vmul.f32 %v1988_v30, %v5178_v28  ;;  %v1992_v39 = vmul.f32 %v1988_v30, %v5176_v54  ;;  %v1995_v61 = vmul.f32 %v1988_v30, %v5186_v58  ;;  %v5296_v54 = vld [vmem:[#allocation2 + $0x8] sm:$0xf0] }
 0x3f5   : > { %v1993_v56 = vmul.f32 %v1988_v30, %v5201_v41  ;;  %v1994_v33 = vmul.f32 %v1988_v30, %v5188_v60  ;;  %v2341_v28 = vrot.slane %v5180_v49, 4  ;;  %v2240_v38 = vmul.f32 %v2233_v46, %v5186_v58  ;;  %v5294_v41 = vld [vmem:[#allocation2 + $0x10] sm:$0xf0]  ;;  %v5304_v58 = vld [vmem:[#allocation2 + $0x18] sm:$0xf0] }
 0x3f6   : > { %2208 = vrot.lane.b32.xlu0 %v2193_v29, %s4025_s17  ;;  %2206 = vrot.lane.b32.xlu1 %v2192_v19, %s4025_s17  ;;  %v5266_v16 = vmul.f32 %v3906_v8, %v1990_v52  ;;  %v5268_v0 = vmul.f32 %v2009_v57, %v1991_v10  ;;  %v5270_v17 = vmul.f32 %v3907_v14, %v1992_v39 }
 0x3f7   : > { %v5272_v51 = vmul.f32 %v3907_v14, %v1995_v61  ;;  %v5274_v4 = vmul.f32 %v3906_v8, %v1993_v56  ;;  %v5276_v6 = vmul.f32 %v2009_v57, %v1994_v33  ;;  %v2262_v24 = vmul.f32 %v3874_v22, %v2240_v38  ;;  %v5308_v8 = vld [vmem:[#allocation2 + $0x38] sm:$0xf] }
 0x3f8   : > { %v2344_v49 = vmul.f32 %v2341_v28, %v5294_v41  ;;  %v2343_v32 = vmul.f32 %v2341_v28, %v5296_v54  ;;  %v2346_v11 = vmul.f32 %v2341_v28, %v5302_v34  ;;  %v2345_v14 = vmul.f32 %v2341_v28, %v5304_v58 }
 0x3f9   : > { %v2348_v30 = vmul.f32 %v2341_v28, %v5308_v8  ;;  %v2347_v29 = vmul.f32 %v2341_v28, %v5310_v21  ;;  %v2413_v57 = vmul.f32 %v2410_v50, %v5294_v41  ;;  %v2412_v52 = vmul.f32 %v2410_v50, %v5296_v54 }
 0x3fa   : > { %2212 = vrot.lane.b32.xlu0 %v2195_v55, %s4025_s17  ;;  %2210 = vrot.lane.b32.xlu1 %v2194_v18, %s4025_s17  ;;  %v2367_v60 = vmul.f32 %v2362_v5, %v2344_v49  ;;  %v2366_v43 = vmul.f32 %v3880_v20, %v2343_v32  ;;  %v2369_v3 = vmul.f32 %v3880_v20, %v2346_v11  ;;  %v3890_v56 = vunpack.i.l.bf16 %v5224_v37 }
 0x3fb   : > { %v2368_v25 = vmul.f32 %v3881_v9, %v2345_v14  ;;  %v2371_v19 = vmul.f32 %v3881_v9, %v2348_v30  ;;  %v2370_v31 = vmul.f32 %v2362_v5, %v2347_v29  ;;  %v2431_v26 = vsel %vm2430_vm7, %v3885_v48, %v3886_v62 }
 0x3fc   : > { %v2415_v10 = vmul.f32 %v2410_v50, %v5302_v34  ;;  %v2436_v39 = vmul.f32 %v2431_v26, %v2413_v57  ;;  %v2435_v61 = vmul.f32 %v3885_v48, %v2412_v52  ;;  %v2414_v22 = vmul.f32 %v2410_v50, %v5304_v58 }
 0x3fd   : > { %v2482_v55 = vmul.f32 %v2479_v27, %v5294_v41  ;;  %v2416_v18 = vmul.f32 %v2410_v50, %v5310_v21  ;;  %v2500_v35 = vsel %vm2499_vm8, %v3890_v56, %v3891_v7  ;;  %v2484_v1 = vmul.f32 %v2479_v27, %v5302_v34 }
 0x3fe   : > { %2271 = vrot.lane.b32.xlu0 %v2258_v47, %s4021_s16  ;;  %2269 = vrot.lane.b32.xlu1 %v2257_v12, %s4021_s16  ;;  %v2438_v33 = vmul.f32 %v3885_v48, %v2415_v10  ;;  %v2437_v46 = vmul.f32 %v3886_v62, %v2414_v22  ;;  %v2417_v47 = vmul.f32 %v2410_v50, %v5308_v8  ;;  %v2548_v12 = vrot.slane %v5217_v2, 4 }
 0x3ff   : > { %v2505_v63 = vmul.f32 %v2500_v35, %v2482_v55  ;;  %v2439_v36 = vmul.f32 %v2431_v26, %v2416_v18  ;;  %v2486_v37 = vmul.f32 %v2479_v27, %v5308_v8  ;;  %v2507_v53 = vmul.f32 %v3890_v56, %v2484_v1 }
 0x400   : > { %v2440_v15 = vmul.f32 %v3886_v62, %v2417_v47  ;;  %v3895_v9 = vunpack.i.l.bf16 %v5242_v44  ;;  %v2551_v38 = vmul.f32 %v2548_v12, %v5294_v41  ;;  %v2483_v23 = vmul.f32 %v2479_v27, %v5304_v58 }
 0x401   : > { %v2509_v20 = vmul.f32 %v3891_v7, %v2486_v37  ;;  %v2553_v5 = vmul.f32 %v2548_v12, %v5302_v34  ;;  %v2617_v49 = vrot.slane %v5215_v13, 4  ;;  %v2550_v11 = vmul.f32 %v2548_v12, %v5296_v54 }
 0x402   : > { %2275 = vrot.lane.b32.xlu0 %v2260_v45, %s4021_s16  ;;  %2273 = vrot.lane.b32.xlu1 %v2259_v42, %s4021_s16  ;;  %v2481_v45 = vmul.f32 %v2479_v27, %v5296_v54  ;;  %v3896_v42 = vunpack.i.h.bf16 %v5242_v44  ;;  %v2485_v44 = vmul.f32 %v2479_v27, %v5310_v21  ;;  %v3901_v14 = vunpack.i.h.bf16 %v5232_v40 }
 0x403   : > { %v2576_v32 = vmul.f32 %v3895_v9, %v2553_v5  ;;  %v3900_v50 = vunpack.i.l.bf16 %v5232_v40  ;;  %v2620_v62 = vmul.f32 %v2617_v49, %v5294_v41  ;;  %v2552_v13 = vmul.f32 %v2548_v12, %v5304_v58 }
 0x404   : > { %v2504_v28 = vmul.f32 %v3890_v56, %v2481_v45  ;;  %v2622_v40 = vmul.f32 %v2617_v49, %v5302_v34  ;;  %v2624_v57 = vmul.f32 %v2617_v49, %v5308_v8  ;;  %v2619_v52 = vmul.f32 %v2617_v49, %v5296_v54  ;;  %v5362_v34 = vpop.permute.xlu0 %2684 }
 0x405   : > { %v2638_v48 = vsel %vm2637_vm10, %v3900_v50, %v3901_v14  ;;  %v2575_v29 = vmul.f32 %v3896_v42, %v2552_v13  ;;  %v2621_v27 = vmul.f32 %v2617_v49, %v5304_v58 }
 0x406   : > { %2279 = vrot.lane.b32.xlu0 %v2262_v24, %s4021_s16  ;;  %2277 = vrot.lane.b32.xlu1 %v2261_v59, %s4021_s16  ;;  %v2569_v24 = vsel %vm2568_vm9, %v3895_v9, %v3896_v42  ;;  %v2506_v59 = vmul.f32 %v3891_v7, %v2483_v23  ;;  %v2643_v30 = vmul.f32 %v2638_v48, %v2620_v62 }
 0x407   : > { %v2574_v2 = vmul.f32 %v2569_v24, %v2551_v38  ;;  %v2647_v26 = vmul.f32 %v3901_v14, %v2624_v57  ;;  %v2642_v10 = vmul.f32 %v3900_v50, %v2619_v52 }
 0x40a   : > { %2380 = vrot.lane.b32.xlu0 %v2367_v60, %s4039_s27  ;;  %2378 = vrot.lane.b32.xlu1 %v2366_v43, %s4039_s27  ;;  %v2508_v60 = vmul.f32 %v2500_v35, %v2485_v44  ;;  %v2555_v43 = vmul.f32 %v2548_v12, %v5308_v8 }
 0x40e   : > { %2384 = vrot.lane.b32.xlu0 %v2369_v3, %s4039_s27  ;;  %2382 = vrot.lane.b32.xlu1 %v2368_v25, %s4039_s27  ;;  %v2578_v3 = vmul.f32 %v3896_v42, %v2555_v43  ;;  %v2573_v25 = vmul.f32 %v3895_v9, %v2550_v11 }
 0x412   : > { %2388 = vrot.lane.b32.xlu0 %v2371_v19, %s4039_s27  ;;  %2386 = vrot.lane.b32.xlu1 %v2370_v31, %s4039_s27  ;;  %v2554_v19 = vmul.f32 %v2548_v12, %v5310_v21  ;;  %v2645_v31 = vmul.f32 %v3900_v50, %v2622_v40 }
 0x414   : > { %v2577_v41 = vmul.f32 %v2569_v24, %v2554_v19 }
 0x416   : > { %2449 = vrot.lane.b32.xlu0 %v2436_v39, %s4040_s28  ;;  %2447 = vrot.lane.b32.xlu1 %v2435_v61, %s4040_s28  ;;  %v2644_v39 = vmul.f32 %v3901_v14, %v2621_v27  ;;  %v2623_v61 = vmul.f32 %v2617_v49, %v5310_v21 }
 0x418   : > { %v2646_v7 = vmul.f32 %v2638_v48, %v2623_v61 }
 0x41a   : > { %2453 = vrot.lane.b32.xlu0 %v2438_v33, %s4040_s28  ;;  %2451 = vrot.lane.b32.xlu1 %v2437_v46, %s4040_s28 }
 0x41e   : > { %2518 = vrot.lane.b32.xlu0 %v2505_v63, %s4041_s29  ;;  %2455 = vrot.lane.b32.xlu1 %v2439_v36, %s4040_s28 }
 0x422   : > { %2522 = vrot.lane.b32.xlu0 %v2507_v53, %s4041_s29  ;;  %2457 = vrot.lane.b32.xlu1 %v2440_v15, %s4040_s28 }
 0x426   : > { %2526 = vrot.lane.b32.xlu0 %v2509_v20, %s4041_s29  ;;  %2516 = vrot.lane.b32.xlu1 %v2504_v28, %s4041_s29 }
 0x42a   : > { %2587 = vrot.lane.b32.xlu0 %v2574_v2, %s4042_s30  ;;  %2520 = vrot.lane.b32.xlu1 %v2506_v59, %s4041_s29 }
 0x42e   : > { %2591 = vrot.lane.b32.xlu0 %v2576_v32, %s4042_s30  ;;  %2524 = vrot.lane.b32.xlu1 %v2508_v60, %s4041_s29 }
 0x432   : > { %2595 = vrot.lane.b32.xlu0 %v2578_v3, %s4042_s30  ;;  %2585 = vrot.lane.b32.xlu1 %v2573_v25, %s4042_s30 }
 0x436   : > { %2656 = vrot.lane.b32.xlu0 %v2643_v30, %s4043_s3  ;;  %2589 = vrot.lane.b32.xlu1 %v2575_v29, %s4042_s30 }
 0x43a   : > { %2660 = vrot.lane.b32.xlu0 %v2645_v31, %s4043_s3  ;;  %2593 = vrot.lane.b32.xlu1 %v2577_v41, %s4042_s30 }
 0x43e   : > { %2664 = vrot.lane.b32.xlu0 %v2647_v26, %s4043_s3  ;;  %2654 = vrot.lane.b32.xlu1 %v2642_v10, %s4043_s3 }
 0x442   : > { %2658 = vrot.lane.b32.xlu1 %v2644_v39, %s4043_s3 }
 0x444   : > { %v5365_v22 = vpop.permute.xlu0 %2312  ;;  %v2311_v8 = vpop.permute.xlu1 %2310 }
 0x445   : > { %v5369_v54 = vsel %vm2008_vm4, %v2311_v8, %v5365_v22 }
 0x446   : > { %2662 = vrot.lane.b32.xlu1 %v2646_v7, %s4043_s3 }
 0x448   : > { %v5371_v56 = vpop.permute.xlu0 %2316  ;;  %v5373_v58 = vpop.permute.xlu1 %2314 }
 0x449   : > { %v5378_v33 = vsel %vm2008_vm4, %v5373_v58, %v5371_v56 }
 0x44c   : > { %v2068_v21 = vpop.permute.xlu0 %2067  ;;  %v2066_v46 = vpop.permute.xlu1 %2065 }
 0x44d   : > { %v2078_v55 = vsel %vm2077_vm5, %v2066_v46, %v2068_v21 }
 0x44e   : > { %v2088_v18 = vadd.f32 %v2078_v55, %v5266_v16 }
 0x450   : > { %v2072_v35 = vpop.permute.xlu0 %2071  ;;  %v2070_v63 = vpop.permute.xlu1 %2069 }
 0x451   : > { %v2079_v36 = vsel %vm2077_vm5, %v2068_v21, %v2070_v63  ;;  %v2090_v1 = vadd.f32 %v2070_v63, %v5270_v17 }
 0x452   : > { %v2089_v47 = vadd.f32 %v2079_v36, %v5268_v0 }
 0x454   : > { %v2076_v37 = vpop.permute.xlu0 %2075  ;;  %v2074_v12 = vpop.permute.xlu1 %2073 }
 0x455   : > { %v2093_v53 = vadd.f32 %v2076_v37, %v5272_v51  ;;  %v2080_v15 = vsel %vm2077_vm5, %v2072_v35, %v2074_v12  ;;  %v2081_v45 = vsel %vm2077_vm5, %v2074_v12, %v2076_v37 }
 0x456   : > { %v2091_v42 = vadd.f32 %v2080_v15, %v5274_v4  ;;  %v2092_v16 = vadd.f32 %v2081_v45, %v5276_v6 }
 0x458   : > { %v2137_v9 = vpop.permute.xlu0 %2136  ;;  %v2135_v20 = vpop.permute.xlu1 %2134 }
 0x459   : > { %v2147_v28 = vsel %vm2146_vm3, %v2135_v20, %v2137_v9 }
 0x45a   : > { %v2157_v38 = vadd.f32 %v2147_v28, %v2088_v18 }
 0x45c   : > { %v2141_v17 = vpop.permute.xlu0 %2140  ;;  %v2139_v23 = vpop.permute.xlu1 %2138 }
 0x45d   : > { %v2148_v0 = vsel %vm2146_vm3, %v2137_v9, %v2139_v23  ;;  %v2159_v24 = vadd.f32 %v2139_v23, %v2090_v1 }
 0x45e   : > { %v2158_v2 = vadd.f32 %v2148_v0, %v2089_v47 }
 0x460   : > { %v2145_v51 = vpop.permute.xlu0 %2144  ;;  %v2143_v59 = vpop.permute.xlu1 %2142 }
 0x461   : > { %v2162_v5 = vadd.f32 %v2145_v51, %v2093_v53  ;;  %v2149_v44 = vsel %vm2146_vm3, %v2141_v17, %v2143_v59  ;;  %v2150_v4 = vsel %vm2146_vm3, %v2143_v59, %v2145_v51 }
 0x462   : > { %v2160_v49 = vadd.f32 %v2149_v44, %v2091_v42  ;;  %v2161_v6 = vadd.f32 %v2150_v4, %v2092_v16 }
 0x464   : > { %v2205_v32 = vpop.permute.xlu0 %2204  ;;  %v2203_v60 = vpop.permute.xlu1 %2202 }
 0x465   : > { %v2214_v43 = vsel %vm2117_vm2, %v2203_v60, %v2205_v32 }
 0x466   : > { %v2224_v11 = vadd.f32 %v2214_v43, %v2157_v38 }
 0x468   : > { %v2209_v14 = vpop.permute.xlu0 %2208  ;;  %v2207_v50 = vpop.permute.xlu1 %2206 }
 0x469   : > { %v2215_v48 = vsel %vm2117_vm2, %v2205_v32, %v2207_v50  ;;  %v2226_v40 = vadd.f32 %v2207_v50, %v2159_v24 }
 0x46a   : > { %v2225_v19 = vadd.f32 %v2215_v48, %v2158_v2 }
 0x46c   : > { %v2213_v3 = vpop.permute.xlu0 %2212  ;;  %v2211_v25 = vpop.permute.xlu1 %2210 }
 0x46d   : > { %v2216_v52 = vsel %vm2117_vm2, %v2209_v14, %v2211_v25  ;;  %v2217_v26 = vsel %vm2117_vm2, %v2211_v25, %v2213_v3  ;;  %v2229_v61 = vadd.f32 %v2213_v3, %v2162_v5 }
 0x46e   : > { %v2227_v21 = vadd.f32 %v2216_v52, %v2160_v49  ;;  %v2228_v46 = vadd.f32 %v2217_v26, %v2161_v6 }
 0x470   : > { %v2272_v62 = vpop.permute.xlu0 %2271  ;;  %v2270_v13 = vpop.permute.xlu1 %2269 }
 0x471   : > { %v2281_v30 = vsel %vm2048_vm1, %v2270_v13, %v2272_v62 }
 0x472   : > { %v2291_v29 = vadd.f32 %v2281_v30, %v2224_v11 }
 0x474   : > { %v2276_v31 = vpop.permute.xlu0 %2275  ;;  %v2274_v41 = vpop.permute.xlu1 %2273  ;;  %v2326_v57 = vadd.f32 %v2311_v8, %v2291_v29 }
 0x475   : > { %v2282_v10 = vsel %vm2048_vm1, %v2272_v62, %v2274_v41  ;;  %v2293_v27 = vadd.f32 %v2274_v41, %v2226_v40  ;;  %v2686_v62 = vrot.slane %v5362_v34, 4 }
 0x476   : > { %v2292_v39 = vadd.f32 %v2282_v10, %v2225_v19 }
 0x477   : > { %v2328_v7 = vadd.f32 %v5365_v22, %v2293_v27 }
 0x478   : > { %v2280_v55 = vpop.permute.xlu0 %2279  ;;  %v2278_v18 = vpop.permute.xlu1 %2277  ;;  %v2327_v35 = vadd.f32 %v5369_v54, %v2292_v39 }
 0x479   : > { %v2296_v63 = vadd.f32 %v2280_v55, %v2229_v61  ;;  %v2283_v8 = vsel %vm2048_vm1, %v2276_v31, %v2278_v18  ;;  %v2284_v36 = vsel %vm2048_vm1, %v2278_v18, %v2280_v55 }
 0x47a   : > { %v2294_v1 = vadd.f32 %v2283_v8, %v2227_v21  ;;  %v2295_v47 = vadd.f32 %v2284_v36, %v2228_v46 }
 0x47b   : > { %v2331_v37 = vadd.f32 %v5371_v56, %v2296_v63 }
 0x47c   : > { %v2381_v12 = vpop.permute.xlu0 %2380  ;;  %v2379_v53 = vpop.permute.xlu1 %2378  ;;  %v2329_v15 = vadd.f32 %v5373_v58, %v2294_v1  ;;  %v2330_v22 = vadd.f32 %v5378_v33, %v2295_v47 }
 0x47d   : > { %v2391_v4 = vsel %vm2390_vm11, %v2379_v53, %v2381_v12  ;;  %v2401_v6 = vadd.f32 %v2379_v53, %v2326_v57 }
 0x47e   : > { %v2402_v60 = vadd.f32 %v2391_v4, %v2327_v35 }
 0x480   : > { %v2385_v45 = vpop.permute.xlu0 %2384  ;;  %v2383_v42 = vpop.permute.xlu1 %2382 }
 0x481   : > { %v2392_v43 = vsel %vm2390_vm11, %v2381_v12, %v2383_v42  ;;  %v2404_v29 = vadd.f32 %v2385_v45, %v2329_v15 }
 0x482   : > { %v2403_v40 = vadd.f32 %v2392_v43, %v2328_v7 }
 0x484   : > { %v2389_v16 = vpop.permute.xlu0 %2388  ;;  %v2387_v9 = vpop.permute.xlu1 %2386 }
 0x485   : > { %v2393_v31 = vsel %vm2390_vm11, %v2385_v45, %v2387_v9  ;;  %v2394_v41 = vsel %vm2390_vm11, %v2387_v9, %v2389_v16 }
 0x486   : > { %v2405_v55 = vadd.f32 %v2393_v31, %v2330_v22  ;;  %v2406_v18 = vadd.f32 %v2394_v41, %v2331_v37 }
 0x488   : > { %v2450_v54 = vpop.permute.xlu0 %2449  ;;  %v2448_v20 = vpop.permute.xlu1 %2447 }
 0x489   : > { %v2460_v32 = vsel %vm2459_vm12, %v2448_v20, %v2450_v54  ;;  %v2470_v11 = vadd.f32 %v2448_v20, %v2401_v6 }
 0x48a   : > { %v2471_v50 = vadd.f32 %v2460_v32, %v2402_v60 }
 0x48c   : > { %v2454_v28 = vpop.permute.xlu0 %2453  ;;  %v2452_v38 = vpop.permute.xlu1 %2451 }
 0x48d   : > { %v2461_v13 = vsel %vm2459_vm12, %v2450_v54, %v2452_v38  ;;  %v2473_v26 = vadd.f32 %v2454_v28, %v2404_v29 }
 0x48e   : > { %v2472_v10 = vadd.f32 %v2461_v13, %v2403_v40 }
 0x490   : > { %v2519_v17 = vpop.permute.xlu0 %2518  ;;  %v2456_v23 = vpop.permute.xlu1 %2455 }
 0x491   : > { %v2462_v34 = vsel %vm2459_vm12, %v2454_v28, %v2456_v23 }
 0x492   : > { %v2474_v53 = vadd.f32 %v2462_v34, %v2405_v55 }
 0x494   : > { %v2523_v0 = vpop.permute.xlu0 %2522  ;;  %v2458_v24 = vpop.permute.xlu1 %2457 }
 0x495   : > { %v2463_v61 = vsel %vm2459_vm12, %v2456_v23, %v2458_v24  ;;  %v2542_v36 = vadd.f32 %v2523_v0, %v2473_v26 }
 0x496   : > { %v2475_v15 = vadd.f32 %v2463_v61, %v2406_v18 }
 0x498   : > { %v2527_v2 = vpop.permute.xlu0 %2526  ;;  %v2517_v56 = vpop.permute.xlu1 %2516 }
 0x499   : > { %v2529_v14 = vsel %vm2528_vm13, %v2517_v56, %v2519_v17  ;;  %v2539_v48 = vadd.f32 %v2517_v56, %v2470_v11 }
 0x49a   : > { %v2540_v19 = vadd.f32 %v2529_v14, %v2471_v50 }
 0x49c   : > { %v2588_v51 = vpop.permute.xlu0 %2587  ;;  %v2521_v59 = vpop.permute.xlu1 %2520 }
 0x49d   : > { %v2530_v57 = vsel %vm2528_vm13, %v2519_v17, %v2521_v59 }
 0x49e   : > { %v2541_v35 = vadd.f32 %v2530_v57, %v2472_v10  ;;  %v5819_v10 = vlaneseq }
 0x4a0   : > { %v2592_v5 = vpop.permute.xlu0 %2591  ;;  %v2525_v58 = vpop.permute.xlu1 %2524  ;;  %vm5445_vm0 = vcmp.lt.s32.totalorder %v5819_v10, 256 }
 0x4a1   : > { %v2531_v1 = vsel %vm2528_vm13, %v2523_v0, %v2525_v58  ;;  %v2532_v47 = vsel %vm2528_vm13, %v2525_v58, %v2527_v2  ;;  %v2611_v9 = vadd.f32 %v2592_v5, %v2542_v36 }
 0x4a2   : > { %v2543_v20 = vadd.f32 %v2531_v1, %v2474_v53  ;;  %v2544_v28 = vadd.f32 %v2532_v47, %v2475_v15 }
 0x4a4   : > { %v2586_v33 = vpop.permute.xlu1 %2585  ;;  %v2596_v44 = vpop.permute.xlu0 %2595 }
 0x4a5   : > { %v2598_v30 = vsel %vm2597_vm14, %v2586_v33, %v2588_v51  ;;  %v2608_v52 = vadd.f32 %v2586_v33, %v2539_v48 }
 0x4a6   : > { %v2609_v27 = vadd.f32 %v2598_v30, %v2540_v19 }
 0x4a8   : > { %v2590_v49 = vpop.permute.xlu1 %2589  ;;  %v2657_v3 = vpop.permute.xlu0 %2656 }
 0x4a9   : > { %v2599_v21 = vsel %vm2597_vm14, %v2588_v51, %v2590_v49  ;;  %v5818_v49 = vld [vmem:[#allocation5_spill] sm:$0xff] }
 0x4aa   : > { %v2610_v45 = vadd.f32 %v2599_v21, %v2541_v35 }
 0x4ac   : > { %v2594_v25 = vpop.permute.xlu1 %2593  ;;  %v2661_v63 = vpop.permute.xlu0 %2660 }
 0x4ad   : > { %v2600_v54 = vsel %vm2597_vm14, %v2592_v5, %v2594_v25  ;;  %v2601_v22 = vsel %vm2597_vm14, %v2594_v25, %v2596_v44  ;;  %v2680_v23 = vadd.f32 %v2661_v63, %v2611_v9 }
 0x4ae   : > { %v2612_v0 = vadd.f32 %v2600_v54, %v2543_v20  ;;  %v2613_v24 = vadd.f32 %v2601_v22, %v2544_v28 }
 0x4af   : > { %v2691_v44 = vadd.f32 %v2686_v62, %v2680_v23 }
 0x4b0   : > { %v2655_v39 = vpop.permute.xlu1 %2654  ;;  %v2665_v2 = vpop.permute.xlu0 %2664 }
 0x4b1   : > { %v2667_v7 = vsel %vm2666_vm15, %v2655_v39, %v2657_v3  ;;  %v2677_v46 = vadd.f32 %v2655_v39, %v2608_v52 }
 0x4b2   : > { %v2678_v8 = vadd.f32 %v2667_v7, %v2609_v27 }
 0x4b3   : > { %v2688_v12 = vadd.f32 %v2686_v62, %v2677_v46 }
 0x4b4   : > { %v2689_v42 = vadd.f32 %v2686_v62, %v2678_v8  ;;  %v2659_v16 = vpop.permute.xlu1 %2658 }
 0x4b5   : > { %v2668_v37 = vsel %vm2666_vm15, %v2657_v3, %v2659_v16 }
 0x4b6   : > { %v2697_v38 = vcombine.high %v2688_v12, %v2689_v42  ;;  %v2679_v17 = vadd.f32 %v2668_v37, %v2610_v45 }
 0x4b8   : > { %v2690_v56 = vadd.f32 %v2686_v62, %v2679_v17  ;;  %v2663_v51 = vpop.permute.xlu1 %2662  ;;  %v2705_v6 = vrot.slane %v2697_v38, %v5818_v49 }
 0x4b9   : > { %v2669_v59 = vsel %vm2666_vm15, %v2661_v63, %v2663_v51  ;;  %v2670_v58 = vsel %vm2666_vm15, %v2663_v51, %v2665_v2 }
 0x4ba   : > { %v2698_v33 = vcombine.high %v2690_v56, %v2690_v56  ;;  %v2681_v5 = vadd.f32 %v2669_v59, %v2612_v0  ;;  %v2682_v4 = vadd.f32 %v2670_v58, %v2613_v24 }
 0x4bc   : > { %v2712_v32 = vrot.slane %v2698_v33, %v5818_v49  ;;  %v2692_v60 = vadd.f32 %v2686_v62, %v2681_v5  ;;  %v2693_v43 = vadd.f32 %v2686_v62, %v2682_v4 }
 0x4be   : > { %v2765_v11 = vcombine.low %v2691_v44, %v2692_v60  ;;  %v2714_v14 = vcombine.high %v2705_v6, %v2712_v32  ;;  %v2713_v50 = vcombine.low %v2705_v6, %v2712_v32  ;;  %v2779_v3 = vrot.slane %v2693_v43, %v5818_v49 }
 0x4c0   : > { %v2728_v25 = vrot.slane %v2714_v14, %v5818_v49  ;;  %v2721_v13 = vrot.slane %v2713_v50, %v5818_v49  ;;  %v2772_v48 = vrot.slane %v2765_v11, %v5818_v49 }
 0x4c2   : > { %2731 = vrot.lane.b32.xlu0 %v2728_v25, %s4033_s21  ;;  %2729 = vrot.lane.b32.xlu1 %v2721_v13, %s4033_s21  ;;  %v2781_v30 = vcombine.high %v2772_v48, %v2779_v3  ;;  %v2780_v29 = vcombine.low %v2772_v48, %v2779_v3  ;;  %v2747_v19 = vcombine.high %v2728_v25, %v2728_v25 }
 0x4c3   : > { %v2746_v31 = vcombine.high %v2721_v13, %v2721_v13 }
 0x4c4   : > { %v2795_v40 = vrot.slane %v2781_v30, %v5818_v49  ;;  %v2788_v62 = vrot.slane %v2780_v29, %v5818_v49 }
 0x4c6   : > { %2798 = vrot.lane.b32.xlu0 %v2795_v40, %s4033_s21  ;;  %2796 = vrot.lane.b32.xlu1 %v2788_v62, %s4033_s21  ;;  %v2811_v41 = vcombine.high %v2795_v40, %v2795_v40  ;;  %v2810_v57 = vcombine.high %v2788_v62, %v2788_v62 }
 0x4ca   : > { %2750 = vrot.lane.b32.xlu0 %v2747_v19, %s4033_s21  ;;  %2748 = vrot.lane.b32.xlu1 %v2746_v31, %s4033_s21 }
 0x4ce   : > { %2814 = vrot.lane.b32.xlu0 %v2811_v41, %s4033_s21  ;;  %2812 = vrot.lane.b32.xlu1 %v2810_v57, %s4033_s21 }
 0x534   : > { %v2732_v52 = vpop.permute.xlu0 %2731  ;;  %v2730_v26 = vpop.permute.xlu1 %2729 }
 0x535   : > { %v2734_v27 = vrot.slane %v2732_v52, 1  ;;  %v2733_v39 = vrot.slane %v2730_v26, 1 }
 0x537   : > { %v2736_v61 = vsel %vm2637_vm10, %v2732_v52, %v2734_v27  ;;  %v2735_v21 = vsel %vm2637_vm10, %v2730_v26, %v2733_v39 }
 0x538   : > { %3595 = vst.msk [vmem:[%s4136_s4 + $0x8] ss:$4 sm:$0x3] %vm5445_vm0, %v2736_v61  ;;  %2743 = vst.msk [vmem:[%s4136_s4] ss:$4 sm:$0x3] %vm5445_vm0, %v2735_v21  ;;  %v2799_v7 = vpop.permute.xlu0 %2798  ;;  %v2797_v46 = vpop.permute.xlu1 %2796 }
 0x539   : > { %v2801_v55 = vrot.slane %v2799_v7, 1  ;;  %v2800_v18 = vrot.slane %v2797_v46, 1 }
 0x53b   : > { %v2803_v35 = vsel %vm2637_vm10, %v2799_v7, %v2801_v55  ;;  %v2802_v63 = vsel %vm2637_vm10, %v2797_v46, %v2800_v18 }
 0x53c   : > { %3599 = vst.msk [vmem:[%s4136_s4 + $0xa] ss:$4 sm:$0x3] %vm5445_vm0, %v2803_v35  ;;  %3598 = vst.msk [vmem:[%s4136_s4 + $0x2] ss:$4 sm:$0x3] %vm5445_vm0, %v2802_v63  ;;  %v2751_v8 = vpop.permute.xlu0 %2750  ;;  %v2749_v36 = vpop.permute.xlu1 %2748 }
 0x53d   : > { %v2753_v1 = vrot.slane %v2751_v8, 1  ;;  %v2752_v47 = vrot.slane %v2749_v36, 1 }
 0x53f   : > { %v2755_v12 = vsel %vm2637_vm10, %v2751_v8, %v2753_v1  ;;  %v2754_v53 = vsel %vm2637_vm10, %v2749_v36, %v2752_v47 }
 0x540   : > { %3597 = vst.msk [vmem:[%s4136_s4 + $0x9] ss:$4 sm:$0x3] %vm5445_vm0, %v2755_v12  ;;  %3596 = vst.msk [vmem:[%s4136_s4 + $0x1] ss:$4 sm:$0x3] %vm5445_vm0, %v2754_v53  ;;  %v2815_v15 = vpop.permute.xlu0 %2814  ;;  %v2813_v45 = vpop.permute.xlu1 %2812 }
 0x541   : > { %v2817_v42 = vrot.slane %v2815_v15, 1  ;;  %v2816_v16 = vrot.slane %v2813_v45, 1 }
 0x543   : > { %v2819_v9 = vsel %vm2637_vm10, %v2815_v15, %v2817_v42  ;;  %v2818_v54 = vsel %vm2637_vm10, %v2813_v45, %v2816_v16 }
 0x544   : > { %3601 = vst.msk [vmem:[%s4136_s4 + $0xb] ss:$4 sm:$0x3] %vm5445_vm0, %v2819_v9  ;;  %3600 = vst.msk [vmem:[%s4136_s4 + $0x3] ss:$4 sm:$0x3] %vm5445_vm0, %v2818_v54 }
 0x545 PF: > { %p3602_p10 = scmp.ne.s32.totalorder %s3944_s9, 2 }
 0x546   : > { %v2836_v22 = vld [vmem:[%s4125_s22] sm:$0xff] (!%p3602_p10)  ;;  %v4044_v37 = vmov (!%p3602_p10), 1   ;;  %v4045_v20 = vmov (!%p3602_p10), 3   ;;  %v4046_v28 = vmov (!%p3602_p10), 2   ;;  %v4047_v38 = vmov (!%p3602_p10), 4   ;;  %s4056_s9 = smov (!%p3602_p10), 112  }
 0x547   : > { %2829 = sbr.rel (%p3602_p10) target bundleno = 1843 (0x733), region = 40  ;;  %3909 = vset.pattern.permute.xlu0 (!%p3602_p10), %v4044_v37  ;;  %3911 = vset.pattern.permute.xlu1 (!%p3602_p10), %v4045_v20  ;;  %v4048_v17 = vmov (!%p3602_p10), 5   ;;  %v4049_v23 = vmov (!%p3602_p10), 6   ;;  %v4050_v0 = vmov (!%p3602_p10), 7   ;;  %v4051_v24 = vmov (!%p3602_p10), 10   ;;  %s4057_s22 = smov (!%p3602_p10), 96  }
 0x548   : > { %2856 = vperm.xlu0 (!%p3602_p10), %3909, %v2836_v22   ;;  %2948 = vperm.xlu1 (!%p3602_p10), %3911, %v2836_v22   ;;  %v4052_v2 = vmov (!%p3602_p10), 9   ;;  %v4053_v56 = vmov (!%p3602_p10), 45   ;;  %v4054_v51 = vmov (!%p3602_p10), 0   ;;  %v4055_v59 = vmov (!%p3602_p10), 8   ;;  %v5483_v33 = vld [vmem:[#allocation2 + $0x8] sm:$0xf0] (!%p3602_p10) }
 0x549   : > { %v5485_v5 = vld [vmem:[#allocation2] sm:$0xf0] (!%p3602_p10)  ;;  %v5489_v6 = vld [vmem:[#allocation2 + $0x20] sm:$0xf] (!%p3602_p10)  ;;  %v5491_v32 = vld [vmem:[#allocation2 + $0x10] sm:$0xf0] (!%p3602_p10) }
 0x54a   : > { %v5497_v50 = vld [vmem:[#allocation2 + $0x30] sm:$0xf] (!%p3602_p10)  ;;  %v5499_v3 = vld [vmem:[#allocation2 + $0x28] sm:$0xf] (!%p3602_p10)  ;;  %s4058_s5 = smov (!%p3602_p10), 80   ;;  %s4059_s6 = smov (!%p3602_p10), 64  }
 0x54b   : > { %v5547_v1 = vld [vmem:[#allocation2 + $0x8] sm:$0xf0] (!%p3602_p10)  ;;  %v5549_v12 = vld [vmem:[#allocation2 + $0x10] sm:$0xf0] (!%p3602_p10)  ;;  %v5551_v53 = vld [vmem:[#allocation2 + $0x18] sm:$0xf0] (!%p3602_p10) }
 0x54c   : > { %3910 = vset.pattern.permute.xlu0 (!%p3602_p10), %v4046_v28  ;;  %3912 = vset.pattern.permute.xlu1 (!%p3602_p10), %v4047_v38  ;;  %v5553_v15 = vld [vmem:[#allocation2 + $0x28] sm:$0xf] (!%p3602_p10)  ;;  %v5557_v42 = vld [vmem:[#allocation2 + $0x30] sm:$0xf] (!%p3602_p10)  ;;  %v5559_v16 = vld [vmem:[#allocation2 + $0x38] sm:$0xf] (!%p3602_p10) }
 0x54d   : > { %2902 = vperm.xlu0 (!%p3602_p10), %3910, %v2836_v22   ;;  %2994 = vperm.xlu1 (!%p3602_p10), %3912, %v2836_v22   ;;  %s4060_s7 = smov (!%p3602_p10), 48   ;;  %s4061_s8 = smov (!%p3602_p10), 32   ;;  %vm2884_vm1 = vcmask (!%p3602_p10), 916480   ;;  %vm2930_vm2 = vcmask (!%p3602_p10), 785408   ;;  %vm2976_vm3 = vcmask (!%p3602_p10), 654336   ;;  %vm3022_vm4 = vcmask (!%p3602_p10), 523264  }
 0x54e   : > { %s4062_s10 = smov 16   ;;  %vm3060_vm5 = vcmask 392192   ;;  %vm3110_vm6 = vcmask 261120   ;;  %vm3156_vm7 = vcmask 130048  }
 0x551   : > { %3913 = vset.pattern.permute.xlu1 %v4048_v17  ;;  %3914 = vset.pattern.permute.xlu0 %v4049_v23 }
 0x552   : > { %3040 = vperm.xlu1 %3913, %v2836_v22   ;;  %3082 = vperm.xlu0 %3914, %v2836_v22  }
 0x556   : > { %3915 = vset.pattern.permute.xlu1 %v4050_v0  ;;  %3917 = vset.pattern.permute.xlu0 %v4051_v24 }
 0x557   : > { %3128 = vperm.xlu1 %3915, %v2836_v22   ;;  %3236 = vperm.xlu0 %3917, %v2836_v22  }
 0x55b   : > { %3916 = vset.pattern.permute.xlu1 %v4052_v2  ;;  %3921 = vset.pattern.permute.xlu0 %v4053_v56 }
 0x55c   : > { %3191 = vperm.xlu1 %3916, %v2836_v22  }
 0x560   : > { %3918 = vset.pattern.permute.xlu1 %v4054_v51 }
 0x561   : > { %2839 = vperm.xlu1 %3918, %v2836_v22  }
 0x565   : > { %3919 = vset.pattern.permute.xlu1 %v4055_v59 }
 0x566   : > { %3174 = vperm.xlu1 %3919, %v2836_v22  }
 0x56a   : > { %3920 = vset.pattern.permute.xlu1 %v4053_v56 }
 0x56b   : > { %3281 = vperm.xlu1 %3920, %v2836_v22  }
 0x5c7   : > { %v2857_v58 = vpop.permute.xlu0 %2856  ;;  %v2949_v60 = vpop.permute.xlu1 %2948 }
 0x5c8   : > { %v2858_v4 = vrot.slane %v2857_v58, 4  ;;  %v2950_v57 = vrot.slane %v2949_v60, 4 }
 0x5ca   : > { %v2861_v44 = vmul.f32 %v2858_v4, %v5483_v33  ;;  %v2860_v49 = vmul.f32 %v2858_v4, %v5485_v5  ;;  %v2863_v11 = vmul.f32 %v2858_v4, %v5489_v6  ;;  %v2862_v14 = vmul.f32 %v2858_v4, %v5491_v32 }
 0x5cb   : > { %v2865_v48 = vmul.f32 %v2858_v4, %v5497_v50  ;;  %v2864_v30 = vmul.f32 %v2858_v4, %v5499_v3  ;;  %v2953_v34 = vmul.f32 %v2950_v57, %v5483_v33  ;;  %v2952_v27 = vmul.f32 %v2950_v57, %v5485_v5 }
 0x5cc   : > { %2874 = vrot.lane.b32.xlu0 %v2861_v44, %s4056_s9  ;;  %2872 = vrot.lane.b32.xlu1 %v2860_v49, %s4056_s9  ;;  %v2903_v43 = vpop.permute.xlu0 %2902  ;;  %v2995_v13 = vpop.permute.xlu1 %2994  ;;  %v2955_v8 = vmul.f32 %v2950_v57, %v5489_v6  ;;  %v2954_v36 = vmul.f32 %v2950_v57, %v5491_v32  ;;  %v2957_v38 = vmul.f32 %v2950_v57, %v5497_v50 }
 0x5cd   : > { %v2904_v25 = vrot.slane %v2903_v43, 4  ;;  %v2996_v45 = vrot.slane %v2995_v13, 4  ;;  %v2956_v17 = vmul.f32 %v2950_v57, %v5499_v3 }
 0x5cf   : > { %v2907_v29 = vmul.f32 %v2904_v25, %v5483_v33  ;;  %v2906_v40 = vmul.f32 %v2904_v25, %v5485_v5  ;;  %v2909_v31 = vmul.f32 %v2904_v25, %v5489_v6  ;;  %v2908_v41 = vmul.f32 %v2904_v25, %v5491_v32 }
 0x5d0   : > { %2878 = vrot.lane.b32.xlu0 %v2863_v11, %s4056_s9  ;;  %2876 = vrot.lane.b32.xlu1 %v2862_v14, %s4056_s9  ;;  %v2911_v26 = vmul.f32 %v2904_v25, %v5497_v50  ;;  %v2910_v10 = vmul.f32 %v2904_v25, %v5499_v3  ;;  %v2998_v23 = vmul.f32 %v2996_v45, %v5485_v5 }
 0x5d1   : > { %v3041_v62 = vpop.permute.xlu1 %3040  ;;  %v2999_v0 = vmul.f32 %v2996_v45, %v5483_v33  ;;  %v3000_v24 = vmul.f32 %v2996_v45, %v5491_v32  ;;  %v3001_v2 = vmul.f32 %v2996_v45, %v5489_v6  ;;  %v3002_v51 = vmul.f32 %v2996_v45, %v5499_v3  ;;  %v3083_v4 = vpop.permute.xlu0 %3082 }
 0x5d2   : > { %v3042_v56 = vrot.slane %v3041_v62, 4  ;;  %v3003_v59 = vmul.f32 %v2996_v45, %v5497_v50  ;;  %v3084_v44 = vrot.slane %v3083_v4, 4 }
 0x5d4   : > { %2882 = vrot.lane.b32.xlu0 %v2865_v48, %s4056_s9  ;;  %2880 = vrot.lane.b32.xlu1 %v2864_v30, %s4056_s9  ;;  %v3044_v58 = vmul.f32 %v3042_v56, %v5483_v33  ;;  %v3046_v49 = vmul.f32 %v3042_v56, %v5499_v3  ;;  %v3086_v60 = vmul.f32 %v3084_v44, %v5547_v1 }
 0x5d5   : > { %v3087_v43 = vmul.f32 %v3084_v44, %v5549_v12  ;;  %v3090_v14 = vmul.f32 %v3084_v44, %v5557_v42 }
 0x5d6   : > { %v5511_v19 = vpop.permute.xlu1 %3128 }
 0x5d7   : > { %v3130_v11 = vrot.slane %v5511_v19, 4  ;;  %v3237_v19 = vpop.permute.xlu0 %3236 }
 0x5d8   : > { %2920 = vrot.lane.b32.xlu0 %v2907_v29, %s4057_s22  ;;  %2918 = vrot.lane.b32.xlu1 %v2906_v40, %s4057_s22 }
 0x5d9   : > { %v3133_v25 = vmul.f32 %v3130_v11, %v5549_v12  ;;  %v3134_v48 = vmul.f32 %v3130_v11, %v5551_v53  ;;  %v3135_v30 = vmul.f32 %v3130_v11, %v5553_v15  ;;  %v3136_v40 = vmul.f32 %v3130_v11, %v5557_v42 }
 0x5db   : > { %v5517_v52 = vpop.permute.xlu1 %3191 }
 0x5dc   : > { %2924 = vrot.lane.b32.xlu0 %v2909_v31, %s4057_s22  ;;  %2922 = vrot.lane.b32.xlu1 %v2908_v41, %s4057_s22  ;;  %v3193_v13 = vrot.slane %v5517_v52, 4  ;;  %v3137_v31 = vmul.f32 %v3130_v11, %v5559_v16  ;;  %v3238_v41 = vrot.slane %v3237_v19, 4 }
 0x5de   : > { %v3195_v29 = vmul.f32 %v3193_v13, %v5547_v1  ;;  %v3197_v62 = vmul.f32 %v3193_v13, %v5551_v53  ;;  %v3196_v57 = vmul.f32 %v3193_v13, %v5549_v12  ;;  %v3199_v52 = vmul.f32 %v3193_v13, %v5557_v42 }
 0x5e0   : > { %2928 = vrot.lane.b32.xlu0 %v2911_v26, %s4057_s22  ;;  %2926 = vrot.lane.b32.xlu1 %v2910_v10, %s4057_s22  ;;  %v2840_v39 = vpop.permute.xlu1 %2839  ;;  %v3240_v26 = vmul.f32 %v3238_v41, %v5547_v1  ;;  %v3198_v10 = vmul.f32 %v3193_v13, %v5553_v15 }
 0x5e1   : > { %v2841_v61 = vrot.slane %v2840_v39, 4  ;;  %v3241_v39 = vmul.f32 %v3238_v41, %v5549_v12 }
 0x5e3   : > { %v5526_v21 = vmul.f32 %v2841_v61, %v5485_v5  ;;  %v5529_v7 = vmul.f32 %v2841_v61, %v5483_v33  ;;  %v5532_v46 = vmul.f32 %v2841_v61, %v5491_v32  ;;  %v5535_v55 = vmul.f32 %v2841_v61, %v5497_v50 }
 0x5e4   : > { %2966 = vrot.lane.b32.xlu0 %v2953_v34, %s4058_s5  ;;  %2964 = vrot.lane.b32.xlu1 %v2952_v27, %s4058_s5  ;;  %v5540_v18 = vmul.f32 %v2841_v61, %v5489_v6  ;;  %v5543_v35 = vmul.f32 %v2841_v61, %v5499_v3  ;;  %v3045_v5 = vmul.f32 %v3042_v56, %v5491_v32 }
 0x5e5   : > { %v3175_v63 = vpop.permute.xlu1 %3174  ;;  %v3047_v6 = vmul.f32 %v3042_v56, %v5497_v50  ;;  %v3088_v33 = vmul.f32 %v3084_v44, %v5551_v53  ;;  %v3089_v32 = vmul.f32 %v3084_v44, %v5553_v15  ;;  %v3091_v50 = vmul.f32 %v3084_v44, %v5559_v16 }
 0x5e6   : > { %v3176_v47 = vrot.slane %v3175_v63, 4  ;;  %v3132_v3 = vmul.f32 %v3130_v11, %v5547_v1  ;;  %v3242_v34 = vmul.f32 %v3238_v41, %v5551_v53  ;;  %v3200_v27 = vmul.f32 %v3193_v13, %v5559_v16 }
 0x5e7   : > { %v3244_v61 = vmul.f32 %v3238_v41, %v5557_v42  ;;  %v3243_v63 = vmul.f32 %v3238_v41, %v5553_v15 }
 0x5e8   : > { %2970 = vrot.lane.b32.xlu0 %v2955_v8, %s4058_s5  ;;  %2968 = vrot.lane.b32.xlu1 %v2954_v36, %s4058_s5  ;;  %v5562_v9 = vmul.f32 %v3176_v47, %v5547_v1  ;;  %v5565_v54 = vmul.f32 %v3176_v47, %v5553_v15  ;;  %v5568_v22 = vmul.f32 %v3176_v47, %v5551_v53 }
 0x5e9   : > { %v5571_v37 = vmul.f32 %v3176_v47, %v5549_v12  ;;  %v5574_v20 = vmul.f32 %v3176_v47, %v5557_v42  ;;  %v5577_v28 = vmul.f32 %v3176_v47, %v5559_v16  ;;  %v3245_v8 = vmul.f32 %v3238_v41, %v5559_v16 }
 0x5ea   : > { %v5631_v36 = vpop.permute.xlu1 %3281 }
 0x5ec   : > { %2974 = vrot.lane.b32.xlu0 %v2957_v38, %s4058_s5  ;;  %2972 = vrot.lane.b32.xlu1 %v2956_v17, %s4058_s5 }
 0x5f0   : > { %3010 = vrot.lane.b32.xlu0 %v2998_v23, %s4059_s6  ;;  %3012 = vrot.lane.b32.xlu1 %v2999_v0, %s4059_s6 }
 0x5f4   : > { %3014 = vrot.lane.b32.xlu0 %v3000_v24, %s4059_s6  ;;  %3016 = vrot.lane.b32.xlu1 %v3001_v2, %s4059_s6 }
 0x5f8   : > { %3018 = vrot.lane.b32.xlu0 %v3002_v51, %s4059_s6  ;;  %3020 = vrot.lane.b32.xlu1 %v3003_v59, %s4059_s6 }
 0x5fc   : > { %3052 = vrot.lane.b32.xlu0 %v3044_v58, %s4060_s7  ;;  %3054 = vrot.lane.b32.xlu1 %v3045_v5, %s4060_s7 }
 0x600   : > { %3056 = vrot.lane.b32.xlu0 %v3046_v49, %s4060_s7  ;;  %3058 = vrot.lane.b32.xlu1 %v3047_v6, %s4060_s7 }
 0x604   : > { %3098 = vrot.lane.b32.xlu0 %v3086_v60, %s4061_s8  ;;  %3100 = vrot.lane.b32.xlu1 %v3087_v43, %s4061_s8 }
 0x608   : > { %3102 = vrot.lane.b32.xlu0 %v3088_v33, %s4061_s8  ;;  %3104 = vrot.lane.b32.xlu1 %v3089_v32, %s4061_s8 }
 0x60c   : > { %3106 = vrot.lane.b32.xlu0 %v3090_v14, %s4061_s8  ;;  %3108 = vrot.lane.b32.xlu1 %v3091_v50, %s4061_s8 }
 0x610   : > { %3144 = vrot.lane.b32.xlu0 %v3132_v3, %s4062_s10  ;;  %3146 = vrot.lane.b32.xlu1 %v3133_v25, %s4062_s10 }
 0x614   : > { %3148 = vrot.lane.b32.xlu0 %v3134_v48, %s4062_s10  ;;  %3150 = vrot.lane.b32.xlu1 %v3135_v30, %s4062_s10 }
 0x618   : > { %3152 = vrot.lane.b32.xlu0 %v3136_v40, %s4062_s10  ;;  %3207 = vrot.lane.b32.xlu1 %v3195_v29, %s4056_s9 }
 0x61c   : > { %3154 = vrot.lane.b32.xlu0 %v3137_v31, %s4062_s10  ;;  %3211 = vrot.lane.b32.xlu1 %v3197_v62, %s4056_s9 }
 0x620   : > { %3209 = vrot.lane.b32.xlu0 %v3196_v57, %s4056_s9  ;;  %3215 = vrot.lane.b32.xlu1 %v3199_v52, %s4056_s9 }
 0x624   : > { %3213 = vrot.lane.b32.xlu0 %v3198_v10, %s4056_s9  ;;  %3252 = vrot.lane.b32.xlu1 %v3240_v26, %s4057_s22 }
 0x628   : > { %3217 = vrot.lane.b32.xlu0 %v3200_v27, %s4056_s9  ;;  %3256 = vrot.lane.b32.xlu1 %v3242_v34, %s4057_s22 }
 0x62c   : > { %3254 = vrot.lane.b32.xlu0 %v3241_v39, %s4057_s22  ;;  %3260 = vrot.lane.b32.xlu1 %v3244_v61, %s4057_s22 }
 0x630   : > { %3258 = vrot.lane.b32.xlu0 %v3243_v63, %s4057_s22 }
 0x634   : > { %3262 = vrot.lane.b32.xlu0 %v3245_v8, %s4057_s22 }
 0x63e   : > { %v2875_v1 = vpop.permute.xlu0 %2874  ;;  %v2873_v47 = vpop.permute.xlu1 %2872 }
 0x63f   : > { %v2885_v12 = vsel %vm2884_vm1, %v2873_v47, %v2875_v1 }
 0x640   : > { %v2895_v53 = vadd.f32 %v2885_v12, %v5526_v21 }
 0x642   : > { %v2879_v45 = vpop.permute.xlu0 %2878  ;;  %v2877_v42 = vpop.permute.xlu1 %2876 }
 0x643   : > { %v2886_v38 = vsel %vm2884_vm1, %v2875_v1, %v2877_v42  ;;  %v2897_v15 = vadd.f32 %v2877_v42, %v5532_v46 }
 0x644   : > { %v2896_v17 = vadd.f32 %v2886_v38, %v5529_v7 }
 0x646   : > { %v2883_v16 = vpop.permute.xlu0 %2882  ;;  %v2881_v23 = vpop.permute.xlu1 %2880 }
 0x647   : > { %v2900_v0 = vadd.f32 %v2883_v16, %v5535_v55  ;;  %v2887_v24 = vsel %vm2884_vm1, %v2879_v45, %v2881_v23  ;;  %v2888_v2 = vsel %vm2884_vm1, %v2881_v23, %v2883_v16 }
 0x648   : > { %v2898_v56 = vadd.f32 %v2887_v24, %v5540_v18  ;;  %v2899_v21 = vadd.f32 %v2888_v2, %v5543_v35 }
 0x64a   : > { %v2921_v51 = vpop.permute.xlu0 %2920  ;;  %v2919_v59 = vpop.permute.xlu1 %2918 }
 0x64b   : > { %v2931_v58 = vsel %vm2930_vm2, %v2919_v59, %v2921_v51 }
 0x64c   : > { %v2941_v46 = vadd.f32 %v2931_v58, %v2895_v53 }
 0x64e   : > { %v2925_v5 = vpop.permute.xlu0 %2924  ;;  %v2923_v7 = vpop.permute.xlu1 %2922 }
 0x64f   : > { %v2932_v4 = vsel %vm2930_vm2, %v2921_v51, %v2923_v7  ;;  %v2943_v53 = vadd.f32 %v2923_v7, %v2897_v15 }
 0x650   : > { %v2942_v44 = vadd.f32 %v2932_v4, %v2896_v17 }
 0x652   : > { %v2929_v55 = vpop.permute.xlu0 %2928  ;;  %v2927_v49 = vpop.permute.xlu1 %2926 }
 0x653   : > { %v5645_v6 = vadd.f32 %v2929_v55, %v2900_v0  ;;  %v2933_v60 = vsel %vm2930_vm2, %v2925_v5, %v2927_v49  ;;  %v2934_v18 = vsel %vm2930_vm2, %v2927_v49, %v2929_v55 }
 0x654   : > { %v2944_v35 = vadd.f32 %v2933_v60, %v2898_v56  ;;  %v2945_v43 = vadd.f32 %v2934_v18, %v2899_v21 }
 0x656   : > { %v2967_v33 = vpop.permute.xlu0 %2966  ;;  %v2965_v32 = vpop.permute.xlu1 %2964 }
 0x657   : > { %v2977_v26 = vsel %vm2976_vm3, %v2965_v32, %v2967_v33 }
 0x658   : > { %v2987_v61 = vadd.f32 %v2977_v26, %v2941_v46 }
 0x65a   : > { %v2971_v11 = vpop.permute.xlu0 %2970  ;;  %v2969_v14 = vpop.permute.xlu1 %2968 }
 0x65b   : > { %v2978_v10 = vsel %vm2976_vm3, %v2967_v33, %v2969_v14  ;;  %v2989_v24 = vadd.f32 %v2969_v14, %v2943_v53 }
 0x65c   : > { %v2988_v8 = vadd.f32 %v2978_v10, %v2942_v44 }
 0x65e   : > { %v5649_v50 = vpop.permute.xlu0 %2974  ;;  %v2973_v3 = vpop.permute.xlu1 %2972 }
 0x65f   : > { %v2979_v1 = vsel %vm2976_vm3, %v2971_v11, %v2973_v3  ;;  %v2980_v56 = vsel %vm2976_vm3, %v2973_v3, %v5649_v50 }
 0x660   : > { %v2990_v16 = vadd.f32 %v2979_v1, %v2944_v35  ;;  %v2991_v49 = vadd.f32 %v2980_v56, %v2945_v43  ;;  %v2992_v43 = vadd.f32 %v5649_v50, %v5645_v6 }
 0x662   : > { %v3011_v25 = vpop.permute.xlu0 %3010  ;;  %v3013_v13 = vpop.permute.xlu1 %3012 }
 0x663   : > { %v3023_v34 = vsel %vm3022_vm4, %v3011_v25, %v3013_v13 }
 0x664   : > { %v3033_v47 = vadd.f32 %v3023_v34, %v2987_v61 }
 0x666   : > { %v3015_v48 = vpop.permute.xlu0 %3014  ;;  %v3017_v30 = vpop.permute.xlu1 %3016 }
 0x667   : > { %v3024_v63 = vsel %vm3022_vm4, %v3013_v13, %v3015_v48  ;;  %v3035_v59 = vadd.f32 %v3015_v48, %v2989_v24 }
 0x668   : > { %v3034_v45 = vadd.f32 %v3024_v63, %v2988_v8 }
 0x66a   : > { %v3019_v29 = vpop.permute.xlu0 %3018  ;;  %v5651_v40 = vpop.permute.xlu1 %3020 }
 0x66b   : > { %v3025_v42 = vsel %vm3022_vm4, %v3017_v30, %v3019_v29  ;;  %v3026_v15 = vsel %vm3022_vm4, %v3019_v29, %v5651_v40 }
 0x66c   : > { %v3036_v21 = vadd.f32 %v3025_v42, %v2990_v16  ;;  %v3037_v11 = vadd.f32 %v3026_v15, %v2991_v49  ;;  %v3283_v16 = vrot.slane %v5631_v36, 4 }
 0x66e   : > { %v3053_v62 = vpop.permute.xlu0 %3052  ;;  %v3055_v19 = vpop.permute.xlu1 %3054 }
 0x66f   : > { %v3061_v12 = vsel %vm3060_vm5, %v3053_v62, %v3055_v19  ;;  %v3069_v23 = vadd.f32 %v3053_v62, %v3033_v47  ;;  %v3071_v60 = vadd.f32 %v3055_v19, %v3035_v59 }
 0x670   : > { %v3070_v2 = vadd.f32 %v3061_v12, %v3034_v45 }
 0x672   : > { %v3057_v31 = vpop.permute.xlu0 %3056  ;;  %v5653_v41 = vpop.permute.xlu1 %3058 }
 0x673   : > { %v3072_v7 = vadd.f32 %v3057_v31, %v3036_v21  ;;  %v3062_v35 = vsel %vm3060_vm5, %v3057_v31, %v5653_v41 }
 0x674   : > { %v3073_v62 = vadd.f32 %v3062_v35, %v3037_v11 }
 0x676   : > { %v3099_v57 = vpop.permute.xlu0 %3098  ;;  %v3101_v52 = vpop.permute.xlu1 %3100 }
 0x677   : > { %v3111_v0 = vsel %vm3110_vm6, %v3099_v57, %v3101_v52  ;;  %v3121_v51 = vadd.f32 %v3099_v57, %v3069_v23 }
 0x678   : > { %v3122_v58 = vadd.f32 %v3111_v0, %v3070_v2 }
 0x67a   : > { %v3103_v27 = vpop.permute.xlu0 %3102  ;;  %v3105_v39 = vpop.permute.xlu1 %3104 }
 0x67b   : > { %v3112_v4 = vsel %vm3110_vm6, %v3101_v52, %v3103_v27  ;;  %v3124_v33 = vadd.f32 %v3105_v39, %v3072_v7 }
 0x67c   : > { %v3123_v14 = vadd.f32 %v3112_v4, %v3071_v60 }
 0x67e   : > { %v3107_v38 = vpop.permute.xlu0 %3106  ;;  %v3109_v17 = vpop.permute.xlu1 %3108 }
 0x67f   : > { %v3113_v48 = vsel %vm3110_vm6, %v3105_v39, %v3107_v38 }
 0x680   : > { %v3125_v57 = vadd.f32 %v3113_v48, %v3073_v62 }
 0x682   : > { %v3145_v46 = vpop.permute.xlu0 %3144  ;;  %v3147_v5 = vpop.permute.xlu1 %3146 }
 0x683   : > { %v3167_v44 = vadd.f32 %v3145_v46, %v3121_v51  ;;  %v3157_v55 = vsel %vm3156_vm7, %v3145_v46, %v3147_v5 }
 0x684   : > { %v3168_v18 = vadd.f32 %v3157_v55, %v3122_v58 }
 0x685   : > { %v3184_v32 = vadd.f32 %v5562_v9, %v3167_v44  ;;  %v3038_v9 = vadd.f32 %v5651_v40, %v2992_v43 }
 0x686   : > { %v3149_v3 = vpop.permute.xlu0 %3148  ;;  %v3151_v25 = vpop.permute.xlu1 %3150  ;;  %v3185_v13 = vadd.f32 %v5571_v37, %v3168_v18  ;;  %v3114_v37 = vsel %vm3110_vm6, %v3107_v38, %v3109_v17  ;;  %v5822_v18 = vld [vmem:[#allocation5_spill] sm:$0xff] }
 0x687   : > { %v3158_v30 = vsel %vm3156_vm7, %v3147_v5, %v3149_v3  ;;  %v3170_v29 = vadd.f32 %v3151_v25, %v3124_v33  ;;  %v3074_v27 = vadd.f32 %v5653_v41, %v3038_v9 }
 0x688   : > { %v3169_v19 = vadd.f32 %v3158_v30, %v3123_v14 }
 0x689   : > { %v3187_v31 = vadd.f32 %v5565_v54, %v3170_v29  ;;  %v3126_v61 = vadd.f32 %v3114_v37, %v3074_v27 }
 0x68a   : > { %v3153_v52 = vpop.permute.xlu0 %3152  ;;  %v3208_v26 = vpop.permute.xlu1 %3207  ;;  %v3186_v10 = vadd.f32 %v5568_v22, %v3169_v19 }
 0x68b   : > { %v3159_v34 = vsel %vm3156_vm7, %v3151_v25, %v3153_v52 }
 0x68c   : > { %v3171_v39 = vadd.f32 %v3159_v34, %v3125_v57 }
 0x68e   : > { %v3155_v6 = vpop.permute.xlu0 %3154  ;;  %v3212_v50 = vpop.permute.xlu1 %3211  ;;  %v3188_v63 = vadd.f32 %v5574_v20, %v3171_v39 }
 0x68f   : > { %v3160_v54 = vsel %vm3156_vm7, %v3153_v52, %v3155_v6  ;;  %v3231_v53 = vadd.f32 %v3212_v50, %v3186_v10 }
 0x690   : > { %v3172_v40 = vadd.f32 %v3160_v54, %v3126_v61 }
 0x692   : > { %v3210_v8 = vpop.permute.xlu0 %3209  ;;  %v3216_v1 = vpop.permute.xlu1 %3215  ;;  %v3189_v47 = vadd.f32 %v5577_v28, %v3172_v40 }
 0x693   : > { %v3219_v41 = vsel %vm2884_vm1, %v3208_v26, %v3210_v8  ;;  %v3220_v38 = vsel %vm2884_vm1, %v3210_v8, %v3212_v50  ;;  %v5823_v50 = vlaneseq }
 0x694   : > { %v3229_v20 = vadd.f32 %v3219_v41, %v3184_v32  ;;  %v3230_v23 = vadd.f32 %v3220_v38, %v3185_v13 }
 0x695   : > { %vm5712_vm8 = vcmp.lt.s32.totalorder %v5823_v50, 256 }
 0x696   : > { %v3214_v22 = vpop.permute.xlu0 %3213  ;;  %v3253_v12 = vpop.permute.xlu1 %3252 }
 0x697   : > { %v3221_v56 = vsel %vm2884_vm1, %v3214_v22, %v3216_v1 }
 0x698   : > { %v3232_v7 = vadd.f32 %v3221_v56, %v3187_v31 }
 0x69a   : > { %v3218_v45 = vpop.permute.xlu0 %3217  ;;  %v3257_v42 = vpop.permute.xlu1 %3256 }
 0x69b   : > { %v3276_v17 = vadd.f32 %v3257_v42, %v3231_v53  ;;  %v3222_v36 = vsel %vm2884_vm1, %v3216_v1, %v3218_v45  ;;  %v3234_v55 = vadd.f32 %v3218_v45, %v3189_v47 }
 0x69c   : > { %v3233_v60 = vadd.f32 %v3222_v36, %v3188_v63 }
 0x69d   : > { %v3287_v0 = vadd.f32 %v3283_v16, %v3276_v17 }
 0x69e   : > { %v3255_v24 = vpop.permute.xlu0 %3254  ;;  %v3261_v46 = vpop.permute.xlu1 %3260 }
 0x69f   : > { %v3264_v2 = vsel %vm2930_vm2, %v3253_v12, %v3255_v24  ;;  %v3265_v28 = vsel %vm2930_vm2, %v3255_v24, %v3257_v42  ;;  %v3295_v59 = vcombine.high %v3287_v0, %v3287_v0 }
 0x6a0   : > { %v3274_v21 = vadd.f32 %v3264_v2, %v3229_v20  ;;  %v3275_v51 = vadd.f32 %v3265_v28, %v3230_v23 }
 0x6a1   : > { %v3309_v35 = vrot.slane %v3295_v59, %v5822_v18 }
 0x6a2   : > { %v3285_v15 = vadd.f32 %v3283_v16, %v3274_v21  ;;  %v3286_v58 = vadd.f32 %v3283_v16, %v3275_v51  ;;  %v3259_v5 = vpop.permute.xlu0 %3258 }
 0x6a3   : > { %v3266_v4 = vsel %vm2930_vm2, %v3259_v5, %v3261_v46 }
 0x6a4   : > { %v3294_v44 = vcombine.high %v3285_v15, %v3286_v58  ;;  %v3277_v49 = vadd.f32 %v3266_v4, %v3232_v7 }
 0x6a6   : > { %v3263_v33 = vpop.permute.xlu0 %3262  ;;  %v3302_v32 = vrot.slane %v3294_v44, %v5822_v18  ;;  %v3288_v48 = vadd.f32 %v3283_v16, %v3277_v49 }
 0x6a7   : > { %v3267_v11 = vsel %vm2930_vm2, %v3261_v46, %v3263_v33  ;;  %v3279_v14 = vadd.f32 %v3263_v33, %v3234_v55 }
 0x6a8   : > { %v3278_v3 = vadd.f32 %v3267_v11, %v3233_v60  ;;  %v3311_v25 = vcombine.high %v3302_v32, %v3309_v35  ;;  %v3310_v13 = vcombine.low %v3302_v32, %v3309_v35 }
 0x6a9   : > { %v3290_v29 = vadd.f32 %v3283_v16, %v3279_v14 }
 0x6aa   : > { %v3289_v30 = vadd.f32 %v3283_v16, %v3278_v3  ;;  %v3325_v43 = vrot.slane %v3311_v25, %v5822_v18  ;;  %v3318_v62 = vrot.slane %v3310_v13, %v5822_v18 }
 0x6ab   : > { %v3376_v31 = vrot.slane %v3290_v29, %v5822_v18 }
 0x6ac   : > { %v3362_v19 = vcombine.low %v3288_v48, %v3289_v30  ;;  %3328 = vrot.lane.b32.xlu0 %v3325_v43, %s4058_s5  ;;  %3326 = vrot.lane.b32.xlu1 %v3318_v62, %s4058_s5  ;;  %v3344_v37 = vcombine.high %v3325_v43, %v3325_v43  ;;  %v3343_v34 = vcombine.high %v3318_v62, %v3318_v62 }
 0x6ae   : > { %v3369_v9 = vrot.slane %v3362_v19, %v5822_v18 }
 0x6b0   : > { %v3378_v57 = vcombine.high %v3369_v9, %v3376_v31  ;;  %v3377_v52 = vcombine.low %v3369_v9, %v3376_v31 }
 0x6b2   : > { %v3392_v26 = vrot.slane %v3378_v57, %v5822_v18  ;;  %v3385_v10 = vrot.slane %v3377_v52, %v5822_v18 }
 0x6b4   : > { %3395 = vrot.lane.b32.xlu0 %v3392_v26, %s4058_s5  ;;  %3393 = vrot.lane.b32.xlu1 %v3385_v10, %s4058_s5  ;;  %v3408_v27 = vcombine.high %v3392_v26, %v3392_v26  ;;  %v3407_v39 = vcombine.high %v3385_v10, %v3385_v10 }
 0x6b8   : > { %3347 = vrot.lane.b32.xlu0 %v3344_v37, %s4058_s5  ;;  %3345 = vrot.lane.b32.xlu1 %v3343_v34, %s4058_s5 }
 0x6bc   : > { %3411 = vrot.lane.b32.xlu0 %v3408_v27, %s4058_s5  ;;  %3409 = vrot.lane.b32.xlu1 %v3407_v39, %s4058_s5 }
 0x71e   : > { %v3329_v61 = vpop.permute.xlu0 %3328  ;;  %v3327_v6 = vpop.permute.xlu1 %3326 }
 0x71f   : > { %v3331_v54 = vrot.slane %v3329_v61, 1  ;;  %v3330_v40 = vrot.slane %v3327_v6, 1 }
 0x721   : > { %v3333_v8 = vsel %vm2976_vm3, %v3329_v61, %v3331_v54  ;;  %v3332_v1 = vsel %vm2976_vm3, %v3327_v6, %v3330_v40 }
 0x722   : > { %3603 = vst.msk [vmem:[%s4136_s4 + $0x8] ss:$4 sm:$0x3] %vm5712_vm8, %v3333_v8  ;;  %3340 = vst.msk [vmem:[%s4136_s4] ss:$4 sm:$0x3] %vm5712_vm8, %v3332_v1 }
 0x726   : > { %v3396_v47 = vpop.permute.xlu0 %3395  ;;  %v3394_v22 = vpop.permute.xlu1 %3393 }
 0x727   : > { %v3398_v12 = vrot.slane %v3396_v47, 1  ;;  %v3397_v53 = vrot.slane %v3394_v22, 1 }
 0x729   : > { %v3400_v45 = vsel %vm2976_vm3, %v3396_v47, %v3398_v12  ;;  %v3399_v42 = vsel %vm2976_vm3, %v3394_v22, %v3397_v53 }
 0x72a   : > { %3607 = vst.msk [vmem:[%s4136_s4 + $0xa] ss:$4 sm:$0x3] %vm5712_vm8, %v3400_v45  ;;  %3606 = vst.msk [vmem:[%s4136_s4 + $0x2] ss:$4 sm:$0x3] %vm5712_vm8, %v3399_v42  ;;  %v3348_v41 = vpop.permute.xlu0 %3347  ;;  %v3346_v38 = vpop.permute.xlu1 %3345 }
 0x72b   : > { %v3350_v17 = vrot.slane %v3348_v41, 1  ;;  %v3349_v16 = vrot.slane %v3346_v38, 1 }
 0x72d   : > { %v3352_v20 = vsel %vm2976_vm3, %v3348_v41, %v3350_v17  ;;  %v3351_v23 = vsel %vm2976_vm3, %v3346_v38, %v3349_v16 }
 0x72e   : > { %3605 = vst.msk [vmem:[%s4136_s4 + $0x9] ss:$4 sm:$0x3] %vm5712_vm8, %v3352_v20  ;;  %3604 = vst.msk [vmem:[%s4136_s4 + $0x1] ss:$4 sm:$0x3] %vm5712_vm8, %v3351_v23  ;;  %v3412_v0 = vpop.permute.xlu0 %3411  ;;  %v3410_v24 = vpop.permute.xlu1 %3409 }
 0x72f   : > { %v3414_v2 = vrot.slane %v3412_v0, 1  ;;  %v3413_v28 = vrot.slane %v3410_v24, 1 }
 0x731   : > { %v3416_v56 = vsel %vm2976_vm3, %v3412_v0, %v3414_v2  ;;  %v3415_v21 = vsel %vm2976_vm3, %v3410_v24, %v3413_v28 }
 0x732   : > { %3609 = vst.msk [vmem:[%s4136_s4 + $0xb] ss:$4 sm:$0x3] %vm5712_vm8, %v3416_v56  ;;  %3608 = vst.msk [vmem:[%s4136_s4 + $0x3] ss:$4 sm:$0x3] %vm5712_vm8, %v3415_v21 }
 0x733 PF: > { %s12_s13 = sadd.s32 1, %s3960_s13   ;;  %s5826_s9 = smov %s3952_s11 }
 0x734   : > { %p9_p11 = scmp.ge.s32.totalorder %s12_s13, 8   ;;  %s5827_s10 = smov %s3956_s12 }
 0x735   : > { %s5828_s11 = smov %s5831_s14  ;;  %s5829_s12 = smov %s5835_s15 }
 0x736   :  { %11 = sbr.rel (!%p9_p11) target bundleno = 3 (0x3), region = 101 }

</bundles_post_ra>
